<compile_context>
chip_gen: v5e
topology: v5e:2x2
jax: 0.10.0
libtpu: 0.0.40
codegen_flags: <defaults>
</compile_context>

<pallas_src>
import jax
import jax.numpy as jnp
from jax.experimental import pallas as pl
from jax.experimental.pallas import tpu as pltpu

PRO_DIM = 1024                 # first feature slab
ESM_DIM = 1280                 # second feature slab
IN_DIM = PRO_DIM + ESM_DIM     # 2304
BR = 128                       # per-branch conv output channels
TB_DEFAULT = 512               # batch tile (rows per grid step)


def _net_kernel(x_ref, wp_ref, bp_ref, we_ref, be_ref,
                w1p_ref, w1e_ref, b1_ref, w2_ref, b2_ref, w3_ref, b3_ref,
                o_ref):
    # Split the (tb, 2304) block into pro/esm with lane-aligned views
    # (offsets 0 and 1024 are multiples of 128 -> free slices).
    pro = x_ref[:, :PRO_DIM].astype(jnp.bfloat16)          # (tb, 1024)
    esm = x_ref[:, PRO_DIM:].astype(jnp.bfloat16)          # (tb, 1280)

    # Conv1d branches fold to a single matmul per source (length-1 signal).
    h_pro = jnp.maximum(
        jnp.dot(pro, wp_ref[...], preferred_element_type=jnp.float32)
        + bp_ref[...], 0.0)                                # (tb, 384) f32
    h_esm = jnp.maximum(
        jnp.dot(esm, we_ref[...], preferred_element_type=jnp.float32)
        + be_ref[...], 0.0)                                # (tb, 384) f32

    n = h_pro.shape[1]                                     # 384 = 3 * 128
    # Hoisted (1, n) lane-in-branch index + boundary masks; broadcast against
    # the (tb, n) slabs inside jnp.where (no (tb, n) mask materialization).
    lane = jax.lax.broadcasted_iota(jnp.int32, (1, n), 1) & (BR - 1)
    mask_l = [lane >= s for s in range(1, 5)]
    mask_r = [lane < BR - s for s in range(1, 5)]

    def maxpool9(h):
        # MaxPool1d(kernel_size=9, stride=1, padding=4) applied independently
        # to each 128-wide branch of the (tb, 384) slab.  Masked entries use
        # 0, which equals -inf padding here because h >= 0 (post-ReLU) and
        # every window contains its own (unmasked) center.
        out = h
        for s in range(1, 5):
            from_left = pltpu.roll(h, s, 1)        # [:, j] = h[:, j - s]
            from_right = pltpu.roll(h, n - s, 1)   # [:, j] = h[:, j + s]
            out = jnp.maximum(
                out,
                jnp.maximum(jnp.where(mask_l[s - 1], from_left, 0.0),
                            jnp.where(mask_r[s - 1], from_right, 0.0)))
        return out

    p_pro = maxpool9(h_pro).astype(jnp.bfloat16)           # (tb, 384)
    p_esm = maxpool9(h_esm).astype(jnp.bfloat16)           # (tb, 384)

    # fc1: Dropout(0.5) (eval -> identity) -> Linear(768,128) -> ReLU
    #      -> Linear(128,16).  Linear(768,128) split into pro/esm halves so no
    #      lane concat is needed.
    h1 = jnp.maximum(
        jnp.dot(p_pro, w1p_ref[...], preferred_element_type=jnp.float32)
        + jnp.dot(p_esm, w1e_ref[...], preferred_element_type=jnp.float32)
        + b1_ref[...], 0.0)                                # (tb, 128) f32
    h2 = jnp.dot(h1, w2_ref[...], preferred_element_type=jnp.float32) + b2_ref[...]
    # fc2: ReLU -> Linear(16,1) -> Sigmoid.  16->1 done as VPU mul + reduce.
    h3 = jnp.maximum(h2, 0.0)                              # (tb, 16)
    logit = jnp.sum(h3 * w3_ref[...], axis=1, keepdims=True) + b3_ref[...]
    o_ref[...] = jax.nn.sigmoid(logit)                     # (tb, 1)


def net_forward(x, params, *, tb=None):
    wp, bp, we, be, w1, b1, w2, b2, w3, b3 = params
    batch = x.shape[0]
    assert x.shape[1] == IN_DIM
    if tb is None:
        tb = min(TB_DEFAULT, batch)
    padded = pl.cdiv(batch, tb) * tb
    if padded != batch:                     # pad ragged batches to the tile
        x = jnp.pad(x, ((0, padded - batch), (0, 0)))

    # Big weights stored / DMA'd as bf16 (kernel is HBM-DMA bound); biases and
    # the tiny tail weights stay f32.
    weight_args = (
        wp.astype(jnp.bfloat16), bp.reshape(1, -1),
        we.astype(jnp.bfloat16), be.reshape(1, -1),
        w1[:3 * BR].astype(jnp.bfloat16), w1[3 * BR:].astype(jnp.bfloat16),
        b1.reshape(1, -1),
        w2, b2.reshape(1, -1),
        w3.reshape(1, -1), b3.reshape(1, 1),
    )
    x_spec = pl.BlockSpec((tb, IN_DIM), lambda i: (i, 0))
    # Constant block index => weights stay VMEM-resident across grid steps.
    resident = lambda a: pl.BlockSpec(a.shape, lambda i: (0, 0))

    out = pl.pallas_call(
        _net_kernel,
        out_shape=jax.ShapeDtypeStruct((padded, 1), jnp.float32),
        grid=(padded // tb,),
        in_specs=[x_spec] + [resident(a) for a in weight_args],
        out_specs=pl.BlockSpec((tb, 1), lambda i: (i, 0)),
        compiler_params=pltpu.CompilerParams(
            # Batch axis has no cross-step accumulator: safe to shard across
            # v7x's two TensorCores; measured no-op on v5e/v6e.
            dimension_semantics=("parallel",),
            # Raise the scoped-VMEM limit so the 512-row tile (~9 MiB x block
            # double-buffered + ~4 MiB weights + intermediates) always fits.
            vmem_limit_bytes=40 * 1024 * 1024,
        ),
    )(x, *weight_args)
    # TODO(synk): torch .squeeze() would also drop the batch dim when batch==1;
    # here we always return shape (batch,).
    return out[:batch, 0]


# ----------------------- pure-JAX reference (f32) --------------------------

def net_reference(x, params):
    wp, bp, we, be, w1, b1, w2, b2, w3, b3 = params
    pro, esm = x[:, :PRO_DIM], x[:, PRO_DIM:]
    h_pro = jax.nn.relu(pro @ wp + bp)
    h_esm = jax.nn.relu(esm @ we + be)

    def pool(h):   # MaxPool1d(9, stride=1, padding=4) per 128-wide branch
        b = h.shape[0]
        h3 = h.reshape(b, 3, BR)
        hp = jnp.pad(h3, ((0, 0), (0, 0), (4, 4)), constant_values=-jnp.inf)
        win = jnp.stack([hp[:, :, s:s + BR] for s in range(9)], axis=0)
        return win.max(axis=0).reshape(b, 3 * BR)

    feat = jnp.concatenate([pool(h_pro), pool(h_esm)], axis=1)
    h1 = jax.nn.relu(feat @ w1 + b1)
    h2 = h1 @ w2 + b2
    logit = jax.nn.relu(h2) @ w3 + b3
    return jax.nn.sigmoid(logit)[:, 0]


# ---------------------- deterministic parameter setup ----------------------

def _conv_bn_branch(key, cin, k):
    """Conv1d(cin, 128, k, padding=k//2) + BatchNorm1d(128) folded (eval)."""
    kw, kb, kg, kbe, kmu, kva = jax.random.split(key, 6)
    bound = 1.0 / (cin * k) ** 0.5
    w = jax.random.uniform(kw, (BR, cin, k), jnp.float32, -bound, bound)
    b = jax.random.uniform(kb, (BR,), jnp.float32, -bound, bound)
    gamma = 1.0 + 0.1 * jax.random.normal(kg, (BR,), jnp.float32)
    beta = 0.1 * jax.random.normal(kbe, (BR,), jnp.float32)
    mean = 0.1 * jax.random.normal(kmu, (BR,), jnp.float32)
    var = 1.0 + 0.1 * jnp.abs(jax.random.normal(kva, (BR,), jnp.float32))
    s = gamma / jnp.sqrt(var + 1e-5)
    # Only the center tap touches non-zero input (signal length is 1).
    wc = w[:, :, k // 2].T * s[None, :]      # (cin, 128)
    bc = (b - mean) * s + beta               # (128,)
    return wc, bc


def _linear(key, fin, fout):
    kw, kb = jax.random.split(key)
    bound = 1.0 / fin ** 0.5
    w = jax.random.uniform(kw, (fout, fin), jnp.float32, -bound, bound)
    b = jax.random.uniform(kb, (fout,), jnp.float32, -bound, bound)
    return w.T, b                            # (fin, fout), (fout,)


def make_params(key):
    keys = jax.random.split(key, 9)
    # pro branches (Conv1d(1024,128,k) for k in 3,5,7)
    pro_parts = [_conv_bn_branch(keys[i], PRO_DIM, k) for i, k in enumerate((3, 5, 7))]
    wp = jnp.concatenate([p[0] for p in pro_parts], axis=1)   # (1024, 384)
    bp = jnp.concatenate([p[1] for p in pro_parts], axis=0)   # (384,)
    # esm1b branches (Conv1d(1280,128,k))
    esm_parts = [_conv_bn_branch(keys[3 + i], ESM_DIM, k) for i, k in enumerate((3, 5, 7))]
    we = jnp.concatenate([p[0] for p in esm_parts], axis=1)   # (1280, 384)
    be = jnp.concatenate([p[1] for p in esm_parts], axis=0)   # (384,)
    # fc1: Linear(768,128), Linear(128,16);  fc2: Linear(16,1)
    w1, b1 = _linear(keys[6], 6 * BR, 128)
    w2, b2 = _linear(keys[7], 128, 16)
    w3, b3 = _linear(keys[8], 16, 1)
    return (wp, bp, we, be, w1, b1, w2, b2, w3, b3)


if __name__ == "__main__":
    key = jax.random.PRNGKey(0)
    kx, kp = jax.random.split(key)
    batch = 16
    x = jax.random.normal(kx, (batch, IN_DIM), jnp.float32)   # (16, 2304)
    params = make_params(kp)
    # TODO(synk): Dropout / BatchNorm are implemented in eval mode only.
    # Small tb here only to exercise a multi-step grid; production default is
    # tb=512 via net_forward(x, params).
    out = net_forward(x, params, tb=8)
    jax.block_until_ready(out)
    assert out.shape == (batch,) and out.dtype == jnp.float32
    ref = net_reference(x, params)
    assert float(jnp.max(jnp.abs(out - ref))) < 2e-2   # bf16-path tolerance
    print("KERNEL_OK")
</pallas_src>

<mosaic_0001>
module attributes {stable_mosaic.version = 11 : i64} {
  func.func @_net_kernel(%arg0: i32, %arg1: memref<8x2304xf32, #tpu.memory_space<vmem>>, %arg2: memref<1024x384xbf16, #tpu.memory_space<vmem>>, %arg3: memref<1x384xf32, #tpu.memory_space<vmem>>, %arg4: memref<1280x384xbf16, #tpu.memory_space<vmem>>, %arg5: memref<1x384xf32, #tpu.memory_space<vmem>>, %arg6: memref<384x128xbf16, #tpu.memory_space<vmem>>, %arg7: memref<384x128xbf16, #tpu.memory_space<vmem>>, %arg8: memref<1x128xf32, #tpu.memory_space<vmem>>, %arg9: memref<128x16xf32, #tpu.memory_space<vmem>>, %arg10: memref<1x16xf32, #tpu.memory_space<vmem>>, %arg11: memref<1x16xf32, #tpu.memory_space<vmem>>, %arg12: memref<1x1xf32, #tpu.memory_space<vmem>>, %arg13: memref<8x1xf32, #tpu.memory_space<vmem>>) attributes {dimension_semantics = [#tpu.dimension_semantics<parallel>], iteration_bounds = array<i64: 2>, scalar_prefetch = 0 : i64, scratch_operands = 0 : i64, tpu.core_type = #tpu.core_type<tc>, window_params = [{transform_indices = @transform_0, window_bounds = array<i64: 8, 2304>}, {pipeline_mode = #tpu.pipeline_mode<synchronous>, transform_indices = @transform_1, window_bounds = array<i64: 1024, 384>}, {pipeline_mode = #tpu.pipeline_mode<synchronous>, transform_indices = @transform_2, window_bounds = array<i64: 1, 384>}, {pipeline_mode = #tpu.pipeline_mode<synchronous>, transform_indices = @transform_3, window_bounds = array<i64: 1280, 384>}, {pipeline_mode = #tpu.pipeline_mode<synchronous>, transform_indices = @transform_4, window_bounds = array<i64: 1, 384>}, {pipeline_mode = #tpu.pipeline_mode<synchronous>, transform_indices = @transform_5, window_bounds = array<i64: 384, 128>}, {pipeline_mode = #tpu.pipeline_mode<synchronous>, transform_indices = @transform_6, window_bounds = array<i64: 384, 128>}, {pipeline_mode = #tpu.pipeline_mode<synchronous>, transform_indices = @transform_7, window_bounds = array<i64: 1, 128>}, {pipeline_mode = #tpu.pipeline_mode<synchronous>, transform_indices = @transform_8, window_bounds = array<i64: 128, 16>}, {pipeline_mode = #tpu.pipeline_mode<synchronous>, transform_indices = @transform_9, window_bounds = array<i64: 1, 16>}, {pipeline_mode = #tpu.pipeline_mode<synchronous>, transform_indices = @transform_10, window_bounds = array<i64: 1, 16>}, {pipeline_mode = #tpu.pipeline_mode<synchronous>, transform_indices = @transform_11, window_bounds = array<i64: 1, 1>}, {transform_indices = @transform_12, window_bounds = array<i64: 8, 1>}]} {
    %c0 = arith.constant 0 : index
    %c0_0 = arith.constant 0 : index
    %0 = vector.load %arg1[%c0, %c0_0] : memref<8x2304xf32, #tpu.memory_space<vmem>>, vector<8x1024xf32>
    %1 = arith.truncf %0 : vector<8x1024xf32> to vector<8x1024xbf16>
    %c0_1 = arith.constant 0 : index
    %c1024 = arith.constant 1024 : index
    %2 = vector.load %arg1[%c0_1, %c1024] : memref<8x2304xf32, #tpu.memory_space<vmem>>, vector<8x1280xf32>
    %3 = arith.truncf %2 : vector<8x1280xf32> to vector<8x1280xbf16>
    %c0_2 = arith.constant 0 : index
    %c0_3 = arith.constant 0 : index
    %4 = vector.load %arg2[%c0_2, %c0_3] : memref<1024x384xbf16, #tpu.memory_space<vmem>>, vector<1024x384xbf16>
    %cst = arith.constant dense<0.000000e+00> : vector<8x384xf32>
    %5 = tpu.matmul %1, %4, %cst {dimension_numbers = #tpu.dot_dimension_numbers<[1], [0], [0], [1], [0, 0, 1, 1], [], []>} : vector<8x1024xbf16>, vector<1024x384xbf16>, vector<8x384xf32> -> vector<8x384xf32>
    %c0_4 = arith.constant 0 : index
    %c0_5 = arith.constant 0 : index
    %6 = vector.load %arg3[%c0_4, %c0_5] : memref<1x384xf32, #tpu.memory_space<vmem>>, vector<1x384xf32>
    %7 = vector.broadcast %6 : vector<1x384xf32> to vector<8x384xf32>
    %8 = arith.addf %5, %7 : vector<8x384xf32>
    %cst_6 = arith.constant 0.000000e+00 : f32
    %9 = vector.broadcast %cst_6 : f32 to vector<8x384xf32>
    %10 = arith.maximumf %8, %9 : vector<8x384xf32>
    %c0_7 = arith.constant 0 : index
    %c0_8 = arith.constant 0 : index
    %11 = vector.load %arg4[%c0_7, %c0_8] : memref<1280x384xbf16, #tpu.memory_space<vmem>>, vector<1280x384xbf16>
    %cst_9 = arith.constant dense<0.000000e+00> : vector<8x384xf32>
    %12 = tpu.matmul %3, %11, %cst_9 {dimension_numbers = #tpu.dot_dimension_numbers<[1], [0], [0], [1], [0, 0, 1, 1], [], []>} : vector<8x1280xbf16>, vector<1280x384xbf16>, vector<8x384xf32> -> vector<8x384xf32>
    %c0_10 = arith.constant 0 : index
    %c0_11 = arith.constant 0 : index
    %13 = vector.load %arg5[%c0_10, %c0_11] : memref<1x384xf32, #tpu.memory_space<vmem>>, vector<1x384xf32>
    %14 = vector.broadcast %13 : vector<1x384xf32> to vector<8x384xf32>
    %15 = arith.addf %12, %14 : vector<8x384xf32>
    %cst_12 = arith.constant 0.000000e+00 : f32
    %16 = vector.broadcast %cst_12 : f32 to vector<8x384xf32>
    %17 = arith.maximumf %15, %16 : vector<8x384xf32>
    %18 = tpu.iota {dimensions = array<i32: 1>} : vector<1x384xi32>
    %c127_i32 = arith.constant 127 : i32
    %19 = vector.broadcast %c127_i32 : i32 to vector<1x384xi32>
    %20 = arith.andi %18, %19 : vector<1x384xi32>
    %c1_i32 = arith.constant 1 : i32
    %21 = vector.broadcast %c1_i32 : i32 to vector<1x384xi32>
    %22 = arith.cmpi sge, %20, %21 : vector<1x384xi32>
    %c2_i32 = arith.constant 2 : i32
    %23 = vector.broadcast %c2_i32 : i32 to vector<1x384xi32>
    %24 = arith.cmpi sge, %20, %23 : vector<1x384xi32>
    %c3_i32 = arith.constant 3 : i32
    %25 = vector.broadcast %c3_i32 : i32 to vector<1x384xi32>
    %26 = arith.cmpi sge, %20, %25 : vector<1x384xi32>
    %c4_i32 = arith.constant 4 : i32
    %27 = vector.broadcast %c4_i32 : i32 to vector<1x384xi32>
    %28 = arith.cmpi sge, %20, %27 : vector<1x384xi32>
    %c127_i32_13 = arith.constant 127 : i32
    %29 = vector.broadcast %c127_i32_13 : i32 to vector<1x384xi32>
    %30 = arith.cmpi slt, %20, %29 : vector<1x384xi32>
    %c126_i32 = arith.constant 126 : i32
    %31 = vector.broadcast %c126_i32 : i32 to vector<1x384xi32>
    %32 = arith.cmpi slt, %20, %31 : vector<1x384xi32>
    %c125_i32 = arith.constant 125 : i32
    %33 = vector.broadcast %c125_i32 : i32 to vector<1x384xi32>
    %34 = arith.cmpi slt, %20, %33 : vector<1x384xi32>
    %c124_i32 = arith.constant 124 : i32
    %35 = vector.broadcast %c124_i32 : i32 to vector<1x384xi32>
    %36 = arith.cmpi slt, %20, %35 : vector<1x384xi32>
    %c1_i32_14 = arith.constant 1 : i32
    %37 = tpu.dynamic_rotate %10 by %c1_i32_14 dim 1 : vector<8x384xf32>, i32 -> vector<8x384xf32>
    %c383_i32 = arith.constant 383 : i32
    %38 = tpu.dynamic_rotate %10 by %c383_i32 dim 1 : vector<8x384xf32>, i32 -> vector<8x384xf32>
    %cst_15 = arith.constant 0.000000e+00 : f32
    %39 = vector.shape_cast %22 : vector<1x384xi1> to vector<1x384xi1>
    %40 = vector.broadcast %39 : vector<1x384xi1> to vector<8x384xi1>
    %41 = vector.broadcast %cst_15 : f32 to vector<8x384xf32>
    %42 = arith.select %40, %37, %41 : vector<8x384xi1>, vector<8x384xf32>
    %cst_16 = arith.constant 0.000000e+00 : f32
    %43 = vector.shape_cast %30 : vector<1x384xi1> to vector<1x384xi1>
    %44 = vector.broadcast %43 : vector<1x384xi1> to vector<8x384xi1>
    %45 = vector.broadcast %cst_16 : f32 to vector<8x384xf32>
    %46 = arith.select %44, %38, %45 : vector<8x384xi1>, vector<8x384xf32>
    %47 = arith.maximumf %42, %46 : vector<8x384xf32>
    %48 = arith.maximumf %10, %47 : vector<8x384xf32>
    %c2_i32_17 = arith.constant 2 : i32
    %49 = tpu.dynamic_rotate %10 by %c2_i32_17 dim 1 : vector<8x384xf32>, i32 -> vector<8x384xf32>
    %c382_i32 = arith.constant 382 : i32
    %50 = tpu.dynamic_rotate %10 by %c382_i32 dim 1 : vector<8x384xf32>, i32 -> vector<8x384xf32>
    %cst_18 = arith.constant 0.000000e+00 : f32
    %51 = vector.shape_cast %24 : vector<1x384xi1> to vector<1x384xi1>
    %52 = vector.broadcast %51 : vector<1x384xi1> to vector<8x384xi1>
    %53 = vector.broadcast %cst_18 : f32 to vector<8x384xf32>
    %54 = arith.select %52, %49, %53 : vector<8x384xi1>, vector<8x384xf32>
    %cst_19 = arith.constant 0.000000e+00 : f32
    %55 = vector.shape_cast %32 : vector<1x384xi1> to vector<1x384xi1>
    %56 = vector.broadcast %55 : vector<1x384xi1> to vector<8x384xi1>
    %57 = vector.broadcast %cst_19 : f32 to vector<8x384xf32>
    %58 = arith.select %56, %50, %57 : vector<8x384xi1>, vector<8x384xf32>
    %59 = arith.maximumf %54, %58 : vector<8x384xf32>
    %60 = arith.maximumf %48, %59 : vector<8x384xf32>
    %c3_i32_20 = arith.constant 3 : i32
    %61 = tpu.dynamic_rotate %10 by %c3_i32_20 dim 1 : vector<8x384xf32>, i32 -> vector<8x384xf32>
    %c381_i32 = arith.constant 381 : i32
    %62 = tpu.dynamic_rotate %10 by %c381_i32 dim 1 : vector<8x384xf32>, i32 -> vector<8x384xf32>
    %cst_21 = arith.constant 0.000000e+00 : f32
    %63 = vector.shape_cast %26 : vector<1x384xi1> to vector<1x384xi1>
    %64 = vector.broadcast %63 : vector<1x384xi1> to vector<8x384xi1>
    %65 = vector.broadcast %cst_21 : f32 to vector<8x384xf32>
    %66 = arith.select %64, %61, %65 : vector<8x384xi1>, vector<8x384xf32>
    %cst_22 = arith.constant 0.000000e+00 : f32
    %67 = vector.shape_cast %34 : vector<1x384xi1> to vector<1x384xi1>
    %68 = vector.broadcast %67 : vector<1x384xi1> to vector<8x384xi1>
    %69 = vector.broadcast %cst_22 : f32 to vector<8x384xf32>
    %70 = arith.select %68, %62, %69 : vector<8x384xi1>, vector<8x384xf32>
    %71 = arith.maximumf %66, %70 : vector<8x384xf32>
    %72 = arith.maximumf %60, %71 : vector<8x384xf32>
    %c4_i32_23 = arith.constant 4 : i32
    %73 = tpu.dynamic_rotate %10 by %c4_i32_23 dim 1 : vector<8x384xf32>, i32 -> vector<8x384xf32>
    %c380_i32 = arith.constant 380 : i32
    %74 = tpu.dynamic_rotate %10 by %c380_i32 dim 1 : vector<8x384xf32>, i32 -> vector<8x384xf32>
    %cst_24 = arith.constant 0.000000e+00 : f32
    %75 = vector.shape_cast %28 : vector<1x384xi1> to vector<1x384xi1>
    %76 = vector.broadcast %75 : vector<1x384xi1> to vector<8x384xi1>
    %77 = vector.broadcast %cst_24 : f32 to vector<8x384xf32>
    %78 = arith.select %76, %73, %77 : vector<8x384xi1>, vector<8x384xf32>
    %cst_25 = arith.constant 0.000000e+00 : f32
    %79 = vector.shape_cast %36 : vector<1x384xi1> to vector<1x384xi1>
    %80 = vector.broadcast %79 : vector<1x384xi1> to vector<8x384xi1>
    %81 = vector.broadcast %cst_25 : f32 to vector<8x384xf32>
    %82 = arith.select %80, %74, %81 : vector<8x384xi1>, vector<8x384xf32>
    %83 = arith.maximumf %78, %82 : vector<8x384xf32>
    %84 = arith.maximumf %72, %83 : vector<8x384xf32>
    %85 = arith.truncf %84 : vector<8x384xf32> to vector<8x384xbf16>
    %c1_i32_26 = arith.constant 1 : i32
    %86 = tpu.dynamic_rotate %17 by %c1_i32_26 dim 1 : vector<8x384xf32>, i32 -> vector<8x384xf32>
    %c383_i32_27 = arith.constant 383 : i32
    %87 = tpu.dynamic_rotate %17 by %c383_i32_27 dim 1 : vector<8x384xf32>, i32 -> vector<8x384xf32>
    %cst_28 = arith.constant 0.000000e+00 : f32
    %88 = vector.shape_cast %22 : vector<1x384xi1> to vector<1x384xi1>
    %89 = vector.broadcast %88 : vector<1x384xi1> to vector<8x384xi1>
    %90 = vector.broadcast %cst_28 : f32 to vector<8x384xf32>
    %91 = arith.select %89, %86, %90 : vector<8x384xi1>, vector<8x384xf32>
    %cst_29 = arith.constant 0.000000e+00 : f32
    %92 = vector.shape_cast %30 : vector<1x384xi1> to vector<1x384xi1>
    %93 = vector.broadcast %92 : vector<1x384xi1> to vector<8x384xi1>
    %94 = vector.broadcast %cst_29 : f32 to vector<8x384xf32>
    %95 = arith.select %93, %87, %94 : vector<8x384xi1>, vector<8x384xf32>
    %96 = arith.maximumf %91, %95 : vector<8x384xf32>
    %97 = arith.maximumf %17, %96 : vector<8x384xf32>
    %c2_i32_30 = arith.constant 2 : i32
    %98 = tpu.dynamic_rotate %17 by %c2_i32_30 dim 1 : vector<8x384xf32>, i32 -> vector<8x384xf32>
    %c382_i32_31 = arith.constant 382 : i32
    %99 = tpu.dynamic_rotate %17 by %c382_i32_31 dim 1 : vector<8x384xf32>, i32 -> vector<8x384xf32>
    %cst_32 = arith.constant 0.000000e+00 : f32
    %100 = vector.shape_cast %24 : vector<1x384xi1> to vector<1x384xi1>
    %101 = vector.broadcast %100 : vector<1x384xi1> to vector<8x384xi1>
    %102 = vector.broadcast %cst_32 : f32 to vector<8x384xf32>
    %103 = arith.select %101, %98, %102 : vector<8x384xi1>, vector<8x384xf32>
    %cst_33 = arith.constant 0.000000e+00 : f32
    %104 = vector.shape_cast %32 : vector<1x384xi1> to vector<1x384xi1>
    %105 = vector.broadcast %104 : vector<1x384xi1> to vector<8x384xi1>
    %106 = vector.broadcast %cst_33 : f32 to vector<8x384xf32>
    %107 = arith.select %105, %99, %106 : vector<8x384xi1>, vector<8x384xf32>
    %108 = arith.maximumf %103, %107 : vector<8x384xf32>
    %109 = arith.maximumf %97, %108 : vector<8x384xf32>
    %c3_i32_34 = arith.constant 3 : i32
    %110 = tpu.dynamic_rotate %17 by %c3_i32_34 dim 1 : vector<8x384xf32>, i32 -> vector<8x384xf32>
    %c381_i32_35 = arith.constant 381 : i32
    %111 = tpu.dynamic_rotate %17 by %c381_i32_35 dim 1 : vector<8x384xf32>, i32 -> vector<8x384xf32>
    %cst_36 = arith.constant 0.000000e+00 : f32
    %112 = vector.shape_cast %26 : vector<1x384xi1> to vector<1x384xi1>
    %113 = vector.broadcast %112 : vector<1x384xi1> to vector<8x384xi1>
    %114 = vector.broadcast %cst_36 : f32 to vector<8x384xf32>
    %115 = arith.select %113, %110, %114 : vector<8x384xi1>, vector<8x384xf32>
    %cst_37 = arith.constant 0.000000e+00 : f32
    %116 = vector.shape_cast %34 : vector<1x384xi1> to vector<1x384xi1>
    %117 = vector.broadcast %116 : vector<1x384xi1> to vector<8x384xi1>
    %118 = vector.broadcast %cst_37 : f32 to vector<8x384xf32>
    %119 = arith.select %117, %111, %118 : vector<8x384xi1>, vector<8x384xf32>
    %120 = arith.maximumf %115, %119 : vector<8x384xf32>
    %121 = arith.maximumf %109, %120 : vector<8x384xf32>
    %c4_i32_38 = arith.constant 4 : i32
    %122 = tpu.dynamic_rotate %17 by %c4_i32_38 dim 1 : vector<8x384xf32>, i32 -> vector<8x384xf32>
    %c380_i32_39 = arith.constant 380 : i32
    %123 = tpu.dynamic_rotate %17 by %c380_i32_39 dim 1 : vector<8x384xf32>, i32 -> vector<8x384xf32>
    %cst_40 = arith.constant 0.000000e+00 : f32
    %124 = vector.shape_cast %28 : vector<1x384xi1> to vector<1x384xi1>
    %125 = vector.broadcast %124 : vector<1x384xi1> to vector<8x384xi1>
    %126 = vector.broadcast %cst_40 : f32 to vector<8x384xf32>
    %127 = arith.select %125, %122, %126 : vector<8x384xi1>, vector<8x384xf32>
    %cst_41 = arith.constant 0.000000e+00 : f32
    %128 = vector.shape_cast %36 : vector<1x384xi1> to vector<1x384xi1>
    %129 = vector.broadcast %128 : vector<1x384xi1> to vector<8x384xi1>
    %130 = vector.broadcast %cst_41 : f32 to vector<8x384xf32>
    %131 = arith.select %129, %123, %130 : vector<8x384xi1>, vector<8x384xf32>
    %132 = arith.maximumf %127, %131 : vector<8x384xf32>
    %133 = arith.maximumf %121, %132 : vector<8x384xf32>
    %134 = arith.truncf %133 : vector<8x384xf32> to vector<8x384xbf16>
    %c0_42 = arith.constant 0 : index
    %c0_43 = arith.constant 0 : index
    %135 = vector.load %arg6[%c0_42, %c0_43] : memref<384x128xbf16, #tpu.memory_space<vmem>>, vector<384x128xbf16>
    %cst_44 = arith.constant dense<0.000000e+00> : vector<8x128xf32>
    %136 = tpu.matmul %85, %135, %cst_44 {dimension_numbers = #tpu.dot_dimension_numbers<[1], [0], [0], [1], [0, 0, 1, 1], [], []>} : vector<8x384xbf16>, vector<384x128xbf16>, vector<8x128xf32> -> vector<8x128xf32>
    %c0_45 = arith.constant 0 : index
    %c0_46 = arith.constant 0 : index
    %137 = vector.load %arg7[%c0_45, %c0_46] : memref<384x128xbf16, #tpu.memory_space<vmem>>, vector<384x128xbf16>
    %cst_47 = arith.constant dense<0.000000e+00> : vector<8x128xf32>
    %138 = tpu.matmul %134, %137, %cst_47 {dimension_numbers = #tpu.dot_dimension_numbers<[1], [0], [0], [1], [0, 0, 1, 1], [], []>} : vector<8x384xbf16>, vector<384x128xbf16>, vector<8x128xf32> -> vector<8x128xf32>
    %139 = arith.addf %136, %138 : vector<8x128xf32>
    %c0_48 = arith.constant 0 : index
    %c0_49 = arith.constant 0 : index
    %140 = vector.load %arg8[%c0_48, %c0_49] : memref<1x128xf32, #tpu.memory_space<vmem>>, vector<1x128xf32>
    %141 = vector.broadcast %140 : vector<1x128xf32> to vector<8x128xf32>
    %142 = arith.addf %139, %141 : vector<8x128xf32>
    %cst_50 = arith.constant 0.000000e+00 : f32
    %143 = vector.broadcast %cst_50 : f32 to vector<8x128xf32>
    %144 = arith.maximumf %142, %143 : vector<8x128xf32>
    %c0_51 = arith.constant 0 : index
    %c0_52 = arith.constant 0 : index
    %145 = vector.load %arg9[%c0_51, %c0_52] : memref<128x16xf32, #tpu.memory_space<vmem>>, vector<128x16xf32>
    %cst_53 = arith.constant dense<0.000000e+00> : vector<8x16xf32>
    %146 = tpu.matmul %144, %145, %cst_53 {dimension_numbers = #tpu.dot_dimension_numbers<[1], [0], [0], [1], [0, 0, 1, 1], [], []>} : vector<8x128xf32>, vector<128x16xf32>, vector<8x16xf32> -> vector<8x16xf32>
    %c0_54 = arith.constant 0 : index
    %c0_55 = arith.constant 0 : index
    %147 = vector.load %arg10[%c0_54, %c0_55] : memref<1x16xf32, #tpu.memory_space<vmem>>, vector<1x16xf32>
    %148 = vector.broadcast %147 : vector<1x16xf32> to vector<8x16xf32>
    %149 = arith.addf %146, %148 : vector<8x16xf32>
    %cst_56 = arith.constant 0.000000e+00 : f32
    %150 = vector.broadcast %cst_56 : f32 to vector<8x16xf32>
    %151 = arith.maximumf %149, %150 : vector<8x16xf32>
    %c0_57 = arith.constant 0 : index
    %c0_58 = arith.constant 0 : index
    %152 = vector.load %arg11[%c0_57, %c0_58] : memref<1x16xf32, #tpu.memory_space<vmem>>, vector<1x16xf32>
    %153 = vector.broadcast %152 : vector<1x16xf32> to vector<8x16xf32>
    %154 = arith.mulf %151, %153 : vector<8x16xf32>
    %cst_59 = arith.constant dense<0.000000e+00> : vector<8xf32>
    %155 = vector.multi_reduction <add>, %154, %cst_59 [1] : vector<8x16xf32> to vector<8xf32>
    %156 = vector.shape_cast %155 : vector<8xf32> to vector<8x1xf32>
    %c0_60 = arith.constant 0 : index
    %c0_61 = arith.constant 0 : index
    %157 = vector.load %arg12[%c0_60, %c0_61] : memref<1x1xf32, #tpu.memory_space<vmem>>, vector<1x1xf32>
    %158 = vector.broadcast %157 : vector<1x1xf32> to vector<8x1xf32>
    %159 = arith.addf %156, %158 : vector<8x1xf32>
    %160 = arith.negf %159 : vector<8x1xf32>
    %161 = math.exp %160 : vector<8x1xf32>
    %cst_62 = arith.constant 1.000000e+00 : f32
    %162 = vector.broadcast %cst_62 : f32 to vector<8x1xf32>
    %163 = arith.addf %162, %161 : vector<8x1xf32>
    %164 = arith.divf %162, %163 : vector<8x1xf32>
    %c0_63 = arith.constant 0 : index
    %c0_64 = arith.constant 0 : index
    %165 = vector.load %arg13[%c0_63, %c0_64] : memref<8x1xf32, #tpu.memory_space<vmem>>, vector<8x1xf32>
    tpu.vector_store %arg13[%c0_63, %c0_64], %164 {strides = array<i32>} : memref<8x1xf32, #tpu.memory_space<vmem>>, vector<8x1xf32>,
    return
  }
  func.func @transform_0(%arg0: i32) -> (i32, i32) {
    %c0_i32 = arith.constant 0 : i32
    %c0_i32_0 = arith.constant 0 : i32
    return %arg0, %c0_i32 : i32, i32
  }
  func.func @transform_1(%arg0: i32) -> (i32, i32) {
    %c0_i32 = arith.constant 0 : i32
    %c0_i32_0 = arith.constant 0 : i32
    %c0_i32_1 = arith.constant 0 : i32
    return %c0_i32, %c0_i32_0 : i32, i32
  }
  func.func @transform_2(%arg0: i32) -> (i32, i32) {
    %c0_i32 = arith.constant 0 : i32
    %c0_i32_0 = arith.constant 0 : i32
    %c0_i32_1 = arith.constant 0 : i32
    return %c0_i32, %c0_i32_0 : i32, i32
  }
  func.func @transform_3(%arg0: i32) -> (i32, i32) {
    %c0_i32 = arith.constant 0 : i32
    %c0_i32_0 = arith.constant 0 : i32
    %c0_i32_1 = arith.constant 0 : i32
    return %c0_i32, %c0_i32_0 : i32, i32
  }
  func.func @transform_4(%arg0: i32) -> (i32, i32) {
    %c0_i32 = arith.constant 0 : i32
    %c0_i32_0 = arith.constant 0 : i32
    %c0_i32_1 = arith.constant 0 : i32
    return %c0_i32, %c0_i32_0 : i32, i32
  }
  func.func @transform_5(%arg0: i32) -> (i32, i32) {
    %c0_i32 = arith.constant 0 : i32
    %c0_i32_0 = arith.constant 0 : i32
    %c0_i32_1 = arith.constant 0 : i32
    return %c0_i32, %c0_i32_0 : i32, i32
  }
  func.func @transform_6(%arg0: i32) -> (i32, i32) {
    %c0_i32 = arith.constant 0 : i32
    %c0_i32_0 = arith.constant 0 : i32
    %c0_i32_1 = arith.constant 0 : i32
    return %c0_i32, %c0_i32_0 : i32, i32
  }
  func.func @transform_7(%arg0: i32) -> (i32, i32) {
    %c0_i32 = arith.constant 0 : i32
    %c0_i32_0 = arith.constant 0 : i32
    %c0_i32_1 = arith.constant 0 : i32
    return %c0_i32, %c0_i32_0 : i32, i32
  }
  func.func @transform_8(%arg0: i32) -> (i32, i32) {
    %c0_i32 = arith.constant 0 : i32
    %c0_i32_0 = arith.constant 0 : i32
    %c0_i32_1 = arith.constant 0 : i32
    return %c0_i32, %c0_i32_0 : i32, i32
  }
  func.func @transform_9(%arg0: i32) -> (i32, i32) {
    %c0_i32 = arith.constant 0 : i32
    %c0_i32_0 = arith.constant 0 : i32
    %c0_i32_1 = arith.constant 0 : i32
    return %c0_i32, %c0_i32_0 : i32, i32
  }
  func.func @transform_10(%arg0: i32) -> (i32, i32) {
    %c0_i32 = arith.constant 0 : i32
    %c0_i32_0 = arith.constant 0 : i32
    %c0_i32_1 = arith.constant 0 : i32
    return %c0_i32, %c0_i32_0 : i32, i32
  }
  func.func @transform_11(%arg0: i32) -> (i32, i32) {
    %c0_i32 = arith.constant 0 : i32
    %c0_i32_0 = arith.constant 0 : i32
    %c0_i32_1 = arith.constant 0 : i32
    return %c0_i32, %c0_i32_0 : i32, i32
  }
  func.func @transform_12(%arg0: i32) -> (i32, i32) {
    %c0_i32 = arith.constant 0 : i32
    %c0_i32_0 = arith.constant 0 : i32
    return %arg0, %c0_i32 : i32, i32
  }
}

</mosaic_0001>

<bundles_post_ra>
// kernel: tpu_custom_call.1
= control target key start
LH: loop header
LB: loop body
LE: loop exit
PB: predicated region body
PF: predicated region fallthrough
CT: control target
= control target key end

     0   :  { %s8854_s0 = inlined_call_operand.hbm [shape: f32[16,2304], index: 0, kind: input, shape index: {}]   ;;  %s8855_s1 = inlined_call_operand.hbm [shape: bf16[1024,384], index: 1, kind: input, shape index: {}]   ;;  %s8856_s2 = inlined_call_operand.vmem [shape: f32[1,384], index: 2, kind: input, shape index: {}]   ;;  %s8857_s3 = inlined_call_operand.hbm [shape: bf16[1280,384], index: 3, kind: input, shape index: {}]   ;;  %s8858_s4 = inlined_call_operand.vmem [shape: f32[1,384], index: 4, kind: input, shape index: {}]   ;;  %s8859_s5 = inlined_call_operand.hbm [shape: bf16[384,128], index: 5, kind: input, shape index: {}]   ;;  %s8860_s6 = inlined_call_operand.hbm [shape: bf16[384,128], index: 6, kind: input, shape index: {}]   ;;  %s8861_s7 = inlined_call_operand.vmem [shape: f32[1,128], index: 7, kind: input, shape index: {}]   ;;  %s8862_s8 = inlined_call_operand.vmem [shape: f32[128,16], index: 8, kind: input, shape index: {}]   ;;  %s8863_s9 = inlined_call_operand.vmem [shape: f32[1,16], index: 9, kind: input, shape index: {}]   ;;  %s8864_s10 = inlined_call_operand.vmem [shape: f32[1,16], index: 10, kind: input, shape index: {}]   ;;  %s8865_s11 = inlined_call_operand.<no memory space> [shape: f32[1,1], index: 11, kind: input, shape index: {}]   ;;  %s8866_s12 = inlined_call_operand.vmem [shape: f32[16,1], index: 12, kind: output, shape index: {}]  }
   0x1   :  { %8878 = sst [smem:[#allocation14_spill]] %s8855_s1  ;;  %v17_v0 = vstv %s8865_s11 }
   0x2   :  { %8879 = sst [smem:[#allocation15_spill]] %s8857_s3  ;;  %18 = vst [vmem:[#allocation2] sm:$0x1] %v17_v0 }
   0x3   :  { %8880 = sst [smem:[#allocation16_spill]] %s8859_s5 }
   0x4   :  { %19 = vsyncpa [#allocation4], 0 }
   0x5   :  { %21 = vsyncpa [#allocation4 + $0x1], 0 }
   0x6   :  { %22 = vsyncpa [#allocation6], 0 }
   0x7   :  { %23 = vsyncpa [#allocation9], 0  ;;  %s8034_s23 = smov 0   ;;  %s8036_s24 = smov 0  }
   0x8   :  { %s8038_s25 = smov 0   ;;  %s8040_s26 = smov 0  }
   0x9 LB: > { %s8881_s1 = sld [smem:[#allocation14_spill]]  ;;  %s8058_s29 = sadd.s32 4294967295, %s7948_s26   ;;  %s7948_s26 = sphi %s8040_s26, %s8919_s26   ;;  %s7944_s25 = sphi %s8038_s25, %s8918_s25   ;;  %s7940_s24 = sphi %s8036_s24, %s8917_s24   ;;  %s7936_s23 = sphi %s8034_s23, %s8916_s23  }
   0xa   : > { %p5121_p0 = scmp.ge.s32.totalorder %s7948_s26, 1  ;;  %p50_p1 = scmp.eq.s32.totalorder %s8058_s29, 0 }
   0xb   : > { %p317_p2 = scmp.lt.s32.totalorder %s7948_s26, 3  ;;  %s7950_s13 = smov [#allocation5]  }
   0xc   : > { %s330_s14 = sshll.u32 %s7950_s13, 4  ;;  %s8883_s5 = sld [smem:[#allocation16_spill]]  ;;  %s331_s14 = int_to_ptr.vmem [resolvable:$true] %s330_s14 }
   0xd   : > { %p8063_p3 = pnand %p5121_p0, %p317_p2  ;;  %s7951_s19 = smov [#allocation8]  }
   0xe   : > { %s364_s20 = sshll.u32 %s7951_s19, 4  ;;  %s7952_s21 = smov 192   ;;  %s365_s20 = int_to_ptr.vmem [resolvable:$true] %s364_s20 }
   0xf   : > { %s328_s28 = sshll.u32 %s8881_s1, 4  ;;  %p7558_p4 = pneg %p8063_p3  ;;  %s329_s28 = int_to_ptr.hbm [resolvable:$true] %s328_s28 }
  0x10   : > { %s7953_s22 = smov 12   ;;  %s7954_s11 = smov 64  }
  0x11   : > { %p8074_p5 = pnand %p7558_p4, %p50_p1  ;;  %s7955_s27 = smov 4  }
  0x12   : > { %s362_s17 = sshll.u32 %s8883_s5, 4  ;;  %s8885_s3 = sld [smem:[#allocation15_spill]]  ;;  %s363_s17 = int_to_ptr.hbm [resolvable:$true] %s362_s17 }
  0x13   : > { %7561 = dma.hbm_to_vmem [thread:$0]  (!%p8074_p5), %s329_s28, 24576, %s331_s14, [#allocation6], %s7952_s21, %s7952_s21, %s7953_s22  }
  0x14   : > { %7567 = dma.hbm_to_vmem [thread:$0]  (!%p8074_p5), %s363_s17, 3072, %s365_s20, [#allocation9], %s7954_s11, %s7954_s11, %s7955_s27  }
  0x15   : > { %s7956_s19 = smov [#allocation7]   ;;  %s376_s5 = sshll.u32 %s8860_s6, 4  ;;  %s377_s5 = int_to_ptr.hbm [resolvable:$true] %s376_s5 }
  0x16   : > { %s347_s28 = sshll.u32 %s7956_s19, 4  ;;  %s7957_s17 = smov [#allocation10]   ;;  %s348_s28 = int_to_ptr.vmem [resolvable:$true] %s347_s28 }
  0x17   : > { %s378_s20 = sshll.u32 %s7957_s17, 4  ;;  %s8093_s13 = sadd.s32 1, %s7948_s26   ;;  %s379_s20 = int_to_ptr.vmem [resolvable:$true] %s378_s20 }
  0x18   : > { %s345_s16 = sshll.u32 %s8885_s3, 4  ;;  %s36_s15 = sadd.s32 1, %s7944_s25  ;;  %s346_s16 = int_to_ptr.hbm [resolvable:$true] %s345_s16 }
  0x19   : > { %7564 = dma.hbm_to_vmem [thread:$0]  (!%p8074_p5), %s346_s16, 30720, %s348_s28, [#allocation6], %s7952_s21, %s7952_s21, %s7953_s22  }
  0x1a   : > { %7570 = dma.hbm_to_vmem [thread:$0]  (!%p8074_p5), %s377_s5, 3072, %s379_s20, [#allocation9], %s7954_s11, %s7954_s11, %s7955_s27  }
  0x1b   : > { %s33_s19 = ssub.s32 %s7948_s26, %s8093_s13  ;;  %p43_p6 = scmp.ne.s32.totalorder %s7944_s25, %s7940_s24 }
  0x1c   : > { %p34_p7 = scmp.eq.s32.totalorder %s33_s19, 0  ;;  %p44_p8 = scmp.eq.s32.totalorder %s7948_s26, 0 }
  0x1d   : > { %p49_p9 = scmp.ne.s32.totalorder %s7940_s24, %s7936_s23  ;;  %p7579_p10 = scmp.lt.s32.totalorder %s7948_s26, 2 }
  0x1e   : > { %s8105_s1 = scalar_select %p34_p7, %s7944_s25, %s36_s15  }
  0x1f   : > { %p45_p11 = por %p44_p8, %p43_p6  ;;  %p8109_p12 = por %p50_p1, %p49_p9 }
  0x20   : > { %s407_s18 = sand.u32 1, %s7944_s25   ;;  %s7538_s5 = smul.u32 144, %s7948_s26 }
  0x21   : > { %s7537_s22 = smul.u32 144, %s407_s18  ;;  %p8118_p13 = pnand %p7579_p10, %p45_p11 }
  0x22   : > { %s416_s16 = scalar_lea.hbm %s8854_s0, %s7538_s5  ;;  %s408_s20 = scalar_lea.sflag [#allocation4], %s407_s18 }
  0x23   : > { %s418_s23 = sshll.u32 %s416_s16, 4  ;;  %s411_s14 = scalar_lea.vmem [#allocation3], %s7537_s22  ;;  %s419_s23 = int_to_ptr.hbm [resolvable:$true] %s418_s23 }
  0x24   : > { %s420_s17 = sshll.u32 %s411_s14, 4  ;;  %s7876_s15 = sshra.s32 %s419_s23, 4  ;;  %s421_s17 = int_to_ptr.vmem [resolvable:$true] %s420_s17  ;;  %s7877_s15 = int_to_ptr.hbm [resolvable:$true] %s7876_s15 }
  0x25   : > { %s7878_s19 = scalar_lea.hbm %s7877_s15, 144  ;;  %p7880_p2 = pneg %p8118_p13 }
  0x26   : > { %p7879_p0 = scmp.ne.s32.totalorder %s7877_s15, %s7878_s19  ;;  %s7883_s11 = scalar_lea.hbm %s8854_s0, 288 }
  0x27   : > { %p7884_p6 = scmp.lt.s32.totalorder %s7877_s15, %s8854_s0  ;;  %p7885_p7 = scmp.lt.s32.totalorder %s7883_s11, %s7878_s19 }
  0x28   : > { %p7881_p4 = pnand %p7880_p2, %p7879_p0 }
  0x29   : > { %p7886_p8 = por %p7885_p7, %p7884_p6 }
  0x2a   : > { %p7882_p5 = pneg %p7881_p4 }
  0x2c   : > { %p7887_p9 = pnand %p7886_p8, %p7882_p5 }
  0x2e   : > { %7890 = shalt.err (!%p7887_p9)
}
  0x2f   : > { %7574 = dma.hbm_to_vmem [thread:$0]  (!%p8118_p13), %s419_s23, 2304, %s421_s17, %s408_s20  }
  0x30   : > { %429 = sbr.rel (%p8063_p3) target bundleno = 1223 (0x4c7), region = 68  ;;  %s431_s18 = sand.u32 (!%p8063_p3), 1, %s7940_s24  }
  0x31   : > { %s7539_s22 = smul.u32 (!%p8063_p3), 144, %s431_s18  ;;  %s432_s16 = scalar_lea.sflag (!%p8063_p3), [#allocation4], %s431_s18 }
  0x33   : > { %s8135_s14 = scalar_lea.vmem (!%p8063_p3), [#allocation3], %s7539_s22 }
  0x35   : > { %7923 = dma.done.wait (%p8109_p12), %s432_s16, 2304  }
  0x36   : > { %7925 = vsyncadd (%p8109_p12), %s432_s16, 4294964992 }
  0x37   : > { %7927 = dma.done.wait (%p50_p1), [#allocation6], 55296  }
  0x38   : > { %7929 = vsyncadd (%p50_p1), [#allocation6], 4294912000 }
  0x39   : > { %7931 = dma.done.wait (%p50_p1), [#allocation9], 6144  }
  0x3a   : > { %7933 = vsyncadd (%p50_p1), [#allocation9], 4294961152  ;;  %v5220_v1 = vld [vmem:[#allocation5 + $0xa8] sm:$0xf]  ;;  %v7079_v2 = vld [vmem:[#allocation5 + $0xb0] sm:$0xf0] }
  0x3b   : > { %v5316_v3 = vld [vmem:[#allocation5 + $0x168] sm:$0xf]  ;;  %v5221_v4 = vor.u32 %v7079_v2, %v5220_v1  ;;  %v7103_v5 = vld [vmem:[#allocation5 + $0x170] sm:$0xf0]  ;;  %v5208_v12 = vld [vmem:[#allocation5 + $0x90] sm:$0xf] }
  0x3c   : > { %v5412_v6 = vld [vmem:[#allocation5 + $0x228] sm:$0xf]  ;;  %v7127_v7 = vld [vmem:[#allocation5 + $0x230] sm:$0xf0]  ;;  %v5317_v8 = vor.u32 %v7103_v5, %v5316_v3  ;;  %v7076_v14 = vld [vmem:[#allocation5 + $0x98] sm:$0xf0] }
  0x3d   : > { %v5413_v9 = vor.u32 %v7127_v7, %v5412_v6  ;;  %v5508_v10 = vld [vmem:[#allocation5 + $0x2e8] sm:$0xf]  ;;  %v7151_v11 = vld [vmem:[#allocation5 + $0x2f0] sm:$0xf0]  ;;  %1824 = vmatpush.bf16.msra.mxu0 %v5221_v4  ;;  %v5304_v15 = vld [vmem:[#allocation5 + $0x150] sm:$0xf]  ;;  %v5209_v17 = vor.u32 %v7076_v14, %v5208_v12 }
  0x3e   : > { %v5509_v13 = vor.u32 %v7151_v11, %v5508_v10  ;;  %v7100_v16 = vld [vmem:[#allocation5 + $0x158] sm:$0xf0]  ;;  %1837 = vmatpush.bf16.msra.mxu1 %v5317_v8  ;;  %v5400_v19 = vld [vmem:[#allocation5 + $0x210] sm:$0xf]  ;;  %v5196_v24 = vld [vmem:[#allocation5 + $0x78] sm:$0xf] }
  0x3f   : > { %1850 = vmatpush.bf16.msra.mxu2 %v5413_v9  ;;  %v5305_v18 = vor.u32 %v7100_v16, %v5304_v15  ;;  %v7124_v20 = vld [vmem:[#allocation5 + $0x218] sm:$0xf0]  ;;  %v5496_v21 = vld [vmem:[#allocation5 + $0x2d0] sm:$0xf]  ;;  %v7073_v25 = vld [vmem:[#allocation5 + $0x80] sm:$0xf0] }
  0x40   : > { %1863 = vmatpush.bf16.msra.mxu3 %v5509_v13  ;;  %v5401_v22 = vor.u32 %v7124_v20, %v5400_v19  ;;  %v7148_v23 = vld [vmem:[#allocation5 + $0x2d8] sm:$0xf0]  ;;  %v5292_v27 = vld [vmem:[#allocation5 + $0x138] sm:$0xf]  ;;  %v7097_v28 = vld [vmem:[#allocation5 + $0x140] sm:$0xf0]  ;;  %v5197_v30 = vor.u32 %v7073_v25, %v5196_v24 }
  0x41   : > { %v5497_v26 = vor.u32 %v7148_v23, %v5496_v21  ;;  %v5388_v29 = vld [vmem:[#allocation5 + $0x1f8] sm:$0xf]  ;;  %1825 = vmatpush.bf16.msra.mxu0 %v5209_v17  ;;  %v7121_v31 = vld [vmem:[#allocation5 + $0x200] sm:$0xf0]  ;;  %v5293_v34 = vor.u32 %v7097_v28, %v5292_v27  ;;  %v5184_v36 = vld [vmem:[#allocation5 + $0x60] sm:$0xf] }
  0x42   : > { %v5484_v32 = vld [vmem:[#allocation5 + $0x2b8] sm:$0xf]  ;;  %v7145_v33 = vld [vmem:[#allocation5 + $0x2c0] sm:$0xf0]  ;;  %1838 = vmatpush.bf16.msra.mxu1 %v5305_v18  ;;  %v5389_v35 = vor.u32 %v7121_v31, %v5388_v29  ;;  %v7070_v37 = vld [vmem:[#allocation5 + $0x68] sm:$0xf0] }
  0x43   : > { %1851 = vmatpush.bf16.msra.mxu2 %v5401_v22  ;;  %v5280_v38 = vld [vmem:[#allocation5 + $0x120] sm:$0xf]  ;;  %v5485_v39 = vor.u32 %v7145_v33, %v5484_v32  ;;  %v7094_v40 = vld [vmem:[#allocation5 + $0x128] sm:$0xf0]  ;;  %v5185_v45 = vor.u32 %v7070_v37, %v5184_v36  ;;  %v5172_v48 = vld [vmem:[#allocation5 + $0x48] sm:$0xf] }
  0x44   : > { %1864 = vmatpush.bf16.msra.mxu3 %v5497_v26  ;;  %v5376_v41 = vld [vmem:[#allocation5 + $0x1e0] sm:$0xf]  ;;  %v7118_v42 = vld [vmem:[#allocation5 + $0x1e8] sm:$0xf0]  ;;  %v5281_v46 = vor.u32 %v7094_v40, %v5280_v38  ;;  %v7067_v49 = vld [vmem:[#allocation5 + $0x50] sm:$0xf0] }
  0x45   : > { %v5472_v43 = vld [vmem:[#allocation5 + $0x2a0] sm:$0xf]  ;;  %v7142_v44 = vld [vmem:[#allocation5 + $0x2a8] sm:$0xf0]  ;;  %1826 = vmatpush.bf16.msra.mxu0 %v5197_v30  ;;  %v5377_v47 = vor.u32 %v7118_v42, %v5376_v41  ;;  %v5268_v50 = vld [vmem:[#allocation5 + $0x108] sm:$0xf]  ;;  %v5173_v57 = vor.u32 %v7067_v49, %v5172_v48 }
  0x46   : > { %1839 = vmatpush.bf16.msra.mxu1 %v5293_v34  ;;  %v5473_v51 = vor.u32 %v7142_v44, %v5472_v43  ;;  %v7091_v52 = vld [vmem:[#allocation5 + $0x110] sm:$0xf0]  ;;  %v5364_v53 = vld [vmem:[#allocation5 + $0x1c8] sm:$0xf]  ;;  %v5160_v60 = vld [vmem:[#allocation5 + $0x30] sm:$0xf] }
  0x47   : > { %1852 = vmatpush.bf16.msra.mxu2 %v5389_v35  ;;  %v7115_v54 = vld [vmem:[#allocation5 + $0x1d0] sm:$0xf0]  ;;  %v5460_v55 = vld [vmem:[#allocation5 + $0x288] sm:$0xf]  ;;  %v5269_v58 = vor.u32 %v7091_v52, %v5268_v50  ;;  %v7064_v61 = vld [vmem:[#allocation5 + $0x38] sm:$0xf0] }
  0x48   : > { %1865 = vmatpush.bf16.msra.mxu3 %v5485_v39  ;;  %v7139_v56 = vld [vmem:[#allocation5 + $0x290] sm:$0xf0]  ;;  %v5365_v59 = vor.u32 %v7115_v54, %v5364_v53  ;;  %v5256_v62 = vld [vmem:[#allocation5 + $0xf0] sm:$0xf]  ;;  %v7088_v0 = vld [vmem:[#allocation5 + $0xf8] sm:$0xf0]  ;;  %v5161_v5 = vor.u32 %v7064_v61, %v5160_v60 }
  0x49   : > { %1827 = vmatpush.bf16.msra.mxu0 %v5185_v45  ;;  %v5461_v63 = vor.u32 %v7139_v56, %v5460_v55  ;;  %v5352_v1 = vld [vmem:[#allocation5 + $0x1b0] sm:$0xf]  ;;  %v7112_v2 = vld [vmem:[#allocation5 + $0x1b8] sm:$0xf0]  ;;  %v5257_v6 = vor.u32 %v7088_v0, %v5256_v62  ;;  %v5148_v8 = vld [vmem:[#allocation5 + $0x18] sm:$0xf] }
  0x4a   : > { %1840 = vmatpush.bf16.msra.mxu1 %v5281_v46  ;;  %v5448_v3 = vld [vmem:[#allocation5 + $0x270] sm:$0xf]  ;;  %v7136_v4 = vld [vmem:[#allocation5 + $0x278] sm:$0xf0]  ;;  %v5353_v7 = vor.u32 %v7112_v2, %v5352_v1  ;;  %v7061_v9 = vld [vmem:[#allocation5 + $0x20] sm:$0xf0] }
  0x4b   : > { %1853 = vmatpush.bf16.msra.mxu2 %v5377_v47  ;;  %v5244_v10 = vld [vmem:[#allocation5 + $0xd8] sm:$0xf]  ;;  %v5449_v11 = vor.u32 %v7136_v4, %v5448_v3  ;;  %v7085_v12 = vld [vmem:[#allocation5 + $0xe0] sm:$0xf0]  ;;  %v5149_v17 = vor.u32 %v7061_v9, %v5148_v8  ;;  %v5136_v18 = vld [vmem:[#allocation5] sm:$0xf] }
  0x4c   : > { %1866 = vmatpush.bf16.msra.mxu3 %v5473_v51  ;;  %v5340_v13 = vld [vmem:[#allocation5 + $0x198] sm:$0xf]  ;;  %v7109_v14 = vld [vmem:[#allocation5 + $0x1a0] sm:$0xf0]  ;;  %v7058_v19 = vld [vmem:[#allocation5 + $0x8] sm:$0xf0]  ;;  %v5245_v20 = vor.u32 %v7085_v12, %v5244_v10 }
  0x4d   : > { %1828 = vmatpush.bf16.msra.mxu0 %v5173_v57  ;;  %v5436_v15 = vld [vmem:[#allocation5 + $0x258] sm:$0xf]  ;;  %v7133_v16 = vld [vmem:[#allocation5 + $0x260] sm:$0xf0]  ;;  %v5341_v21 = vor.u32 %v7109_v14, %v5340_v13  ;;  %v5232_v22 = vld [vmem:[#allocation5 + $0xc0] sm:$0xf]  ;;  %v5137_v32 = vor.u32 %v7058_v19, %v5136_v18 }
  0x4e   : > { %1841 = vmatpush.bf16.msra.mxu1 %v5269_v58  ;;  %v7082_v23 = vld [vmem:[#allocation5 + $0xc8] sm:$0xf0]  ;;  %v5328_v24 = vld [vmem:[#allocation5 + $0x180] sm:$0xf]  ;;  %v5437_v25 = vor.u32 %v7133_v16, %v5436_v15  ;;  %v5604_v27 = vld [vmem:[#allocation5 + $0x3a8] sm:$0xf] }
  0x4f   : > { %1854 = vmatpush.bf16.msra.mxu2 %v5365_v59  ;;  %v7106_v26 = vld [vmem:[#allocation5 + $0x188] sm:$0xf0]  ;;  %v7175_v28 = vld [vmem:[#allocation5 + $0x3b0] sm:$0xf0]  ;;  %v5700_v29 = vld [vmem:[#allocation5 + $0x468] sm:$0xf]  ;;  %v5233_v36 = vor.u32 %v7082_v23, %v5232_v22 }
  0x50   : > { %1867 = vmatpush.bf16.msra.mxu3 %v5461_v63  ;;  %v7199_v30 = vld [vmem:[#allocation5 + $0x470] sm:$0xf0]  ;;  %v5796_v31 = vld [vmem:[#allocation5 + $0x528] sm:$0xf]  ;;  %v5424_v34 = vld [vmem:[#allocation5 + $0x240] sm:$0xf]  ;;  %v5329_v37 = vor.u32 %v7106_v26, %v5328_v24  ;;  %v5605_v40 = vor.u32 %v7175_v28, %v5604_v27 }
  0x51   : > { %1829 = vmatpush.bf16.msra.mxu0 %v5161_v5  ;;  %v7223_v33 = vld [vmem:[#allocation5 + $0x530] sm:$0xf0]  ;;  %v7130_v35 = vld [vmem:[#allocation5 + $0x248] sm:$0xf0]  ;;  %v5892_v38 = vld [vmem:[#allocation5 + $0x5e8] sm:$0xf]  ;;  %v5701_v41 = vor.u32 %v7199_v30, %v5700_v29 }
  0x52   : > { %1842 = vmatpush.bf16.msra.mxu1 %v5257_v6  ;;  %v7247_v39 = vld [vmem:[#allocation5 + $0x5f0] sm:$0xf0]  ;;  %v5592_v42 = vld [vmem:[#allocation5 + $0x390] sm:$0xf]  ;;  %v5797_v43 = vor.u32 %v7223_v33, %v5796_v31  ;;  %v5425_v44 = vor.u32 %v7130_v35, %v5424_v34  ;;  %v7172_v45 = vld [vmem:[#allocation5 + $0x398] sm:$0xf0] }
  0x53   : > { %1855 = vmatpush.bf16.msra.mxu2 %v5353_v7  ;;  %v5688_v46 = vld [vmem:[#allocation5 + $0x450] sm:$0xf]  ;;  %v7196_v47 = vld [vmem:[#allocation5 + $0x458] sm:$0xf0]  ;;  %v5893_v48 = vor.u32 %v7247_v39, %v5892_v38  ;;  %v5593_v53 = vor.u32 %v7172_v45, %v5592_v42  ;;  %v5580_v55 = vld [vmem:[#allocation5 + $0x378] sm:$0xf] }
  0x54   : > { %1868 = vmatpush.bf16.msra.mxu3 %v5449_v11  ;;  %v5784_v49 = vld [vmem:[#allocation5 + $0x510] sm:$0xf]  ;;  %v7220_v50 = vld [vmem:[#allocation5 + $0x518] sm:$0xf0]  ;;  %v5689_v54 = vor.u32 %v7196_v47, %v5688_v46  ;;  %v7169_v56 = vld [vmem:[#allocation5 + $0x380] sm:$0xf0] }
  0x55   : > { %1830 = vmatpush.bf16.msra.mxu0 %v5149_v17  ;;  %v5880_v51 = vld [vmem:[#allocation5 + $0x5d0] sm:$0xf]  ;;  %v7244_v52 = vld [vmem:[#allocation5 + $0x5d8] sm:$0xf0]  ;;  %v5785_v57 = vor.u32 %v7220_v50, %v5784_v49  ;;  %v5676_v58 = vld [vmem:[#allocation5 + $0x438] sm:$0xf]  ;;  %v5581_v4 = vor.u32 %v7169_v56, %v5580_v55 }
  0x56   : > { %1843 = vmatpush.bf16.msra.mxu1 %v5245_v20  ;;  %v7193_v59 = vld [vmem:[#allocation5 + $0x440] sm:$0xf0]  ;;  %v5881_v61 = vor.u32 %v7244_v52, %v5880_v51  ;;  %v5772_v62 = vld [vmem:[#allocation5 + $0x4f8] sm:$0xf]  ;;  %v5568_v3 = vld [vmem:[#allocation5 + $0x360] sm:$0xf] }
  0x57   : > { %1856 = vmatpush.bf16.msra.mxu2 %v5341_v21  ;;  %v502_v60 = vld [vmem:[%s8135_s14 + $0x10] sm:$0xff]  ;;  %v5868_v1 = vld [vmem:[#allocation5 + $0x5b8] sm:$0xf]  ;;  %v5677_v5 = vor.u32 %v7193_v59, %v5676_v58  ;;  %v7166_v6 = vld [vmem:[#allocation5 + $0x368] sm:$0xf0]  ;;  %s7958_s20 = smov 126  }
  0x58   : > { %1869 = vmatpush.bf16.msra.mxu3 %v5437_v25  ;;  %v7217_v63 = vld [vmem:[#allocation5 + $0x500] sm:$0xf0]  ;;  %v8150_v0 = vpack.c.bf16 %v502_v60, %v502_v60  ;;  %v503_v8 = vld [vmem:[%s8135_s14 + $0x18] sm:$0xff]  ;;  %v5664_v10 = vld [vmem:[#allocation5 + $0x420] sm:$0xf]  ;;  %v5569_v21 = vor.u32 %v7166_v6, %v5568_v3  ;;  %s7959_s15 = smov 127  }
  0x59   : > { %1831 = vmatpush.bf16.msra.mxu0 %v5137_v32  ;;  %v7241_v2 = vld [vmem:[#allocation5 + $0x5c0] sm:$0xf0]  ;;  %v5773_v9 = vor.u32 %v7217_v63, %v5772_v62  ;;  %v7190_v11 = vld [vmem:[#allocation5 + $0x428] sm:$0xf0]  ;;  %v8156_v13 = vpack.c.bf16 %v503_v8, %v503_v8  ;;  %v5760_v16 = vld [vmem:[#allocation5 + $0x4e0] sm:$0xf] }
  0x5a   : > { %1844 = vmatpush.bf16.msra.mxu1 %v5233_v36  ;;  %v500_v7 = vld [vmem:[%s8135_s14] sm:$0xff]  ;;  %v501_v14 = vld [vmem:[%s8135_s14 + $0x8] sm:$0xff]  ;;  %v5869_v15 = vor.u32 %v7241_v2, %v5868_v1  ;;  %v5665_v22 = vor.u32 %v7190_v11, %v5664_v10  ;;  %s7960_s19 = smov 1   ;;  %s7961_s26 = smov 4  }
  0x5b   : > { %1857 = vmatpush.bf16.msra.mxu2 %v5329_v37  ;;  %v8154_v12 = vpack.c.bf16 %v500_v7, %v500_v7  ;;  %v7214_v17 = vld [vmem:[#allocation5 + $0x4e8] sm:$0xf0]  ;;  %v8160_v18 = vpack.c.bf16 %v501_v14, %v501_v14  ;;  %v5856_v19 = vld [vmem:[#allocation5 + $0x5a0] sm:$0xf]  ;;  %v5556_v23 = vld [vmem:[#allocation5 + $0x348] sm:$0xf] }
  0x5c   : > { %1870 = vmatpush.bf16.msra.mxu3 %v5425_v44  ;;  %v7238_v20 = vld [vmem:[#allocation5 + $0x5a8] sm:$0xf0]  ;;  %v5761_v24 = vor.u32 %v7214_v17, %v5760_v16  ;;  %v7163_v25 = vld [vmem:[#allocation5 + $0x350] sm:$0xf0]  ;;  %v5652_v26 = vld [vmem:[#allocation5 + $0x408] sm:$0xf] }
  0x5d   : > { %1876 = vmatpush.bf16.msrb.mxu0 %v5605_v40  ;;  %v7187_v27 = vld [vmem:[#allocation5 + $0x410] sm:$0xf0]  ;;  %1845 = vmatmul.bf16.vlgmr.msra.gmra.mxu1 %v8160_v18  ;;  %v5857_v28 = vor.u32 %v7238_v20, %v5856_v19  ;;  %v5748_v29 = vld [vmem:[#allocation5 + $0x4c8] sm:$0xf]  ;;  %v5557_v33 = vor.u32 %v7163_v25, %v5556_v23  ;;  %v5544_v35 = vld [vmem:[#allocation5 + $0x330] sm:$0xf] }
  0x5e   : > { %1889 = vmatpush.bf16.msrb.mxu1 %v5701_v41  ;;  %1858 = vmatmul.bf16.vlgmr.msra.gmra.mxu2 %v8150_v0  ;;  %v7211_v30 = vld [vmem:[#allocation5 + $0x4d0] sm:$0xf0]  ;;  %v5844_v31 = vld [vmem:[#allocation5 + $0x588] sm:$0xf]  ;;  %v5653_v34 = vor.u32 %v7187_v27, %v5652_v26  ;;  %v7160_v37 = vld [vmem:[#allocation5 + $0x338] sm:$0xf0] }
  0x5f   : > { %1902 = vmatpush.bf16.msrb.mxu2 %v5797_v43  ;;  %1832 = vmatmul.bf16.vlgmr.msra.gmra.mxu0 %v8154_v12  ;;  %v7235_v32 = vld [vmem:[#allocation5 + $0x590] sm:$0xf0]  ;;  %v5749_v36 = vor.u32 %v7211_v30, %v5748_v29  ;;  %v5640_v38 = vld [vmem:[#allocation5 + $0x3f0] sm:$0xf]  ;;  %v7184_v39 = vld [vmem:[#allocation5 + $0x3f8] sm:$0xf0]  ;;  %v5545_v45 = vor.u32 %v7160_v37, %v5544_v35 }
  0x60   : > { %1915 = vmatpush.bf16.msrb.mxu3 %v5893_v48  ;;  %v5845_v40 = vor.u32 %v7235_v32, %v5844_v31  ;;  %v5736_v41 = vld [vmem:[#allocation5 + $0x4b0] sm:$0xf]  ;;  %v7208_v42 = vld [vmem:[#allocation5 + $0x4b8] sm:$0xf0]  ;;  %v5641_v46 = vor.u32 %v7184_v39, %v5640_v38  ;;  %v5532_v47 = vld [vmem:[#allocation5 + $0x318] sm:$0xf] }
  0x61   : > { %1877 = vmatpush.bf16.msrb.mxu0 %v5593_v53  ;;  %1871 = vmatmul.bf16.vlgmr.msra.gmra.mxu3 %v8156_v13  ;;  %v5832_v43 = vld [vmem:[#allocation5 + $0x570] sm:$0xf]  ;;  %v7232_v44 = vld [vmem:[#allocation5 + $0x578] sm:$0xf0]  ;;  %v5737_v48 = vor.u32 %v7208_v42, %v5736_v41  ;;  %v7157_v49 = vld [vmem:[#allocation5 + $0x320] sm:$0xf0] }
  0x62   : > { %1890 = vmatpush.bf16.msrb.mxu1 %v5689_v54  ;;  %v5628_v50 = vld [vmem:[#allocation5 + $0x3d8] sm:$0xf]  ;;  %v7181_v51 = vld [vmem:[#allocation5 + $0x3e0] sm:$0xf0]  ;;  %v5833_v52 = vor.u32 %v7232_v44, %v5832_v43  ;;  %v5533_v58 = vor.u32 %v7157_v49, %v5532_v47  ;;  %v7154_v60 = vld [vmem:[#allocation5 + $0x308] sm:$0xf0] }
  0x63   : > { %1903 = vmatpush.bf16.msrb.mxu2 %v5785_v57  ;;  %v5724_v53 = vld [vmem:[#allocation5 + $0x498] sm:$0xf]  ;;  %v7205_v54 = vld [vmem:[#allocation5 + $0x4a0] sm:$0xf0]  ;;  %v5520_v57 = vld [vmem:[#allocation5 + $0x300] sm:$0xf]  ;;  %v5629_v59 = vor.u32 %v7181_v51, %v5628_v50 }
  0x64   : > { %1916 = vmatpush.bf16.msrb.mxu3 %v5881_v61  ;;  %v5820_v55 = vld [vmem:[#allocation5 + $0x558] sm:$0xf]  ;;  %v7229_v56 = vld [vmem:[#allocation5 + $0x560] sm:$0xf0]  ;;  %v5616_v61 = vld [vmem:[#allocation5 + $0x3c0] sm:$0xf]  ;;  %v5725_v63 = vor.u32 %v7205_v54, %v5724_v53  ;;  %v5521_v11 = vor.u32 %v7154_v60, %v5520_v57 }
  0x65   : > { %1878 = vmatpush.bf16.msrb.mxu0 %v5581_v4  ;;  %v7178_v62 = vld [vmem:[#allocation5 + $0x3c8] sm:$0xf0]  ;;  %v5712_v1 = vld [vmem:[#allocation5 + $0x480] sm:$0xf]  ;;  %v5821_v4 = vor.u32 %v7229_v56, %v5820_v55  ;;  %v5318_v7 = vld [vmem:[#allocation5 + $0x174] sm:$0xf0] }
  0x66   : > { %1891 = vmatpush.bf16.msrb.mxu1 %v5677_v5  ;;  %v7202_v2 = vld [vmem:[#allocation5 + $0x488] sm:$0xf0]  ;;  %v5222_v5 = vld [vmem:[#allocation5 + $0xb4] sm:$0xf0]  ;;  %v5808_v10 = vld [vmem:[#allocation5 + $0x540] sm:$0xf]  ;;  %v5617_v14 = vor.u32 %v7178_v62, %v5616_v61 }
  0x67   : > { %1904 = vmatpush.bf16.msrb.mxu2 %v5773_v9  ;;  %v7078_v3 = vld [vmem:[#allocation5 + $0xac] sm:$0xf]  ;;  %v5414_v9 = vld [vmem:[#allocation5 + $0x234] sm:$0xf0]  ;;  %v504_v17 = vld [vmem:[%s8135_s14 + $0x20] sm:$0xff]  ;;  %v5713_v19 = vor.u32 %v7202_v2, %v5712_v1  ;;  %s7962_s5 = smov 2  }
  0x68   : > { %1917 = vmatpush.bf16.msrb.mxu3 %v5869_v15  ;;  %v7102_v6 = vld [vmem:[#allocation5 + $0x16c] sm:$0xf]  ;;  %v5225_v20 = vor.u32 %v7078_v3, %v5222_v5  ;;  %v506_v23 = vld [vmem:[%s8135_s14 + $0x30] sm:$0xff]  ;;  %v7072_v43 = vld [vmem:[#allocation5 + $0x7c] sm:$0xf]  ;;  %s7963_s11 = smov 3  }
  0x69   : > { %1879 = vmatpush.bf16.msrb.mxu0 %v5569_v21  ;;  %v7126_v8 = vld [vmem:[#allocation5 + $0x22c] sm:$0xf]  ;;  %v5510_v21 = vld [vmem:[#allocation5 + $0x2f4] sm:$0xf0]  ;;  %v5210_v26 = vld [vmem:[#allocation5 + $0x9c] sm:$0xf0]  ;;  %v8170_v35 = vpack.c.bf16 %v506_v23, %v506_v23 }
  0x6a   : > { %1892 = vmatpush.bf16.msrb.mxu1 %v5665_v22  ;;  %v7226_v15 = vld [vmem:[#allocation5 + $0x548] sm:$0xf0]  ;;  %v7075_v22 = vld [vmem:[#allocation5 + $0x94] sm:$0xf]  ;;  %v5417_v25 = vor.u32 %v7126_v8, %v5414_v9  ;;  %v5306_v30 = vld [vmem:[#allocation5 + $0x15c] sm:$0xf0] }
  0x6b   : > { %1905 = vmatpush.bf16.msrb.mxu2 %v5761_v24  ;;  %v7150_v16 = vld [vmem:[#allocation5 + $0x2ec] sm:$0xf]  ;;  %v5321_v24 = vor.u32 %v7102_v6, %v5318_v7  ;;  %v7099_v27 = vld [vmem:[#allocation5 + $0x154] sm:$0xf]  ;;  %v5809_v29 = vor.u32 %v7226_v15, %v5808_v10  ;;  %v5402_v32 = vld [vmem:[#allocation5 + $0x21c] sm:$0xf0]  ;;  %v5213_v37 = vor.u32 %v7075_v22, %v5210_v26 }
  0x6c   : > { %1918 = vmatpush.bf16.msrb.mxu3 %v5857_v28  ;;  %v505_v28 = vld [vmem:[%s8135_s14 + $0x28] sm:$0xff]  ;;  %v7123_v31 = vld [vmem:[#allocation5 + $0x214] sm:$0xf]  ;;  %v5498_v39 = vld [vmem:[#allocation5 + $0x2dc] sm:$0xf0]  ;;  %v5309_v41 = vor.u32 %v7099_v27, %v5306_v30  ;;  %s7964_s27 = smov 125  }
  0x6d   : > { %1880 = vmatpush.bf16.msrb.mxu0 %v5557_v33  ;;  %v8168_v33 = vpack.c.bf16 %v504_v17, %v504_v17  ;;  %v7147_v38 = vld [vmem:[#allocation5 + $0x2d4] sm:$0xf]  ;;  %v5405_v42 = vor.u32 %v7123_v31, %v5402_v32  ;;  %v5198_v44 = vld [vmem:[#allocation5 + $0x84] sm:$0xf0]  ;;  %v7069_v56 = vld [vmem:[#allocation5 + $0x64] sm:$0xf] }
  0x6e   : > { %1893 = vmatpush.bf16.msrb.mxu1 %v5653_v34  ;;  %v5513_v34 = vor.u32 %v7150_v16, %v5510_v21  ;;  %v5294_v47 = vld [vmem:[#allocation5 + $0x144] sm:$0xf0]  ;;  %v5501_v50 = vor.u32 %v7147_v38, %v5498_v39  ;;  %v5201_v51 = vor.u32 %v7072_v43, %v5198_v44  ;;  %v5186_v57 = vld [vmem:[#allocation5 + $0x6c] sm:$0xf0]  ;;  %v7117_v60 = vld [vmem:[#allocation5 + $0x1e4] sm:$0xf] }
  0x6f   : > { %1906 = vmatpush.bf16.msrb.mxu2 %v5749_v36  ;;  %v507_v36 = vld [vmem:[%s8135_s14 + $0x38] sm:$0xff]  ;;  %v5378_v61 = vld [vmem:[#allocation5 + $0x1ec] sm:$0xf0]  ;;  %v7141_v1 = vld [vmem:[#allocation5 + $0x2a4] sm:$0xf]  ;;  %s7965_s18 = smov 124  }
  0x70   : > { %1919 = vmatpush.bf16.msrb.mxu3 %v5845_v40  ;;  %v8173_v40 = vpack.c.bf16 %v505_v28, %v505_v28  ;;  %v5390_v49 = vld [vmem:[#allocation5 + $0x204] sm:$0xf0]  ;;  %v5474_v2 = vld [vmem:[#allocation5 + $0x2ac] sm:$0xf0]  ;;  %v7066_v5 = vld [vmem:[#allocation5 + $0x4c] sm:$0xf] }
  0x71   : > { %1881 = vmatpush.bf16.msrb.mxu0 %v5545_v45  ;;  %v7096_v45 = vld [vmem:[#allocation5 + $0x13c] sm:$0xf]  ;;  %v5486_v53 = vld [vmem:[#allocation5 + $0x2c4] sm:$0xf0]  ;;  %v5174_v6 = vld [vmem:[#allocation5 + $0x54] sm:$0xf0] }
  0x72   : > { %1894 = vmatpush.bf16.msrb.mxu1 %v5641_v46  ;;  %v8176_v46 = vpack.c.bf16 %v507_v36, %v507_v36  ;;  %v5297_v54 = vor.u32 %v7096_v45, %v5294_v47  ;;  %v7090_v7 = vld [vmem:[#allocation5 + $0x10c] sm:$0xf]  ;;  %v5270_v8 = vld [vmem:[#allocation5 + $0x114] sm:$0xf0]  ;;  %v5162_v21 = vld [vmem:[#allocation5 + $0x3c] sm:$0xf0] }
  0x73   : > { %1907 = vmatpush.bf16.msrb.mxu2 %v5737_v48  ;;  %v7120_v48 = vld [vmem:[#allocation5 + $0x1fc] sm:$0xf]  ;;  %v7114_v9 = vld [vmem:[#allocation5 + $0x1cc] sm:$0xf]  ;;  %v5366_v10 = vld [vmem:[#allocation5 + $0x1d4] sm:$0xf0]  ;;  %v5273_v17 = vor.u32 %v7090_v7, %v5270_v8 }
  0x74   : > { %1920 = vmatpush.bf16.msrb.mxu3 %v5833_v52  ;;  %v7144_v52 = vld [vmem:[#allocation5 + $0x2bc] sm:$0xf]  ;;  %v5393_v55 = vor.u32 %v7120_v48, %v5390_v49  ;;  %v7138_v15 = vld [vmem:[#allocation5 + $0x28c] sm:$0xf]  ;;  %v5462_v16 = vld [vmem:[#allocation5 + $0x294] sm:$0xf0] }
  0x75   : > { %1882 = vmatpush.bf16.msrb.mxu0 %v5533_v58  ;;  %v7093_v58 = vld [vmem:[#allocation5 + $0x124] sm:$0xf]  ;;  %v5489_v62 = vor.u32 %v7144_v52, %v5486_v53  ;;  %v7087_v22 = vld [vmem:[#allocation5 + $0xf4] sm:$0xf]  ;;  %v5258_v23 = vld [vmem:[#allocation5 + $0xfc] sm:$0xf0]  ;;  %v5465_v26 = vor.u32 %v7138_v15, %v5462_v16 }
  0x76   : > { %1895 = vmatpush.bf16.msrb.mxu1 %v5629_v59  ;;  %v5282_v59 = vld [vmem:[#allocation5 + $0x12c] sm:$0xf0]  ;;  %v7135_v28 = vld [vmem:[#allocation5 + $0x274] sm:$0xf]  ;;  %v5261_v30 = vor.u32 %v7087_v22, %v5258_v23  ;;  %v7060_v32 = vld [vmem:[#allocation5 + $0x1c] sm:$0xf] }
  0x77   : > { %1908 = vmatpush.bf16.msrb.mxu2 %v5725_v63  ;;  %v5189_v63 = vor.u32 %v7069_v56, %v5186_v57  ;;  %v5285_v3 = vor.u32 %v7093_v58, %v5282_v59  ;;  %v7084_v36 = vld [vmem:[#allocation5 + $0xdc] sm:$0xf]  ;;  %v5342_v39 = vld [vmem:[#allocation5 + $0x1a4] sm:$0xf0]  ;;  %v7057_v44 = vld [vmem:[#allocation5 + $0x4] sm:$0xf] }
  0x78   : > { %1921 = vmatpush.bf16.msrb.mxu3 %v5821_v4  ;;  %v5381_v4 = vor.u32 %v7117_v60, %v5378_v61  ;;  %v7108_v38 = vld [vmem:[#allocation5 + $0x19c] sm:$0xf]  ;;  %v5438_v43 = vld [vmem:[#allocation5 + $0x264] sm:$0xf0]  ;;  %v5138_v47 = vld [vmem:[#allocation5 + $0xc] sm:$0xf0] }
  0x79   : > { %1883 = vmatpush.bf16.msrb.mxu0 %v5521_v11  ;;  %v5477_v11 = vor.u32 %v7141_v1, %v5474_v2  ;;  %v7081_v48 = vld [vmem:[#allocation5 + $0xc4] sm:$0xf]  ;;  %v5234_v49 = vld [vmem:[#allocation5 + $0xcc] sm:$0xf0]  ;;  %v7198_v56 = vld [vmem:[#allocation5 + $0x46c] sm:$0xf]  ;;  %v5141_v60 = vor.u32 %v7057_v44, %v5138_v47 }
  0x7a   : > { %1896 = vmatpush.bf16.msrb.mxu1 %v5617_v14  ;;  %v5177_v14 = vor.u32 %v7066_v5, %v5174_v6  ;;  %v7105_v52 = vld [vmem:[#allocation5 + $0x184] sm:$0xf]  ;;  %v5330_v53 = vld [vmem:[#allocation5 + $0x18c] sm:$0xf0]  ;;  %v5702_v57 = vld [vmem:[#allocation5 + $0x474] sm:$0xf0]  ;;  %v5237_v1 = vor.u32 %v7081_v48, %v5234_v49 }
  0x7b   : > { %1909 = vmatpush.bf16.msrb.mxu2 %v5713_v19  ;;  %v5369_v19 = vor.u32 %v7114_v9, %v5366_v10  ;;  %v7222_v59 = vld [vmem:[#allocation5 + $0x52c] sm:$0xf]  ;;  %v5798_v61 = vld [vmem:[#allocation5 + $0x534] sm:$0xf0]  ;;  %v5333_v2 = vor.u32 %v7105_v52, %v5330_v53  ;;  %v5705_v6 = vor.u32 %v7198_v56, %v5702_v57  ;;  %v7171_v7 = vld [vmem:[#allocation5 + $0x394] sm:$0xf] }
  0x7c   : > { %1922 = vmatpush.bf16.msrb.mxu3 %v5809_v29  ;;  %1884 = vmatmul.bf16.vlgmr.msrb.gmra.mxu0 %v8168_v33  ;;  %v5450_v29 = vld [vmem:[#allocation5 + $0x27c] sm:$0xf0]  ;;  %v5801_v8 = vor.u32 %v7222_v59, %v5798_v61  ;;  %v7219_v16 = vld [vmem:[#allocation5 + $0x514] sm:$0xf]  ;;  %v7168_v23 = vld [vmem:[#allocation5 + $0x37c] sm:$0xf] }
  0x7d   : > { %1928 = vmatpush.bf16.msra.mxu0 %v5225_v20  ;;  %1897 = vmatmul.bf16.vlgmr.msrb.gmra.mxu1 %v8173_v40  ;;  %v7063_v20 = vld [vmem:[#allocation5 + $0x34] sm:$0xf]  ;;  %v5594_v10 = vld [vmem:[#allocation5 + $0x39c] sm:$0xf0]  ;;  %v7213_v44 = vld [vmem:[#allocation5 + $0x4e4] sm:$0xf] }
  0x7e   : > { %1941 = vmatpush.bf16.msra.mxu1 %v5321_v24  ;;  %1910 = vmatmul.bf16.vlgmr.msrb.gmra.mxu2 %v8170_v35  ;;  %v7111_v24 = vld [vmem:[#allocation5 + $0x1b4] sm:$0xf]  ;;  %v5165_v27 = vor.u32 %v7063_v20, %v5162_v21  ;;  %v5882_v20 = vld [vmem:[#allocation5 + $0x5dc] sm:$0xf0]  ;;  %v5597_v21 = vor.u32 %v7171_v7, %v5594_v10  ;;  %v7237_v47 = vld [vmem:[#allocation5 + $0x5a4] sm:$0xf] }
  0x7f   : > { %1954 = vmatpush.bf16.msra.mxu2 %v5417_v25  ;;  %1923 = vmatmul.bf16.vlgmr.msrb.gmra.mxu3 %v8176_v46  ;;  %v5354_v25 = vld [vmem:[#allocation5 + $0x1bc] sm:$0xf0]  ;;  %v5858_v48 = vld [vmem:[#allocation5 + $0x5ac] sm:$0xf0]  ;;  %v5558_v53 = vld [vmem:[#allocation5 + $0x354] sm:$0xf0] }
  0x80   : > { %1967 = vmatpush.bf16.msra.mxu3 %v5513_v34  ;;  %v5357_v31 = vor.u32 %v7111_v24, %v5354_v25  ;;  %v5150_v34 = vld [vmem:[#allocation5 + $0x24] sm:$0xf0]  ;;  %v5861_v56 = vor.u32 %v7237_v47, %v5858_v48  ;;  %v7210_v57 = vld [vmem:[#allocation5 + $0x4cc] sm:$0xf]  ;;  %v5738_v7 = vld [vmem:[#allocation5 + $0x4bc] sm:$0xf0] }
  0x81   : > { %1929 = vmatpush.bf16.msra.mxu0 %v5213_v37  ;;  %v5246_v37 = vld [vmem:[#allocation5 + $0xe4] sm:$0xf0]  ;;  %v5153_v45 = vor.u32 %v7060_v32, %v5150_v34  ;;  %v7234_v59 = vld [vmem:[#allocation5 + $0x58c] sm:$0xf]  ;;  %v7225_v47 = vld [vmem:[#allocation5 + $0x544] sm:$0xf] }
  0x82   : > { %1942 = vmatpush.bf16.msra.mxu1 %v5309_v41  ;;  %v5453_v41 = vor.u32 %v7135_v28, %v5450_v29  ;;  %v5582_v24 = vld [vmem:[#allocation5 + $0x384] sm:$0xf0]  ;;  %v7216_v28 = vld [vmem:[#allocation5 + $0x4fc] sm:$0xf]  ;;  %v5810_v48 = vld [vmem:[#allocation5 + $0x54c] sm:$0xf0] }
  0x83   : > { %1955 = vmatpush.bf16.msra.mxu2 %v5405_v42  ;;  %v7132_v42 = vld [vmem:[#allocation5 + $0x25c] sm:$0xf]  ;;  %v5870_v32 = vld [vmem:[#allocation5 + $0x5c4] sm:$0xf0]  ;;  %v5585_v34 = vor.u32 %v7168_v23, %v5582_v24  ;;  %p496_p1 = scmp.lt.s32.totalorder %s8058_s29, 1 }
  0x84   : > { %1968 = vmatpush.bf16.msra.mxu3 %v5501_v50  ;;  %v5249_v50 = vor.u32 %v7084_v36, %v5246_v37  ;;  %v5441_v58 = vor.u32 %v7132_v42, %v5438_v43  ;;  %v7165_v37 = vld [vmem:[#allocation5 + $0x364] sm:$0xf]  ;;  %v5666_v42 = vld [vmem:[#allocation5 + $0x42c] sm:$0xf0]  ;;  %v7228_v23 = vld [vmem:[#allocation5 + $0x55c] sm:$0xf] }
  0x85   : > { %1930 = vmatpush.bf16.msra.mxu0 %v5201_v51  ;;  %v5345_v51 = vor.u32 %v7108_v38, %v5342_v39  ;;  %v5570_v39 = vld [vmem:[#allocation5 + $0x36c] sm:$0xf0]  ;;  %v5822_v24 = vld [vmem:[#allocation5 + $0x564] sm:$0xf0]  ;;  %s8921_s29 = smov (!%p496_p1, %s8058_s29), 1 }
  0x86   : > { %1943 = vmatpush.bf16.msra.mxu1 %v5297_v54  ;;  %v7174_v54 = vld [vmem:[#allocation5 + $0x3ac] sm:$0xf]  ;;  %v5573_v49 = vor.u32 %v7165_v37, %v5570_v39  ;;  %v5228_v37 = vld [vmem:[#allocation5 + $0xb0] sm:$0xf]  ;;  %s5133_s30 = sshll.u32 %s8921_s29, 3 }
  0x87   : > { %1956 = vmatpush.bf16.msra.mxu2 %v5393_v55  ;;  %v5606_v55 = vld [vmem:[#allocation5 + $0x3b4] sm:$0xf0]  ;;  %v5324_v39 = vld [vmem:[#allocation5 + $0x170] sm:$0xf]  ;;  %s499_s23 = scalar_lea.vmem %s8866_s12, %s5133_s30 }
  0x88   : > { %1969 = vmatpush.bf16.msra.mxu3 %v5489_v62  ;;  %v7129_v62 = vld [vmem:[#allocation5 + $0x244] sm:$0xf]  ;;  %v5609_v5 = vor.u32 %v7174_v54, %v5606_v55  ;;  %v7186_v54 = vld [vmem:[#allocation5 + $0x40c] sm:$0xf]  ;;  %v5654_v55 = vld [vmem:[#allocation5 + $0x414] sm:$0xf0] }
  0x89   : > { %1931 = vmatpush.bf16.msra.mxu0 %v5189_v63  ;;  %v5426_v63 = vld [vmem:[#allocation5 + $0x24c] sm:$0xf0] }
  0x8a   : > { %1944 = vmatpush.bf16.msra.mxu1 %v5285_v3  ;;  %v7246_v3 = vld [vmem:[#allocation5 + $0x5ec] sm:$0xf]  ;;  %v5429_v9 = vor.u32 %v7129_v62, %v5426_v63  ;;  %v5657_v62 = vor.u32 %v7186_v54, %v5654_v55  ;;  %v7159_v63 = vld [vmem:[#allocation5 + $0x334] sm:$0xf]  ;;  %v5216_v55 = vld [vmem:[#allocation5 + $0x98] sm:$0xf] }
  0x8b   : > { %1957 = vmatpush.bf16.msra.mxu2 %v5381_v4  ;;  %v5894_v4 = vld [vmem:[#allocation5 + $0x5f4] sm:$0xf0] }
  0x8c   : > { %1970 = vmatpush.bf16.msra.mxu3 %v5477_v11  ;;  %v7195_v11 = vld [vmem:[#allocation5 + $0x454] sm:$0xf]  ;;  %v5897_v15 = vor.u32 %v7246_v3, %v5894_v4  ;;  %v5642_v4 = vld [vmem:[#allocation5 + $0x3fc] sm:$0xf0] }
  0x8d   : > { %1932 = vmatpush.bf16.msra.mxu0 %v5177_v14  ;;  %v5690_v14 = vld [vmem:[#allocation5 + $0x45c] sm:$0xf0]  ;;  %v7183_v3 = vld [vmem:[#allocation5 + $0x3f4] sm:$0xf] }
  0x8e   : > { %1945 = vmatpush.bf16.msra.mxu1 %v5273_v17  ;;  %v5786_v17 = vld [vmem:[#allocation5 + $0x51c] sm:$0xf0]  ;;  %v5693_v22 = vor.u32 %v7195_v11, %v5690_v14  ;;  %v5645_v11 = vor.u32 %v7183_v3, %v5642_v4  ;;  %v7156_v14 = vld [vmem:[#allocation5 + $0x31c] sm:$0xf] }
  0x8f   : > { %1958 = vmatpush.bf16.msra.mxu2 %v5369_v19  ;;  %v7243_v19 = vld [vmem:[#allocation5 + $0x5d4] sm:$0xf]  ;;  %v5789_v25 = vor.u32 %v7219_v16, %v5786_v17  ;;  %v5534_v16 = vld [vmem:[#allocation5 + $0x324] sm:$0xf0]  ;;  %v7180_v17 = vld [vmem:[#allocation5 + $0x3dc] sm:$0xf] }
  0x90   : > { %1971 = vmatpush.bf16.msra.mxu3 %v5465_v26  ;;  %v7192_v26 = vld [vmem:[#allocation5 + $0x43c] sm:$0xf]  ;;  %v5885_v29 = vor.u32 %v7243_v19, %v5882_v20  ;;  %v5630_v19 = vld [vmem:[#allocation5 + $0x3e4] sm:$0xf0] }
  0x91   : > { %1933 = vmatpush.bf16.msra.mxu0 %v5165_v27  ;;  %v5678_v27 = vld [vmem:[#allocation5 + $0x444] sm:$0xf0] }
  0x92   : > { %1946 = vmatpush.bf16.msra.mxu1 %v5261_v30  ;;  %v5774_v30 = vld [vmem:[#allocation5 + $0x504] sm:$0xf0]  ;;  %v5681_v36 = vor.u32 %v7192_v26, %v5678_v27  ;;  %v5633_v26 = vor.u32 %v7180_v17, %v5630_v19  ;;  %v7153_v27 = vld [vmem:[#allocation5 + $0x304] sm:$0xf] }
  0x93   : > { %1959 = vmatpush.bf16.msra.mxu2 %v5357_v31  ;;  %v7240_v31 = vld [vmem:[#allocation5 + $0x5bc] sm:$0xf]  ;;  %v5777_v38 = vor.u32 %v7216_v28, %v5774_v30  ;;  %v5522_v28 = vld [vmem:[#allocation5 + $0x30c] sm:$0xf0] }
  0x94   : > { %1972 = vmatpush.bf16.msra.mxu3 %v5453_v41  ;;  %v7189_v41 = vld [vmem:[#allocation5 + $0x424] sm:$0xf]  ;;  %v5873_v43 = vor.u32 %v7240_v31, %v5870_v32  ;;  %v5618_v31 = vld [vmem:[#allocation5 + $0x3cc] sm:$0xf0] }
  0x95   : > { %1934 = vmatpush.bf16.msra.mxu0 %v5153_v45  ;;  %v5762_v45 = vld [vmem:[#allocation5 + $0x4ec] sm:$0xf0]  ;;  %v7201_v32 = vld [vmem:[#allocation5 + $0x484] sm:$0xf] }
  0x96   : > { %1947 = vmatpush.bf16.msra.mxu1 %v5249_v50  ;;  %v5669_v50 = vor.u32 %v7189_v41, %v5666_v42  ;;  %v5765_v52 = vor.u32 %v7213_v44, %v5762_v45  ;;  %v7104_v41 = vld [vmem:[#allocation5 + $0x178] sm:$0xf0]  ;;  %v5420_v42 = vld [vmem:[#allocation5 + $0x230] sm:$0xf]  ;;  %v5525_v44 = vor.u32 %v7153_v27, %v5522_v28  ;;  %v5480_v28 = vld [vmem:[#allocation5 + $0x2a8] sm:$0xf] }
  0x97   : > { %1960 = vmatpush.bf16.msra.mxu2 %v5345_v51  ;;  %v7162_v51 = vld [vmem:[#allocation5 + $0x34c] sm:$0xf] }
  0x98   : > { %1973 = vmatpush.bf16.msra.mxu3 %v5441_v58  ;;  %v5750_v58 = vld [vmem:[#allocation5 + $0x4d4] sm:$0xf0]  ;;  %v5561_v61 = vor.u32 %v7162_v51, %v5558_v53  ;;  %v5516_v51 = vld [vmem:[#allocation5 + $0x2f0] sm:$0xf]  ;;  %v5325_v53 = vor.u32 %v7104_v41, %v5324_v39  ;;  %v7116_v39 = vld [vmem:[#allocation5 + $0x1d8] sm:$0xf0] }
  0x99   : > { %1935 = vmatpush.bf16.msra.mxu0 %v5141_v60  ;;  %v5846_v60 = vld [vmem:[#allocation5 + $0x594] sm:$0xf0] }
  0x9a   : > { %1948 = vmatpush.bf16.msra.mxu1 %v5237_v1  ;;  %v5753_v1 = vor.u32 %v7210_v57, %v5750_v58  ;;  %v5312_v57 = vld [vmem:[#allocation5 + $0x158] sm:$0xf]  ;;  %v5813_v58 = vor.u32 %v7225_v47, %v5810_v48 }
  0x9b   : > { %1961 = vmatpush.bf16.msra.mxu2 %v5333_v2  ;;  %v5546_v2 = vld [vmem:[#allocation5 + $0x33c] sm:$0xf0]  ;;  %v5168_v48 = vld [vmem:[#allocation5 + $0x38] sm:$0xf] }
  0x9c   : > { %1974 = vmatpush.bf16.msra.mxu3 %v5429_v9  ;;  %1936 = vmatmul.bf16.vlgmr.msra.gmra.mxu0 %v8154_v12  ;;  %v5834_v9 = vld [vmem:[#allocation5 + $0x57c] sm:$0xf0]  ;;  %v5549_v10 = vor.u32 %v7159_v63, %v5546_v2  ;;  %v7149_v2 = vld [vmem:[#allocation5 + $0x2e0] sm:$0xf0] }
  0x9d   : > { %1980 = vmatpush.bf16.msrb.mxu0 %v5609_v5  ;;  %1949 = vmatmul.bf16.vlgmr.msra.gmra.mxu1 %v8160_v18  ;;  %v5849_v5 = vor.u32 %v7234_v59, %v5846_v60  ;;  %v7101_v59 = vld [vmem:[#allocation5 + $0x160] sm:$0xf0]  ;;  %v5408_v60 = vld [vmem:[#allocation5 + $0x218] sm:$0xf] }
  0x9e   : > { %1993 = vmatpush.bf16.msrb.mxu1 %v5705_v6  ;;  %1962 = vmatmul.bf16.vlgmr.msra.gmra.mxu2 %v8150_v0  ;;  %v7207_v6 = vld [vmem:[#allocation5 + $0x4b4] sm:$0xf]  ;;  %v5313_v3 = vor.u32 %v7101_v59, %v5312_v57  ;;  %v7137_v57 = vld [vmem:[#allocation5 + $0x280] sm:$0xf0] }
  0x9f   : > { %2006 = vmatpush.bf16.msrb.mxu2 %v5801_v8  ;;  %1975 = vmatmul.bf16.vlgmr.msra.gmra.mxu3 %v8156_v13  ;;  %v7231_v8 = vld [vmem:[#allocation5 + $0x574] sm:$0xf] }
  0xa0   : > { %2019 = vmatpush.bf16.msrb.mxu3 %v5897_v15  ;;  %v5741_v15 = vor.u32 %v7207_v6, %v5738_v7  ;;  %v5837_v20 = vor.u32 %v7231_v8, %v5834_v9  ;;  %v7074_v6 = vld [vmem:[#allocation5 + $0x88] sm:$0xf0]  ;;  %v5300_v7 = vld [vmem:[#allocation5 + $0x140] sm:$0xf] }
  0xa1   : > { %1981 = vmatpush.bf16.msrb.mxu0 %v5597_v21  ;;  %v7204_v21 = vld [vmem:[#allocation5 + $0x49c] sm:$0xf]  ;;  %v7098_v8 = vld [vmem:[#allocation5 + $0x148] sm:$0xf0]  ;;  %v5396_v9 = vld [vmem:[#allocation5 + $0x200] sm:$0xf] }
  0xa2   : > { %1994 = vmatpush.bf16.msrb.mxu1 %v5693_v22  ;;  %v5726_v22 = vld [vmem:[#allocation5 + $0x4a4] sm:$0xf0]  ;;  %v5301_v17 = vor.u32 %v7098_v8, %v5300_v7  ;;  %v7059_v8 = vld [vmem:[#allocation5 + $0x10] sm:$0xf0] }
  0xa3   : > { %2007 = vmatpush.bf16.msrb.mxu2 %v5789_v25  ;;  %v5537_v25 = vor.u32 %v7156_v14, %v5534_v16  ;;  %v5729_v30 = vor.u32 %v7204_v21, %v5726_v22  ;;  %v7146_v16 = vld [vmem:[#allocation5 + $0x2c8] sm:$0xf0]  ;;  %v7071_v21 = vld [vmem:[#allocation5 + $0x70] sm:$0xf0]  ;;  %v5288_v22 = vld [vmem:[#allocation5 + $0x128] sm:$0xf] }
  0xa4   : > { %2020 = vmatpush.bf16.msrb.mxu3 %v5885_v29  ;;  %v7177_v29 = vld [vmem:[#allocation5 + $0x3c4] sm:$0xf]  ;;  %v5144_v7 = vld [vmem:[#allocation5 + $0x8] sm:$0xf] }
  0xa5   : > { %1982 = vmatpush.bf16.msrb.mxu0 %v5585_v34  ;;  %v5714_v34 = vld [vmem:[#allocation5 + $0x48c] sm:$0xf0]  ;;  %v5621_v45 = vor.u32 %v7177_v29, %v5618_v31  ;;  %v7143_v29 = vld [vmem:[#allocation5 + $0x2b0] sm:$0xf0] }
  0xa6   : > { %1995 = vmatpush.bf16.msrb.mxu1 %v5681_v36  ;;  %v5825_v36 = vor.u32 %v7228_v23, %v5822_v24  ;;  %v7095_v23 = vld [vmem:[#allocation5 + $0x130] sm:$0xf0]  ;;  %v5384_v24 = vld [vmem:[#allocation5 + $0x1e8] sm:$0xf]  ;;  %v5481_v41 = vor.u32 %v7143_v29, %v5480_v28 }
  0xa7   : > { %2008 = vmatpush.bf16.msrb.mxu2 %v5777_v38  ;;  %v7080_v38 = vld [vmem:[#allocation5 + $0xb8] sm:$0xf0] }
  0xa8   : > { %2021 = vmatpush.bf16.msrb.mxu3 %v5873_v43  ;;  %v7128_v43 = vld [vmem:[#allocation5 + $0x238] sm:$0xf0] }
  0xa9   : > { %1983 = vmatpush.bf16.msrb.mxu0 %v5573_v49  ;;  %v5717_v49 = vor.u32 %v7201_v32, %v5714_v34  ;;  %v5421_v54 = vor.u32 %v7128_v43, %v5420_v42  ;;  %v5180_v32 = vld [vmem:[#allocation5 + $0x50] sm:$0xf]  ;;  %v7068_v34 = vld [vmem:[#allocation5 + $0x58] sm:$0xf0] }
  0xaa   : > { %1996 = vmatpush.bf16.msrb.mxu1 %v5669_v50  ;;  %v5229_v50 = vor.u32 %v7080_v38, %v5228_v37  ;;  %v7092_v37 = vld [vmem:[#allocation5 + $0x118] sm:$0xf0]  ;;  %v5372_v38 = vld [vmem:[#allocation5 + $0x1d0] sm:$0xf]  ;;  %v5181_v42 = vor.u32 %v7068_v34, %v5180_v32 }
  0xab   : > { %2009 = vmatpush.bf16.msrb.mxu2 %v5765_v52  ;;  %v7152_v52 = vld [vmem:[#allocation5 + $0x2f8] sm:$0xf0]  ;;  %v5468_v43 = vld [vmem:[#allocation5 + $0x290] sm:$0xf]  ;;  %v5373_v47 = vor.u32 %v7116_v39, %v5372_v38  ;;  %v7173_v39 = vld [vmem:[#allocation5 + $0x3a0] sm:$0xf0] }
  0xac   : > { %2022 = vmatpush.bf16.msrb.mxu3 %v5861_v56  ;;  %v7077_v56 = vld [vmem:[#allocation5 + $0xa0] sm:$0xf0] }
  0xad   : > { %1984 = vmatpush.bf16.msrb.mxu0 %v5561_v61  ;;  %v7125_v61 = vld [vmem:[#allocation5 + $0x220] sm:$0xf0]  ;;  %v5217_v63 = vor.u32 %v7077_v56, %v5216_v55  ;;  %v5456_v56 = vld [vmem:[#allocation5 + $0x278] sm:$0xf] }
  0xae   : > { %1997 = vmatpush.bf16.msrb.mxu1 %v5657_v62  ;;  %v5517_v62 = vor.u32 %v7152_v52, %v5516_v51  ;;  %v5409_v4 = vor.u32 %v7125_v61, %v5408_v60  ;;  %v7089_v51 = vld [vmem:[#allocation5 + $0x100] sm:$0xf0]  ;;  %v5360_v52 = vld [vmem:[#allocation5 + $0x1b8] sm:$0xf]  ;;  %v5156_v60 = vld [vmem:[#allocation5 + $0x20] sm:$0xf] }
  0xaf   : > { %2010 = vmatpush.bf16.msrb.mxu2 %v5753_v1  ;;  %v5504_v1 = vld [vmem:[#allocation5 + $0x2d8] sm:$0xf]  ;;  %v7062_v61 = vld [vmem:[#allocation5 + $0x28] sm:$0xf0] }
  0xb0   : > { %2023 = vmatpush.bf16.msrb.mxu3 %v5849_v5  ;;  %v5204_v5 = vld [vmem:[#allocation5 + $0x80] sm:$0xf] }
  0xb1   : > { %1985 = vmatpush.bf16.msrb.mxu0 %v5549_v10  ;;  %v7122_v10 = vld [vmem:[#allocation5 + $0x208] sm:$0xf0]  ;;  %v5205_v14 = vor.u32 %v7074_v6, %v5204_v5  ;;  %v5157_v5 = vor.u32 %v7062_v61, %v5156_v60 }
  0xb2   : > { %1998 = vmatpush.bf16.msrb.mxu1 %v5645_v11  ;;  %v5505_v11 = vor.u32 %v7149_v2, %v5504_v1  ;;  %v5397_v19 = vor.u32 %v7122_v10, %v5396_v9  ;;  %v5348_v1 = vld [vmem:[#allocation5 + $0x1a0] sm:$0xf]  ;;  %v7110_v2 = vld [vmem:[#allocation5 + $0x1a8] sm:$0xf0] }
  0xb3   : > { %2011 = vmatpush.bf16.msrb.mxu2 %v5741_v15  ;;  %v5492_v15 = vld [vmem:[#allocation5 + $0x2c0] sm:$0xf]  ;;  %v7134_v6 = vld [vmem:[#allocation5 + $0x268] sm:$0xf0]  ;;  %v5349_v10 = vor.u32 %v7110_v2, %v5348_v1  ;;  %v7167_v2 = vld [vmem:[#allocation5 + $0x370] sm:$0xf0] }
  0xb4   : > { %2024 = vmatpush.bf16.msrb.mxu3 %v5837_v20  ;;  %v5192_v20 = vld [vmem:[#allocation5 + $0x68] sm:$0xf]  ;;  %v7242_v60 = vld [vmem:[#allocation5 + $0x5c8] sm:$0xf0] }
  0xb5   : > { %1986 = vmatpush.bf16.msrb.mxu0 %v5537_v25  ;;  %v7119_v25 = vld [vmem:[#allocation5 + $0x1f0] sm:$0xf0]  ;;  %v5193_v27 = vor.u32 %v7071_v21, %v5192_v20  ;;  %v5708_v21 = vld [vmem:[#allocation5 + $0x470] sm:$0xf] }
  0xb6   : > { %1999 = vmatpush.bf16.msrb.mxu1 %v5633_v26  ;;  %v5493_v26 = vor.u32 %v7146_v16, %v5492_v15  ;;  %v5385_v31 = vor.u32 %v7119_v25, %v5384_v24  ;;  %v5336_v15 = vld [vmem:[#allocation5 + $0x188] sm:$0xf]  ;;  %v7107_v16 = vld [vmem:[#allocation5 + $0x190] sm:$0xf0]  ;;  %v5145_v24 = vor.u32 %v7059_v8, %v5144_v7  ;;  %v7224_v25 = vld [vmem:[#allocation5 + $0x538] sm:$0xf0] }
  0xb7   : > { %2012 = vmatpush.bf16.msrb.mxu2 %v5729_v30  ;;  %v5289_v30 = vor.u32 %v7095_v23, %v5288_v22  ;;  %v7200_v22 = vld [vmem:[#allocation5 + $0x478] sm:$0xf0]  ;;  %v5804_v23 = vld [vmem:[#allocation5 + $0x530] sm:$0xf]  ;;  %v5337_v29 = vor.u32 %v7107_v16, %v5336_v15  ;;  %v5864_v7 = vld [vmem:[#allocation5 + $0x5a8] sm:$0xf] }
  0xb8   : > { %2025 = vmatpush.bf16.msrb.mxu3 %v5825_v36  ;;  %v5276_v36 = vld [vmem:[#allocation5 + $0x110] sm:$0xf]  ;;  %v5709_v34 = vor.u32 %v7200_v22, %v5708_v21  ;;  %v7188_v15 = vld [vmem:[#allocation5 + $0x418] sm:$0xf0] }
  0xb9   : > { %1987 = vmatpush.bf16.msrb.mxu0 %v5525_v44  ;;  %v7140_v44 = vld [vmem:[#allocation5 + $0x298] sm:$0xf0] }
  0xba   : > { %2000 = vmatpush.bf16.msrb.mxu1 %v5621_v45  ;;  %v5277_v45 = vor.u32 %v7092_v37, %v5276_v36  ;;  %v5600_v36 = vld [vmem:[#allocation5 + $0x398] sm:$0xf]  ;;  %v5805_v37 = vor.u32 %v7224_v25, %v5804_v23  ;;  %v7236_v21 = vld [vmem:[#allocation5 + $0x598] sm:$0xf0] }
  0xbb   : > { %2013 = vmatpush.bf16.msrb.mxu2 %v5717_v49  ;;  %v7065_v49 = vld [vmem:[#allocation5 + $0x40] sm:$0xf0]  ;;  %v5552_v25 = vld [vmem:[#allocation5 + $0x338] sm:$0xf] }
  0xbc   : > { %2026 = vmatpush.bf16.msrb.mxu3 %v5813_v58  ;;  %1988 = vmatmul.bf16.vlgmr.msrb.gmra.mxu0 %v8168_v33  ;;  %v5169_v55 = vor.u32 %v7065_v49, %v5168_v48  ;;  %v7245_v48 = vld [vmem:[#allocation5 + $0x5e0] sm:$0xf0]  ;;  %v5601_v49 = vor.u32 %v7173_v39, %v5600_v36  ;;  %v5840_v36 = vld [vmem:[#allocation5 + $0x578] sm:$0xf] }
  0xbd   : > { %2032 = vmatpush.bf16.msra.mxu0 %v5229_v50  ;;  %2001 = vmatmul.bf16.vlgmr.msrb.gmra.mxu1 %v8173_v40  ;;  %v5264_v50 = vld [vmem:[#allocation5 + $0xf8] sm:$0xf] }
  0xbe   : > { %2045 = vmatpush.bf16.msra.mxu1 %v5325_v53  ;;  %2014 = vmatmul.bf16.vlgmr.msrb.gmra.mxu2 %v8170_v35  ;;  %v7113_v53 = vld [vmem:[#allocation5 + $0x1c0] sm:$0xf0]  ;;  %v5265_v58 = vor.u32 %v7089_v51, %v5264_v50  ;;  %v5588_v51 = vld [vmem:[#allocation5 + $0x380] sm:$0xf] }
  0xbf   : > { %2058 = vmatpush.bf16.msra.mxu2 %v5421_v54  ;;  %2027 = vmatmul.bf16.vlgmr.msrb.gmra.mxu3 %v8176_v46  ;;  %v5469_v54 = vor.u32 %v7140_v44, %v5468_v43  ;;  %v5361_v59 = vor.u32 %v7113_v53, %v5360_v52  ;;  %v5792_v44 = vld [vmem:[#allocation5 + $0x518] sm:$0xf]  ;;  %v7170_v53 = vld [vmem:[#allocation5 + $0x388] sm:$0xf0] }
  0xc0   : > { %2071 = vmatpush.bf16.msra.mxu3 %v5517_v62  ;;  %v5252_v62 = vld [vmem:[#allocation5 + $0xe0] sm:$0xf]  ;;  %v5589_v61 = vor.u32 %v7170_v53, %v5588_v51 }
  0xc1   : > { %2033 = vmatpush.bf16.msra.mxu0 %v5217_v63  ;;  %v7086_v63 = vld [vmem:[#allocation5 + $0xe8] sm:$0xf0]  ;;  %v5732_v51 = vld [vmem:[#allocation5 + $0x4a0] sm:$0xf] }
  0xc2   : > { %2046 = vmatpush.bf16.msra.mxu1 %v5313_v3  ;;  %v5457_v3 = vor.u32 %v7137_v57, %v5456_v56  ;;  %v5253_v9 = vor.u32 %v7086_v63, %v5252_v62  ;;  %v5780_v57 = vld [vmem:[#allocation5 + $0x500] sm:$0xf]  ;;  %v5576_v63 = vld [vmem:[#allocation5 + $0x368] sm:$0xf] }
  0xc3   : > { %2059 = vmatpush.bf16.msra.mxu2 %v5409_v4  ;;  %v5444_v4 = vld [vmem:[#allocation5 + $0x260] sm:$0xf] }
  0xc4   : > { %2072 = vmatpush.bf16.msra.mxu3 %v5505_v11  ;;  %v5240_v11 = vld [vmem:[#allocation5 + $0xc8] sm:$0xf]  ;;  %v5445_v20 = vor.u32 %v7134_v6, %v5444_v4  ;;  %v7191_v4 = vld [vmem:[#allocation5 + $0x430] sm:$0xf0]  ;;  %v5828_v53 = vld [vmem:[#allocation5 + $0x560] sm:$0xf] }
  0xc5   : > { %2034 = vmatpush.bf16.msra.mxu0 %v5205_v14  ;;  %v7083_v14 = vld [vmem:[#allocation5 + $0xd0] sm:$0xf0] }
  0xc6   : > { %2047 = vmatpush.bf16.msra.mxu1 %v5301_v17  ;;  %v5612_v17 = vld [vmem:[#allocation5 + $0x3b0] sm:$0xf]  ;;  %v5241_v28 = vor.u32 %v7083_v14, %v5240_v11  ;;  %v7215_v6 = vld [vmem:[#allocation5 + $0x4f0] sm:$0xf0]  ;;  %v7164_v14 = vld [vmem:[#allocation5 + $0x358] sm:$0xf0] }
  0xc7   : > { %2060 = vmatpush.bf16.msra.mxu2 %v5397_v19  ;;  %v7176_v19 = vld [vmem:[#allocation5 + $0x3b8] sm:$0xf0] }
  0xc8   : > { %2073 = vmatpush.bf16.msra.mxu3 %v5493_v26  ;;  %v5432_v26 = vld [vmem:[#allocation5 + $0x248] sm:$0xf]  ;;  %v5613_v32 = vor.u32 %v7176_v19, %v5612_v17  ;;  %v5756_v17 = vld [vmem:[#allocation5 + $0x4d0] sm:$0xf]  ;;  %v7212_v19 = vld [vmem:[#allocation5 + $0x4d8] sm:$0xf0] }
  0xc9   : > { %2035 = vmatpush.bf16.msra.mxu0 %v5193_v27  ;;  %v7131_v27 = vld [vmem:[#allocation5 + $0x250] sm:$0xf0] }
  0xca   : > { %2048 = vmatpush.bf16.msra.mxu1 %v5289_v30  ;;  %v5900_v30 = vld [vmem:[#allocation5 + $0x5f0] sm:$0xf]  ;;  %v5433_v38 = vor.u32 %v7131_v27, %v5432_v26  ;;  %v5757_v26 = vor.u32 %v7212_v19, %v5756_v17  ;;  %v7161_v27 = vld [vmem:[#allocation5 + $0x340] sm:$0xf0] }
  0xcb   : > { %2061 = vmatpush.bf16.msra.mxu2 %v5385_v31  ;;  %v7248_v31 = vld [vmem:[#allocation5 + $0x5f8] sm:$0xf0]  ;;  %v5553_v39 = vor.u32 %v7161_v27, %v5552_v25  ;;  %v6072_v27 = vld [vmem:[#allocation7 + $0x150] sm:$0xf] }
  0xcc   : > { %2074 = vmatpush.bf16.msra.mxu3 %v5481_v41  ;;  %v5696_v41 = vld [vmem:[#allocation5 + $0x458] sm:$0xf]  ;;  %v5901_v43 = vor.u32 %v7248_v31, %v5900_v30  ;;  %v7268_v25 = vld [vmem:[#allocation7 + $0x98] sm:$0xf0] }
  0xcd   : > { %2036 = vmatpush.bf16.msra.mxu0 %v5181_v42  ;;  %v7197_v42 = vld [vmem:[#allocation5 + $0x460] sm:$0xf0]  ;;  %v5744_v31 = vld [vmem:[#allocation5 + $0x4b8] sm:$0xf] }
  0xce   : > { %2049 = vmatpush.bf16.msra.mxu1 %v5277_v45  ;;  %v7221_v45 = vld [vmem:[#allocation5 + $0x520] sm:$0xf0]  ;;  %v5697_v50 = vor.u32 %v7197_v42, %v5696_v41  ;;  %v5540_v42 = vld [vmem:[#allocation5 + $0x320] sm:$0xf] }
  0xcf   : > { %2062 = vmatpush.bf16.msra.mxu2 %v5373_v47  ;;  %v5888_v47 = vld [vmem:[#allocation5 + $0x5d8] sm:$0xf]  ;;  %v5793_v52 = vor.u32 %v7221_v45, %v5792_v44  ;;  %v7158_v45 = vld [vmem:[#allocation5 + $0x328] sm:$0xf0] }
  0xd0   : > { %2075 = vmatpush.bf16.msra.mxu3 %v5469_v54  ;;  %v5684_v54 = vld [vmem:[#allocation5 + $0x440] sm:$0xf]  ;;  %v5889_v56 = vor.u32 %v7245_v48, %v5888_v47  ;;  %v7182_v48 = vld [vmem:[#allocation5 + $0x3e8] sm:$0xf0] }
  0xd1   : > { %2037 = vmatpush.bf16.msra.mxu0 %v5169_v55  ;;  %v7194_v55 = vld [vmem:[#allocation5 + $0x448] sm:$0xf0]  ;;  %v5636_v47 = vld [vmem:[#allocation5 + $0x3e0] sm:$0xf] }
  0xd2   : > { %2050 = vmatpush.bf16.msra.mxu1 %v5265_v58  ;;  %v7218_v58 = vld [vmem:[#allocation5 + $0x508] sm:$0xf0]  ;;  %v5685_v62 = vor.u32 %v7194_v55, %v5684_v54 }
  0xd3   : > { %2063 = vmatpush.bf16.msra.mxu2 %v5361_v59  ;;  %v5876_v59 = vld [vmem:[#allocation5 + $0x5c0] sm:$0xf]  ;;  %v5781_v1 = vor.u32 %v7218_v58, %v5780_v57  ;;  %v7230_v54 = vld [vmem:[#allocation5 + $0x568] sm:$0xf0]  ;;  %v5637_v57 = vor.u32 %v7182_v48, %v5636_v47  ;;  %v5528_v58 = vld [vmem:[#allocation5 + $0x308] sm:$0xf] }
  0xd4   : > { %2076 = vmatpush.bf16.msra.mxu3 %v5457_v3  ;;  %v5672_v3 = vld [vmem:[#allocation5 + $0x428] sm:$0xf]  ;;  %v6156_v48 = vld [vmem:[#allocation7 + $0x1f8] sm:$0xf] }
  0xd5   : > { %2038 = vmatpush.bf16.msra.mxu0 %v5157_v5  ;;  %v5768_v5 = vld [vmem:[#allocation5 + $0x4e8] sm:$0xf]  ;;  %v5673_v8 = vor.u32 %v7191_v4, %v5672_v3  ;;  %v7203_v3 = vld [vmem:[#allocation5 + $0x490] sm:$0xf0]  ;;  %v5829_v4 = vor.u32 %v7230_v54, %v5828_v53  ;;  %v7262_v54 = vld [vmem:[#allocation7 + $0x68] sm:$0xf0] }
  0xd6   : > { %2051 = vmatpush.bf16.msra.mxu1 %v5253_v9  ;;  %v5564_v9 = vld [vmem:[#allocation5 + $0x350] sm:$0xf]  ;;  %v5769_v11 = vor.u32 %v7215_v6, %v5768_v5  ;;  %v7271_v5 = vld [vmem:[#allocation7 + $0xb0] sm:$0xf0]  ;;  %v6084_v6 = vld [vmem:[#allocation7 + $0x168] sm:$0xf] }
  0xd7   : > { %2064 = vmatpush.bf16.msra.mxu2 %v5349_v10  ;;  %v8196_v10 = vld [vmem:[%s8856_s2] sm:$0x7]  ;;  %v5565_v23 = vor.u32 %v7164_v14, %v5564_v9  ;;  %v7319_v9 = vld [vmem:[#allocation7 + $0x230] sm:$0xf0] }
  0xd8   : > { %2077 = vmatpush.bf16.msra.mxu3 %v5445_v20  ;;  %v5852_v20 = vld [vmem:[#allocation5 + $0x590] sm:$0xf]  ;;  %v794_v22 = vperm.slane %v8196_v10, 0 }
  0xd9   : > { %2039 = vmatpush.bf16.msra.mxu0 %v5145_v24  ;;  %v5853_v30 = vor.u32 %v7236_v21, %v5852_v20  ;;  %v6276_v20 = vld [vmem:[#allocation7 + $0x2e8] sm:$0xf]  ;;  %v7343_v21 = vld [vmem:[#allocation7 + $0x2f0] sm:$0xf0] }
  0xda   : > { %2052 = vmatpush.bf16.msra.mxu1 %v5241_v28  ;;  %v5648_v28 = vld [vmem:[#allocation5 + $0x3f8] sm:$0xf] }
  0xdb   : > { %2065 = vmatpush.bf16.msra.mxu2 %v5337_v29  ;;  %v7185_v29 = vld [vmem:[#allocation5 + $0x400] sm:$0xf0] }
  0xdc   : > { %2078 = vmatpush.bf16.msra.mxu3 %v5433_v38  ;;  %2040 = vmatmul.bf16.vlgmr.msra.gmra.mxu0 %v8154_v12  ;;  %v7239_v12 = vld [vmem:[#allocation5 + $0x5b0] sm:$0xf0]  ;;  %v5649_v41 = vor.u32 %v7185_v29, %v5648_v28  ;;  %v7292_v28 = vld [vmem:[#allocation7 + $0x158] sm:$0xf0] }
  0xdd   : > { %2084 = vmatpush.bf16.msrb.mxu0 %v5613_v32  ;;  %2053 = vmatmul.bf16.vlgmr.msra.gmra.mxu1 %v8160_v18  ;;  %v5577_v18 = vor.u32 %v7167_v2, %v5576_v63  ;;  %v5865_v16 = vor.u32 %v7239_v12, %v5864_v7  ;;  %v7209_v32 = vld [vmem:[#allocation5 + $0x4c0] sm:$0xf0]  ;;  %v5720_v2 = vld [vmem:[#allocation5 + $0x488] sm:$0xf] }
  0xde   : > { %2097 = vmatpush.bf16.msrb.mxu1 %v5709_v34  ;;  %2066 = vmatmul.bf16.vlgmr.msra.gmra.mxu2 %v8150_v0  ;;  %v5877_v0 = vor.u32 %v7242_v60, %v5876_v59  ;;  %v1833_v34 = vpop.f32.mrf.mxu0  ;;  %v5745_v44 = vor.u32 %v7209_v32, %v5744_v31  ;;  %v7155_v59 = vld [vmem:[#allocation5 + $0x310] sm:$0xf0]  ;;  %v5624_v60 = vld [vmem:[#allocation5 + $0x3c8] sm:$0xf]  ;;  %v5721_v17 = vor.u32 %v7203_v3, %v5720_v2  ;;  %v6168_v31 = vld [vmem:[#allocation7 + $0x210] sm:$0xf] }
  0xdf   : > { %2110 = vmatpush.bf16.msrb.mxu2 %v5805_v37  ;;  %2079 = vmatmul.bf16.vlgmr.msra.gmra.mxu3 %v8156_v13  ;;  %v5660_v13 = vld [vmem:[#allocation5 + $0x410] sm:$0xf]  ;;  %v7233_v37 = vld [vmem:[#allocation5 + $0x580] sm:$0xf0]  ;;  %v1834_v38 = vadd.f32 %v1833_v34, %v794_v22  ;;  %v7316_v32 = vld [vmem:[#allocation7 + $0x218] sm:$0xf0] }
  0xe0   : > { %2123 = vmatpush.bf16.msrb.mxu3 %v5901_v43  ;;  %v5661_v24 = vor.u32 %v7188_v15, %v5660_v13  ;;  %v1846_v43 = vpop.f32.mrf.mxu1  ;;  %v5816_v13 = vld [vmem:[#allocation5 + $0x548] sm:$0xf]  ;;  %v7227_v15 = vld [vmem:[#allocation5 + $0x550] sm:$0xf0] }
  0xe1   : > { %2085 = vmatpush.bf16.msrb.mxu0 %v5601_v49  ;;  %v1847_v49 = vadd.f32 %v1846_v43, %v1834_v38  ;;  %v1859_v55 = vpop.f32.mrf.mxu2  ;;  %v7340_v38 = vld [vmem:[#allocation7 + $0x2d8] sm:$0xf0]  ;;  %v6169_v43 = vor.u32 %v7316_v32, %v6168_v31  ;;  %v6036_v3 = vld [vmem:[#allocation7 + $0x108] sm:$0xf] }
  0xe2   : > { %2098 = vmatpush.bf16.msrb.mxu1 %v5697_v50  ;;  %v5841_v50 = vor.u32 %v7233_v37, %v5840_v36  ;;  %v6264_v37 = vld [vmem:[#allocation7 + $0x2d0] sm:$0xf] }
  0xe3   : > { %2111 = vmatpush.bf16.msrb.mxu2 %v5793_v52  ;;  %v7206_v52 = vld [vmem:[#allocation5 + $0x4a8] sm:$0xf0]  ;;  %v6265_v47 = vor.u32 %v7340_v38, %v6264_v37 }
  0xe4   : > { %2124 = vmatpush.bf16.msrb.mxu3 %v5889_v56  ;;  %v5541_v56 = vor.u32 %v7158_v45, %v5540_v42  ;;  %v5733_v63 = vor.u32 %v7206_v52, %v5732_v51  ;;  %v7265_v42 = vld [vmem:[#allocation7 + $0x80] sm:$0xf0]  ;;  %v6252_v51 = vld [vmem:[#allocation7 + $0x2b8] sm:$0xf] }
  0xe5   : > { %2086 = vmatpush.bf16.msrb.mxu0 %v5589_v61  ;;  %v1860_v61 = vadd.f32 %v1859_v55, %v1847_v49  ;;  %v7289_v45 = vld [vmem:[#allocation7 + $0x140] sm:$0xf0] }
  0xe6   : > { %2099 = vmatpush.bf16.msrb.mxu1 %v5685_v62  ;;  %v1872_v62 = vpop.f32.mrf.mxu3  ;;  %v1835_v12 = vpop.f32.mrf.mxu0  ;;  %v7313_v49 = vld [vmem:[#allocation7 + $0x200] sm:$0xf0] }
  0xe7   : > { %2112 = vmatpush.bf16.msrb.mxu2 %v5781_v1  ;;  %v7179_v1 = vld [vmem:[#allocation5 + $0x3d0] sm:$0xf0]  ;;  %v8199_v7 = vadd.f32 %v1872_v62, %v1860_v61  ;;  %v7337_v52 = vld [vmem:[#allocation7 + $0x2c0] sm:$0xf0]  ;;  %v6157_v55 = vor.u32 %v7313_v49, %v6156_v48  ;;  %v7334_v61 = vld [vmem:[#allocation7 + $0x2a8] sm:$0xf0] }
  0xe8   : > { %2125 = vmatpush.bf16.msrb.mxu3 %v5877_v0  ;;  %v5988_v0 = vld [vmem:[#allocation7 + $0xa8] sm:$0xf]  ;;  %v5625_v14 = vor.u32 %v7179_v1, %v5624_v60  ;;  %v7307_v12 = vld [vmem:[#allocation7 + $0x1d0] sm:$0xf0]  ;;  %v5904_v48 = vld [vmem:[#allocation7] sm:$0xf] }
  0xe9   : > { %2087 = vmatpush.bf16.msrb.mxu0 %v5577_v18  ;;  %v7295_v18 = vld [vmem:[#allocation7 + $0x170] sm:$0xf0]  ;;  %v5989_v19 = vor.u32 %v7271_v5, %v5988_v0  ;;  %v1861_v29 = vpop.f32.mrf.mxu2  ;;  %v7250_v49 = vld [vmem:[#allocation7 + $0x8] sm:$0xf0] }
  0xea   : > { %2100 = vmatpush.bf16.msrb.mxu1 %v5673_v8  ;;  %v6180_v8 = vld [vmem:[#allocation7 + $0x228] sm:$0xf]  ;;  %v6085_v22 = vor.u32 %v7295_v18, %v6084_v6  ;;  %v5916_v29 = vld [vmem:[#allocation7 + $0x18] sm:$0xf] }
  0xeb   : > { %2113 = vmatpush.bf16.msrb.mxu2 %v5769_v11  ;;  %v5529_v11 = vor.u32 %v7155_v59, %v5528_v58  ;;  %v6144_v58 = vld [vmem:[#allocation7 + $0x1e0] sm:$0xf]  ;;  %v7310_v59 = vld [vmem:[#allocation7 + $0x1e8] sm:$0xf0]  ;;  %v6132_v6 = vld [vmem:[#allocation7 + $0x1c8] sm:$0xf] }
  0xec   : > { %2126 = vmatpush.bf16.msrb.mxu3 %v5865_v16  ;;  %v1848_v16 = vpop.f32.mrf.mxu1  ;;  %v6145_v2 = vor.u32 %v7310_v59, %v6144_v58  ;;  %v7391_v58 = vld [vmem:[#allocation7 + $0x470] sm:$0xf0]  ;;  %v6564_v59 = vld [vmem:[#allocation7 + $0x528] sm:$0xf] }
  0xed   : > { %2088 = vmatpush.bf16.msrb.mxu0 %v5565_v23  ;;  %v6181_v23 = vor.u32 %v7319_v9, %v6180_v8  ;;  %v6228_v9 = vld [vmem:[#allocation7 + $0x288] sm:$0xf]  ;;  %v7256_v16 = vld [vmem:[#allocation7 + $0x38] sm:$0xf0] }
  0xee   : > { %2101 = vmatpush.bf16.msrb.mxu1 %v5661_v24  ;;  %v5976_v24 = vld [vmem:[#allocation7 + $0x90] sm:$0xf]  ;;  %v1874_v34 = vpop.f32.mrf.mxu3 }
  0xef   : > { %2114 = vmatpush.bf16.msrb.mxu2 %v5757_v26  ;;  %v5817_v26 = vor.u32 %v7227_v15, %v5816_v13  ;;  %v5977_v36 = vor.u32 %v7268_v25, %v5976_v24  ;;  %v5928_v15 = vld [vmem:[#allocation7 + $0x30] sm:$0xf]  ;;  %v6012_v34 = vld [vmem:[#allocation7 + $0xd8] sm:$0xf] }
  0xf0   : > { %2127 = vmatpush.bf16.msrb.mxu3 %v5853_v30  ;;  %v6277_v30 = vor.u32 %v7343_v21, %v6276_v20  ;;  %v7280_v20 = vld [vmem:[#allocation7 + $0xf8] sm:$0xf0]  ;;  %v6120_v21 = vld [vmem:[#allocation7 + $0x1b0] sm:$0xf] }
  0xf1   : > { %2089 = vmatpush.bf16.msrb.mxu0 %v5553_v39  ;;  %v6073_v39 = vor.u32 %v7292_v28, %v6072_v27  ;;  %v6216_v25 = vld [vmem:[#allocation7 + $0x270] sm:$0xf] }
  0xf2   : > { %2102 = vmatpush.bf16.msrb.mxu1 %v5649_v41  ;;  %v5964_v41 = vld [vmem:[#allocation7 + $0x78] sm:$0xf] }
  0xf3   : > { %2115 = vmatpush.bf16.msrb.mxu2 %v5745_v44  ;;  %v6060_v44 = vld [vmem:[#allocation7 + $0x138] sm:$0xf] }
  0xf4   : > { %2128 = vmatpush.bf16.msrb.mxu3 %v5841_v50  ;;  %v5965_v50 = vor.u32 %v7265_v42, %v5964_v41  ;;  %v6061_v53 = vor.u32 %v7289_v45, %v6060_v44  ;;  %v7301_v41 = vld [vmem:[#allocation7 + $0x1a0] sm:$0xf0]  ;;  %v6204_v42 = vld [vmem:[#allocation7 + $0x258] sm:$0xf] }
  0xf5   : > { %2090 = vmatpush.bf16.msrb.mxu0 %v5541_v56  ;;  %v6048_v56 = vld [vmem:[#allocation7 + $0x120] sm:$0xf] }
  0xf6   : > { %2103 = vmatpush.bf16.msrb.mxu1 %v5637_v57  ;;  %v6253_v57 = vor.u32 %v7337_v52, %v6252_v51  ;;  %v6000_v51 = vld [vmem:[#allocation7 + $0xc0] sm:$0xf]  ;;  %v7274_v52 = vld [vmem:[#allocation7 + $0xc8] sm:$0xf0] }
  0xf7   : > { %2116 = vmatpush.bf16.msrb.mxu2 %v5733_v63  ;;  %v5940_v63 = vld [vmem:[#allocation7 + $0x48] sm:$0xf] }
  0xf8   : > { %2129 = vmatpush.bf16.msrb.mxu3 %v5829_v4  ;;  %v7283_v4 = vld [vmem:[#allocation7 + $0x110] sm:$0xf0] }
  0xf9   : > { %2091 = vmatpush.bf16.msrb.mxu0 %v5529_v11  ;;  %v1885_v1 = vpop.f32.mrf.mxu0  ;;  %v7331_v11 = vld [vmem:[#allocation7 + $0x290] sm:$0xf0]  ;;  %v6037_v13 = vor.u32 %v7283_v4, %v6036_v3 }
  0xfa   : > { %2104 = vmatpush.bf16.msrb.mxu1 %v5625_v14  ;;  %v1886_v0 = vadd.f32 %v1885_v1, %v8199_v7  ;;  %v1898_v18 = vpop.f32.mrf.mxu1  ;;  %v6229_v7 = vor.u32 %v7331_v11, %v6228_v9  ;;  %v7439_v3 = vld [vmem:[#allocation7 + $0x5f0] sm:$0xf0]  ;;  %v6456_v11 = vld [vmem:[#allocation7 + $0x450] sm:$0xf] }
  0xfb   : > { %2117 = vmatpush.bf16.msrb.mxu2 %v5721_v17  ;;  %v6133_v17 = vor.u32 %v7307_v12, %v6132_v6  ;;  %v516_v4 = vld [vmem:[%s8135_s14 + $0x40] sm:$0xff]  ;;  %v7364_v12 = vld [vmem:[#allocation7 + $0x398] sm:$0xf0] }
  0xfc   : > { %2130 = vmatpush.bf16.msrb.mxu3 %v5817_v26  ;;  %2092 = vmatmul.bf16.vlgmr.msrb.gmra.mxu0 %v8168_v33  ;;  %v5952_v33 = vld [vmem:[#allocation7 + $0x60] sm:$0xf]  ;;  %v1899_v14 = vadd.f32 %v1898_v18, %v1886_v0  ;;  %v7328_v26 = vld [vmem:[#allocation7 + $0x278] sm:$0xf0]  ;;  %v6360_v6 = vld [vmem:[#allocation7 + $0x390] sm:$0xf] }
  0xfd   : > { %3747 = vmatpush.bf16.msra.mxu0 %v5989_v19  ;;  %2105 = vmatmul.bf16.vlgmr.msrb.gmra.mxu1 %v8173_v40  ;;  %v5953_v60 = vor.u32 %v7262_v54, %v5952_v33  ;;  %v6240_v40 = vld [vmem:[#allocation7 + $0x2a0] sm:$0xf]  ;;  %v6024_v19 = vld [vmem:[#allocation7 + $0xf0] sm:$0xf]  ;;  %v6217_v37 = vor.u32 %v7328_v26, %v6216_v25  ;;  %v7298_v54 = vld [vmem:[#allocation7 + $0x188] sm:$0xf0] }
  0xfe   : > { %3760 = vmatpush.bf16.msra.mxu1 %v6085_v22  ;;  %2118 = vmatmul.bf16.vlgmr.msrb.gmra.mxu2 %v8170_v35  ;;  %v7286_v35 = vld [vmem:[#allocation7 + $0x128] sm:$0xf0]  ;;  %v6241_v5 = vor.u32 %v7334_v61, %v6240_v40  ;;  %v7304_v22 = vld [vmem:[#allocation7 + $0x1b8] sm:$0xf0]  ;;  %v6025_v27 = vor.u32 %v7280_v20, %v6024_v19  ;;  %v7415_v40 = vld [vmem:[#allocation7 + $0x530] sm:$0xf0]  ;;  %v8211_v20 = vpack.c.bf16 %v516_v4, %v516_v4 }
  0xff   : > { %3773 = vmatpush.bf16.msra.mxu2 %v6181_v23  ;;  %2131 = vmatmul.bf16.vlgmr.msrb.gmra.mxu3 %v8176_v46  ;;  %v6049_v62 = vor.u32 %v7286_v35, %v6048_v56  ;;  %v7259_v46 = vld [vmem:[#allocation7 + $0x50] sm:$0xf0]  ;;  %v5929_v23 = vor.u32 %v7256_v16, %v5928_v15  ;;  %v6121_v32 = vor.u32 %v7304_v22, %v6120_v21  ;;  %v6192_v61 = vld [vmem:[#allocation7 + $0x240] sm:$0xf]  ;;  %v7412_v19 = vld [vmem:[#allocation7 + $0x518] sm:$0xf0] }
 0x100   : > { %3786 = vmatpush.bf16.msra.mxu3 %v6277_v30  ;;  %v5941_v8 = vor.u32 %v7259_v46, %v5940_v63  ;;  %v7253_v30 = vld [vmem:[#allocation7 + $0x20] sm:$0xf0]  ;;  %v7367_v56 = vld [vmem:[#allocation7 + $0x3b0] sm:$0xf0]  ;;  %v6001_v46 = vor.u32 %v7274_v52, %v6000_v51  ;;  %v6361_v21 = vor.u32 %v7364_v12, %v6360_v6  ;;  %v6648_v22 = vld [vmem:[#allocation7 + $0x5d0] sm:$0xf] }
 0x101   : > { %3748 = vmatpush.bf16.msra.mxu0 %v5977_v36  ;;  %v1911_v24 = vpop.f32.mrf.mxu2  ;;  %v1887_v31 = vpop.f32.mrf.mxu0  ;;  %v7277_v36 = vld [vmem:[#allocation7 + $0xe0] sm:$0xf0]  ;;  %v5917_v45 = vor.u32 %v7253_v30, %v5916_v29  ;;  %v6348_v26 = vld [vmem:[#allocation7 + $0x378] sm:$0xf]  ;;  %v6528_v51 = vld [vmem:[#allocation7 + $0x4e0] sm:$0xf] }
 0x102   : > { %3761 = vmatpush.bf16.msra.mxu1 %v6073_v39  ;;  %v1912_v28 = vadd.f32 %v1911_v24, %v1899_v14  ;;  %v1924_v38 = vpop.f32.mrf.mxu3  ;;  %v6108_v39 = vld [vmem:[#allocation7 + $0x198] sm:$0xf]  ;;  %v518_v18 = vld [vmem:[%s8135_s14 + $0x50] sm:$0xff]  ;;  %v7388_v14 = vld [vmem:[#allocation7 + $0x458] sm:$0xf0] }
 0x103   : > { %3774 = vmatpush.bf16.msra.mxu2 %v6169_v43  ;;  %v1900_v43 = vpop.f32.mrf.mxu1  ;;  %v6109_v33 = vor.u32 %v7301_v41, %v6108_v39  ;;  %v8214_v24 = vpack.c.bf16 %v518_v18, %v518_v18  ;;  %v6457_v25 = vor.u32 %v7388_v14, %v6456_v11  ;;  %v6444_v30 = vld [vmem:[#allocation7 + $0x438] sm:$0xf]  ;;  %v7385_v31 = vld [vmem:[#allocation7 + $0x440] sm:$0xf0]  ;;  %v7406_v52 = vld [vmem:[#allocation7 + $0x4e8] sm:$0xf0] }
 0x104   : > { %3787 = vmatpush.bf16.msra.mxu3 %v6265_v47  ;;  %v8206_v44 = vadd.f32 %v1924_v38, %v1912_v28  ;;  %v7325_v47 = vld [vmem:[#allocation7 + $0x260] sm:$0xf0]  ;;  %v6636_v39 = vld [vmem:[#allocation7 + $0x5b8] sm:$0xf]  ;;  %v6336_v43 = vld [vmem:[#allocation7 + $0x360] sm:$0xf] }
 0x105   : > { %3749 = vmatpush.bf16.msra.mxu0 %v5965_v50  ;;  %v6013_v50 = vor.u32 %v7277_v36, %v6012_v34  ;;  %v6205_v35 = vor.u32 %v7325_v47, %v6204_v42  ;;  %v6540_v36 = vld [vmem:[#allocation7 + $0x4f8] sm:$0xf]  ;;  %v7433_v41 = vld [vmem:[#allocation7 + $0x5c0] sm:$0xf0]  ;;  %v6445_v42 = vor.u32 %v7385_v31, %v6444_v30  ;;  %v6408_v12 = vld [vmem:[#allocation7 + $0x3f0] sm:$0xf] }
 0x106   : > { %3762 = vmatpush.bf16.msra.mxu1 %v6061_v53  ;;  %v6096_v53 = vld [vmem:[#allocation7 + $0x180] sm:$0xf]  ;;  %v7376_v18 = vld [vmem:[#allocation7 + $0x3f8] sm:$0xf0]  ;;  %v6504_v11 = vld [vmem:[#allocation7 + $0x4b0] sm:$0xf] }
 0x107   : > { %3775 = vmatpush.bf16.msra.mxu2 %v6157_v55  ;;  %v6372_v55 = vld [vmem:[#allocation7 + $0x3a8] sm:$0xf]  ;;  %v6097_v0 = vor.u32 %v7298_v54, %v6096_v53  ;;  %v7430_v54 = vld [vmem:[#allocation7 + $0x5a8] sm:$0xf0]  ;;  %v7400_v14 = vld [vmem:[#allocation7 + $0x4b8] sm:$0xf0] }
 0x108   : > { %3788 = vmatpush.bf16.msra.mxu3 %v6253_v57  ;;  %v6468_v57 = vld [vmem:[#allocation7 + $0x468] sm:$0xf]  ;;  %v6373_v1 = vor.u32 %v7367_v56, %v6372_v55  ;;  %v795_v55 = vperm.slane %v8196_v10, 1  ;;  %v7397_v30 = vld [vmem:[#allocation7 + $0x4a0] sm:$0xf0] }
 0x109   : > { %3750 = vmatpush.bf16.msra.mxu0 %v5953_v60  ;;  %v5905_v60 = vor.u32 %v7250_v49, %v5904_v48  ;;  %v1913_v63 = vpop.f32.mrf.mxu2  ;;  %v6432_v48 = vld [vmem:[#allocation7 + $0x420] sm:$0xf]  ;;  %v7382_v49 = vld [vmem:[#allocation7 + $0x428] sm:$0xf0]  ;;  %v6588_v31 = vld [vmem:[#allocation7 + $0x558] sm:$0xf] }
 0x10a   : > { %3763 = vmatpush.bf16.msra.mxu1 %v6049_v62  ;;  %v7322_v62 = vld [vmem:[#allocation7 + $0x248] sm:$0xf0]  ;;  %v1926_v15 = vpop.f32.mrf.mxu3  ;;  %v6433_v56 = vor.u32 %v7382_v49, %v6432_v48  ;;  %v6480_v49 = vld [vmem:[#allocation7 + $0x480] sm:$0xf] }
 0x10b   : > { %3776 = vmatpush.bf16.msra.mxu2 %v6145_v2  ;;  %v6660_v2 = vld [vmem:[#allocation7 + $0x5e8] sm:$0xf]  ;;  %v6193_v9 = vor.u32 %v7322_v62, %v6192_v61  ;;  %v7403_v62 = vld [vmem:[#allocation7 + $0x4d0] sm:$0xf0]  ;;  %v6600_v15 = vld [vmem:[#allocation7 + $0x570] sm:$0xf] }
 0x10c   : > { %3789 = vmatpush.bf16.msra.mxu3 %v6241_v5  ;;  %v6469_v5 = vor.u32 %v7391_v58, %v6468_v57  ;;  %v6661_v16 = vor.u32 %v7439_v3, %v6660_v2  ;;  %v7355_v57 = vld [vmem:[#allocation7 + $0x350] sm:$0xf0]  ;;  %v6529_v58 = vor.u32 %v7406_v52, %v6528_v51  ;;  %v6516_v61 = vld [vmem:[#allocation7 + $0x4c8] sm:$0xf]  ;;  %v7370_v48 = vld [vmem:[#allocation7 + $0x3c8] sm:$0xf0] }
 0x10d   : > { %3751 = vmatpush.bf16.msra.mxu0 %v5941_v8  ;;  %v6565_v8 = vor.u32 %v7415_v40, %v6564_v59  ;;  %v6420_v59 = vld [vmem:[#allocation7 + $0x408] sm:$0xf]  ;;  %v7427_v3 = vld [vmem:[#allocation7 + $0x590] sm:$0xf0]  ;;  %v6517_v6 = vor.u32 %v7403_v62, %v6516_v61  ;;  %v7394_v51 = vld [vmem:[#allocation7 + $0x488] sm:$0xf0] }
 0x10e   : > { %3764 = vmatpush.bf16.msra.mxu1 %v6037_v13  ;;  %v519_v13 = vld [vmem:[%s8135_s14 + $0x58] sm:$0xff] }
 0x10f   : > { %3777 = vmatpush.bf16.msra.mxu2 %v6133_v17  ;;  %v6552_v17 = vld [vmem:[#allocation7 + $0x510] sm:$0xf]  ;;  %v8216_v28 = vpack.c.bf16 %v519_v13, %v519_v13  ;;  %v6612_v2 = vld [vmem:[#allocation7 + $0x588] sm:$0xf]  ;;  %v7294_v62 = vld [vmem:[#allocation7 + $0x16c] sm:$0xf] }
 0x110   : > { %3790 = vmatpush.bf16.msra.mxu3 %v6229_v7  ;;  %v517_v7 = vld [vmem:[%s8135_s14 + $0x48] sm:$0xff]  ;;  %v6553_v29 = vor.u32 %v7412_v19, %v6552_v17  ;;  %v6409_v19 = vor.u32 %v7376_v18, %v6408_v12  ;;  %v523_v18 = vld [vmem:[%s8135_s14 + $0x78] sm:$0xff] }
 0x111   : > { %3752 = vmatpush.bf16.msra.mxu0 %v5929_v23  ;;  %v7436_v23 = vld [vmem:[#allocation7 + $0x5d8] sm:$0xf0]  ;;  %v6756_v52 = vld [vmem:[#allocation7 + $0x6a8] sm:$0xf] }
 0x112   : > { %3765 = vmatpush.bf16.msra.mxu1 %v6025_v27  ;;  %v7361_v27 = vld [vmem:[#allocation7 + $0x380] sm:$0xf0]  ;;  %v6649_v34 = vor.u32 %v7436_v23, %v6648_v22  ;;  %v6505_v23 = vor.u32 %v7400_v14, %v6504_v11  ;;  %v7484_v12 = vld [vmem:[#allocation7 + $0x758] sm:$0xf0]  ;;  %v7267_v11 = vld [vmem:[#allocation7 + $0x94] sm:$0xf] }
 0x113   : > { %3778 = vmatpush.bf16.msra.mxu2 %v6121_v32  ;;  %v8218_v32 = vpack.c.bf16 %v517_v7, %v517_v7  ;;  %v6349_v38 = vor.u32 %v7361_v27, %v6348_v26  ;;  %v6300_v7 = vld [vmem:[#allocation7 + $0x318] sm:$0xf]  ;;  %v7373_v26 = vld [vmem:[#allocation7 + $0x3e0] sm:$0xf0]  ;;  %v5978_v14 = vld [vmem:[#allocation7 + $0x9c] sm:$0xf0] }
 0x114   : > { %3791 = vmatpush.bf16.msra.mxu3 %v6217_v37  ;;  %v7409_v37 = vld [vmem:[#allocation7 + $0x500] sm:$0xf0] }
 0x115   : > { %3753 = vmatpush.bf16.msra.mxu0 %v5917_v45  ;;  %v7358_v45 = vld [vmem:[#allocation7 + $0x368] sm:$0xf0]  ;;  %v6541_v47 = vor.u32 %v7409_v37, %v6540_v36 }
 0x116   : > { %3766 = vmatpush.bf16.msra.mxu1 %v6013_v50  ;;  %v6637_v50 = vor.u32 %v7433_v41, %v6636_v39  ;;  %v6337_v53 = vor.u32 %v7358_v45, %v6336_v43  ;;  %v6288_v39 = vld [vmem:[#allocation7 + $0x300] sm:$0xf]  ;;  %v7346_v41 = vld [vmem:[#allocation7 + $0x308] sm:$0xf0] }
 0x117   : > { %3779 = vmatpush.bf16.msra.mxu2 %v6109_v33  ;;  %v6624_v33 = vld [vmem:[#allocation7 + $0x5a0] sm:$0xf] }
 0x118   : > { %3792 = vmatpush.bf16.msra.mxu3 %v6205_v35  ;;  %v6324_v35 = vld [vmem:[#allocation7 + $0x348] sm:$0xf]  ;;  %v6625_v40 = vor.u32 %v7430_v54, %v6624_v33 }
 0x119   : > { %3754 = vmatpush.bf16.msra.mxu0 %v5905_v60  ;;  %v7379_v60 = vld [vmem:[#allocation7 + $0x410] sm:$0xf0]  ;;  %v1937_v63 = vpop.f32.mrf.mxu0  ;;  %v6852_v54 = vld [vmem:[#allocation7 + $0x768] sm:$0xf] }
 0x11a   : > { %3767 = vmatpush.bf16.msra.mxu1 %v6001_v46  ;;  %v1950_v46 = vpop.f32.mrf.mxu1  ;;  %v1938_v4 = vadd.f32 %v1937_v63, %v795_v55  ;;  %v6421_v10 = vor.u32 %v7379_v60, %v6420_v59  ;;  %v7487_v55 = vld [vmem:[#allocation7 + $0x770] sm:$0xf0]  ;;  %v7418_v59 = vld [vmem:[#allocation7 + $0x548] sm:$0xf0]  ;;  %v6086_v63 = vld [vmem:[#allocation7 + $0x174] sm:$0xf0] }
 0x11b   : > { %3780 = vmatpush.bf16.msra.mxu2 %v6097_v0  ;;  %v6312_v0 = vld [vmem:[#allocation7 + $0x330] sm:$0xf] }
 0x11c   : > { %3793 = vmatpush.bf16.msra.mxu3 %v6193_v9  ;;  %3755 = vmatmul.bf16.vlgmr.msra.gmra.mxu0 %v8211_v20  ;;  %v6613_v9 = vor.u32 %v7427_v3, %v6612_v2  ;;  %v6853_v2 = vor.u32 %v7487_v55, %v6852_v54  ;;  %v6744_v3 = vld [vmem:[#allocation7 + $0x690] sm:$0xf] }
 0x11d   : > { %3799 = vmatpush.bf16.msrb.mxu0 %v6373_v1  ;;  %3768 = vmatmul.bf16.vlgmr.msra.gmra.mxu1 %v8218_v32  ;;  %v6325_v1 = vor.u32 %v7355_v57, %v6324_v35  ;;  %v6289_v35 = vor.u32 %v7346_v41, %v6288_v39  ;;  %v5990_v57 = vld [vmem:[#allocation7 + $0xb4] sm:$0xf0]  ;;  %v6062_v39 = vld [vmem:[#allocation7 + $0x144] sm:$0xf0]  ;;  %v6050_v54 = vld [vmem:[#allocation7 + $0x12c] sm:$0xf0] }
 0x11e   : > { %3812 = vmatpush.bf16.msrb.mxu1 %v6469_v5  ;;  %3781 = vmatmul.bf16.vlgmr.msra.gmra.mxu2 %v8214_v24  ;;  %v7352_v5 = vld [vmem:[#allocation7 + $0x338] sm:$0xf0] }
 0x11f   : > { %3825 = vmatpush.bf16.msrb.mxu2 %v6565_v8  ;;  %3794 = vmatmul.bf16.vlgmr.msra.gmra.mxu3 %v8216_v28  ;;  %v1951_v8 = vadd.f32 %v1950_v46, %v1938_v4  ;;  %v6313_v13 = vor.u32 %v7352_v5, %v6312_v0  ;;  %v520_v46 = vld [vmem:[%s8135_s14 + $0x60] sm:$0xff]  ;;  %v7460_v4 = vld [vmem:[#allocation7 + $0x698] sm:$0xf0] }
 0x120   : > { %3838 = vmatpush.bf16.msrb.mxu3 %v6661_v16  ;;  %v7424_v16 = vld [vmem:[#allocation7 + $0x578] sm:$0xf0] }
 0x121   : > { %3800 = vmatpush.bf16.msrb.mxu0 %v6361_v21  ;;  %v1963_v17 = vpop.f32.mrf.mxu2  ;;  %v7349_v21 = vld [vmem:[#allocation7 + $0x320] sm:$0xf0]  ;;  %v6601_v27 = vor.u32 %v7424_v16, %v6600_v15  ;;  %v1939_v36 = vpop.f32.mrf.mxu0  ;;  %v521_v15 = vld [vmem:[%s8135_s14 + $0x68] sm:$0xff]  ;;  %v6745_v16 = vor.u32 %v7460_v4, %v6744_v3 }
 0x122   : > { %3813 = vmatpush.bf16.msrb.mxu1 %v6457_v25  ;;  %v1964_v22 = vadd.f32 %v1963_v17, %v1951_v8  ;;  %v6396_v25 = vld [vmem:[#allocation7 + $0x3d8] sm:$0xf]  ;;  %v6301_v37 = vor.u32 %v7349_v21, %v6300_v7  ;;  %v1952_v43 = vpop.f32.mrf.mxu1  ;;  %v6074_v7 = vld [vmem:[#allocation7 + $0x15c] sm:$0xf0]  ;;  %v5966_v36 = vld [vmem:[#allocation7 + $0x84] sm:$0xf0] }
 0x123   : > { %3826 = vmatpush.bf16.msrb.mxu2 %v6553_v29  ;;  %v6492_v29 = vld [vmem:[#allocation7 + $0x498] sm:$0xf]  ;;  %v6397_v45 = vor.u32 %v7373_v26, %v6396_v25  ;;  %v7457_v25 = vld [vmem:[#allocation7 + $0x680] sm:$0xf0]  ;;  %v5981_v26 = vor.u32 %v7267_v11, %v5978_v14  ;;  %v6720_v43 = vld [vmem:[#allocation7 + $0x660] sm:$0xf] }
 0x124   : > { %3839 = vmatpush.bf16.msrb.mxu3 %v6649_v34  ;;  %v1976_v34 = vpop.f32.mrf.mxu3  ;;  %v5930_v11 = vld [vmem:[#allocation7 + $0x3c] sm:$0xf0]  ;;  %v7279_v14 = vld [vmem:[#allocation7 + $0xf4] sm:$0xf] }
 0x125   : > { %3801 = vmatpush.bf16.msrb.mxu0 %v6349_v38  ;;  %v7421_v38 = vld [vmem:[#allocation7 + $0x560] sm:$0xf0] }
 0x126   : > { %3814 = vmatpush.bf16.msrb.mxu1 %v6445_v42  ;;  %v8225_v42 = vadd.f32 %v1976_v34, %v1964_v22  ;;  %v6589_v33 = vor.u32 %v7421_v38, %v6588_v31  ;;  %v8235_v22 = vpack.c.bf16 %v523_v18, %v523_v18  ;;  %v7264_v34 = vld [vmem:[#allocation7 + $0x7c] sm:$0xf] }
 0x127   : > { %3827 = vmatpush.bf16.msrb.mxu2 %v6541_v47  ;;  %v6384_v47 = vld [vmem:[#allocation7 + $0x3c0] sm:$0xf]  ;;  %v7288_v38 = vld [vmem:[#allocation7 + $0x13c] sm:$0xf] }
 0x128   : > { %3840 = vmatpush.bf16.msrb.mxu3 %v6637_v50  ;;  %v6493_v50 = vor.u32 %v7397_v30, %v6492_v29  ;;  %v7481_v29 = vld [vmem:[#allocation7 + $0x740] sm:$0xf0]  ;;  %v8237_v30 = vpack.c.bf16 %v521_v15, %v521_v15  ;;  %v7472_v18 = vld [vmem:[#allocation7 + $0x6f8] sm:$0xf0]  ;;  %v6026_v15 = vld [vmem:[#allocation7 + $0xfc] sm:$0xf0] }
 0x129   : > { %3802 = vmatpush.bf16.msrb.mxu0 %v6337_v53  ;;  %v7463_v53 = vld [vmem:[#allocation7 + $0x6b0] sm:$0xf0]  ;;  %v1965_v60 = vpop.f32.mrf.mxu2 }
 0x12a   : > { %3815 = vmatpush.bf16.msrb.mxu1 %v6433_v56  ;;  %v7270_v56 = vld [vmem:[#allocation7 + $0xac] sm:$0xf]  ;;  %v6757_v61 = vor.u32 %v7463_v53, %v6756_v52  ;;  %v5954_v52 = vld [vmem:[#allocation7 + $0x6c] sm:$0xf0] }
 0x12b   : > { %3828 = vmatpush.bf16.msrb.mxu2 %v6529_v58  ;;  %v6576_v58 = vld [vmem:[#allocation7 + $0x540] sm:$0xf]  ;;  %v5993_v0 = vor.u32 %v7270_v56, %v5990_v57  ;;  %v6708_v56 = vld [vmem:[#allocation7 + $0x648] sm:$0xf] }
 0x12c   : > { %3841 = vmatpush.bf16.msrb.mxu3 %v6625_v40  ;;  %v6385_v40 = vor.u32 %v7370_v48, %v6384_v47  ;;  %v6577_v5 = vor.u32 %v7418_v59, %v6576_v58  ;;  %v1978_v8 = vpop.f32.mrf.mxu3  ;;  %v5969_v47 = vor.u32 %v7264_v34, %v5966_v36  ;;  %v6816_v48 = vld [vmem:[#allocation7 + $0x720] sm:$0xf]  ;;  %v6804_v58 = vld [vmem:[#allocation7 + $0x708] sm:$0xf]  ;;  %v7475_v59 = vld [vmem:[#allocation7 + $0x710] sm:$0xf0] }
 0x12d   : > { %3803 = vmatpush.bf16.msrb.mxu0 %v6325_v1  ;;  %v6481_v1 = vor.u32 %v7394_v51, %v6480_v49  ;;  %v7478_v49 = vld [vmem:[#allocation7 + $0x728] sm:$0xf0]  ;;  %v7261_v51 = vld [vmem:[#allocation7 + $0x64] sm:$0xf]  ;;  %v6805_v4 = vor.u32 %v7475_v59, %v6804_v58  ;;  %v7252_v34 = vld [vmem:[#allocation7 + $0x1c] sm:$0xf] }
 0x12e   : > { %3816 = vmatpush.bf16.msrb.mxu1 %v6421_v10  ;;  %v522_v10 = vld [vmem:[%s8135_s14 + $0x70] sm:$0xff]  ;;  %v6817_v55 = vor.u32 %v7478_v49, %v6816_v48  ;;  %v5957_v57 = vor.u32 %v7261_v51, %v5954_v52  ;;  %v5918_v36 = vld [vmem:[#allocation7 + $0x24] sm:$0xf0]  ;;  %v7466_v51 = vld [vmem:[#allocation7 + $0x6c8] sm:$0xf0] }
 0x12f   : > { %3829 = vmatpush.bf16.msrb.mxu2 %v6517_v6  ;;  %v6840_v6 = vld [vmem:[#allocation7 + $0x750] sm:$0xf]  ;;  %v8233_v17 = vpack.c.bf16 %v522_v10, %v522_v10  ;;  %v7249_v52 = vld [vmem:[#allocation7 + $0x4] sm:$0xf]  ;;  %v7366_v58 = vld [vmem:[#allocation7 + $0x3ac] sm:$0xf] }
 0x130   : > { %3842 = vmatpush.bf16.msrb.mxu3 %v6613_v9  ;;  %v6089_v9 = vor.u32 %v7294_v62, %v6086_v63  ;;  %v6841_v21 = vor.u32 %v7484_v12, %v6840_v6  ;;  %v5942_v62 = vld [vmem:[#allocation7 + $0x54] sm:$0xf0]  ;;  %v6792_v12 = vld [vmem:[#allocation7 + $0x6f0] sm:$0xf] }
 0x131   : > { %3804 = vmatpush.bf16.msrb.mxu0 %v6313_v13  ;;  %v8230_v13 = vpack.c.bf16 %v520_v46, %v520_v46 }
 0x132   : > { %3817 = vmatpush.bf16.msrb.mxu1 %v6409_v19  ;;  %v7291_v19 = vld [vmem:[#allocation7 + $0x154] sm:$0xf] }
 0x133   : > { %3830 = vmatpush.bf16.msrb.mxu2 %v6505_v23  ;;  %v6732_v23 = vld [vmem:[#allocation7 + $0x678] sm:$0xf]  ;;  %v6077_v31 = vor.u32 %v7291_v19, %v6074_v7 }
 0x134   : > { %3843 = vmatpush.bf16.msrb.mxu3 %v6601_v27  ;;  %v6828_v27 = vld [vmem:[#allocation7 + $0x738] sm:$0xf] }
 0x135   : > { %3805 = vmatpush.bf16.msrb.mxu0 %v6301_v37  ;;  %v6733_v37 = vor.u32 %v7457_v25, %v6732_v23  ;;  %v6829_v41 = vor.u32 %v7481_v29, %v6828_v27  ;;  %v6684_v7 = vld [vmem:[#allocation7 + $0x618] sm:$0xf]  ;;  %v7469_v27 = vld [vmem:[#allocation7 + $0x6e0] sm:$0xf0] }
 0x136   : > { %3818 = vmatpush.bf16.msrb.mxu1 %v6397_v45  ;;  %v7454_v45 = vld [vmem:[#allocation7 + $0x668] sm:$0xf0] }
 0x137   : > { %3831 = vmatpush.bf16.msrb.mxu2 %v6493_v50  ;;  %v6065_v50 = vor.u32 %v7288_v38, %v6062_v39  ;;  %v6721_v53 = vor.u32 %v7454_v45, %v6720_v43  ;;  %v6672_v43 = vld [vmem:[#allocation7 + $0x600] sm:$0xf]  ;;  %v7442_v45 = vld [vmem:[#allocation7 + $0x608] sm:$0xf0] }
 0x138   : > { %3844 = vmatpush.bf16.msrb.mxu3 %v6589_v33  ;;  %v7285_v33 = vld [vmem:[#allocation7 + $0x124] sm:$0xf]  ;;  %v6673_v59 = vor.u32 %v7442_v45, %v6672_v43  ;;  %v6446_v43 = vld [vmem:[#allocation7 + $0x444] sm:$0xf0] }
 0x139   : > { %3806 = vmatpush.bf16.msrb.mxu0 %v6289_v35  ;;  %v7451_v35 = vld [vmem:[#allocation7 + $0x650] sm:$0xf0]  ;;  %v1989_v60 = vpop.f32.mrf.mxu0 }
 0x13a   : > { %3819 = vmatpush.bf16.msrb.mxu1 %v6385_v40  ;;  %v6053_v40 = vor.u32 %v7285_v33, %v6050_v54  ;;  %v1990_v63 = vadd.f32 %v1989_v60, %v8225_v42  ;;  %v6709_v46 = vor.u32 %v7451_v35, %v6708_v56  ;;  %v2002_v3 = vpop.f32.mrf.mxu1  ;;  %v5906_v33 = vld [vmem:[#allocation7 + $0xc] sm:$0xf0]  ;;  %v7318_v54 = vld [vmem:[#allocation7 + $0x22c] sm:$0xf]  ;;  %v6374_v60 = vld [vmem:[#allocation7 + $0x3b4] sm:$0xf0] }
 0x13b   : > { %3832 = vmatpush.bf16.msrb.mxu2 %v6481_v1  ;;  %v7282_v1 = vld [vmem:[#allocation7 + $0x10c] sm:$0xf] }
 0x13c   : > { %3845 = vmatpush.bf16.msrb.mxu3 %v6577_v5  ;;  %3807 = vmatmul.bf16.vlgmr.msrb.gmra.mxu0 %v8230_v13  ;;  %v2003_v10 = vadd.f32 %v2002_v3, %v1990_v63  ;;  %v7448_v5 = vld [vmem:[#allocation7 + $0x638] sm:$0xf0]  ;;  %v7342_v35 = vld [vmem:[#allocation7 + $0x2ec] sm:$0xf] }
 0x13d   : > { %3851 = vmatpush.bf16.msra.mxu0 %v6757_v61  ;;  %3820 = vmatmul.bf16.vlgmr.msrb.gmra.mxu1 %v8237_v30  ;;  %v7258_v61 = vld [vmem:[#allocation7 + $0x4c] sm:$0xf] }
 0x13e   : > { %3864 = vmatpush.bf16.msra.mxu1 %v6853_v2  ;;  %3833 = vmatmul.bf16.vlgmr.msrb.gmra.mxu2 %v8233_v17  ;;  %v6038_v2 = vld [vmem:[#allocation7 + $0x114] sm:$0xf0]  ;;  %v5945_v6 = vor.u32 %v7258_v61, %v5942_v62  ;;  %v6002_v61 = vld [vmem:[#allocation7 + $0xcc] sm:$0xf0] }
 0x13f   : > { %3877 = vmatpush.bf16.msra.mxu2 %v5993_v0  ;;  %3846 = vmatmul.bf16.vlgmr.msrb.gmra.mxu3 %v8235_v22  ;;  %v6696_v0 = vld [vmem:[#allocation7 + $0x630] sm:$0xf]  ;;  %v6041_v8 = vor.u32 %v7282_v1, %v6038_v2  ;;  %v7390_v1 = vld [vmem:[#allocation7 + $0x46c] sm:$0xf]  ;;  %v6470_v2 = vld [vmem:[#allocation7 + $0x474] sm:$0xf0] }
 0x140   : > { %3890 = vmatpush.bf16.msra.mxu3 %v6089_v9  ;;  %v7255_v9 = vld [vmem:[#allocation7 + $0x34] sm:$0xf]  ;;  %v6697_v42 = vor.u32 %v7448_v5, %v6696_v0  ;;  %v525_v0 = vld [vmem:[%s8135_s14 + $0x88] sm:$0xff] }
 0x141   : > { %3852 = vmatpush.bf16.msra.mxu0 %v6745_v16  ;;  %v6793_v16 = vor.u32 %v7472_v18, %v6792_v12  ;;  %v2015_v19 = vpop.f32.mrf.mxu2  ;;  %v5933_v23 = vor.u32 %v7255_v9, %v5930_v11  ;;  %v1991_v29 = vpop.f32.mrf.mxu0  ;;  %v7315_v5 = vld [vmem:[#allocation7 + $0x214] sm:$0xf]  ;;  %v6377_v12 = vor.u32 %v7366_v58, %v6374_v60  ;;  %v6266_v9 = vld [vmem:[#allocation7 + $0x2dc] sm:$0xf0]  ;;  %v7306_v58 = vld [vmem:[#allocation7 + $0x1cc] sm:$0xf] }
 0x142   : > { %3865 = vmatpush.bf16.msra.mxu1 %v6841_v21  ;;  %v7445_v21 = vld [vmem:[#allocation7 + $0x620] sm:$0xf0]  ;;  %v2016_v25 = vadd.f32 %v2015_v19, %v2003_v10  ;;  %v2028_v38 = vpop.f32.mrf.mxu3  ;;  %v8250_v19 = vpack.c.bf16 %v525_v0, %v525_v0  ;;  %v7755_v60 = vld [vmem:[%s8856_s2] sm:$0x7] }
 0x143   : > { %3878 = vmatpush.bf16.msra.mxu2 %v5981_v26  ;;  %v6780_v26 = vld [vmem:[#allocation7 + $0x6d8] sm:$0xf]  ;;  %v6685_v39 = vor.u32 %v7445_v21, %v6684_v7  ;;  %v7387_v21 = vld [vmem:[#allocation7 + $0x454] sm:$0xf] }
 0x144   : > { %3891 = vmatpush.bf16.msra.mxu3 %v6077_v31  ;;  %v6029_v31 = vor.u32 %v7279_v14, %v6026_v15  ;;  %v8244_v48 = vadd.f32 %v2028_v38, %v2016_v25  ;;  %v6781_v49 = vor.u32 %v7469_v27, %v6780_v26  ;;  %v7363_v14 = vld [vmem:[#allocation7 + $0x394] sm:$0xf]  ;;  %v6362_v15 = vld [vmem:[#allocation7 + $0x39c] sm:$0xf0]  ;;  %v7312_v26 = vld [vmem:[#allocation7 + $0x1fc] sm:$0xf] }
 0x145   : > { %3853 = vmatpush.bf16.msra.mxu0 %v6733_v37  ;;  %v7276_v37 = vld [vmem:[#allocation7 + $0xdc] sm:$0xf]  ;;  %v6158_v27 = vld [vmem:[#allocation7 + $0x204] sm:$0xf0]  ;;  %v6365_v29 = vor.u32 %v7363_v14, %v6362_v15  ;;  %v6218_v14 = vld [vmem:[#allocation7 + $0x27c] sm:$0xf0] }
 0x146   : > { %3866 = vmatpush.bf16.msra.mxu1 %v6829_v41  ;;  %v6014_v41 = vld [vmem:[#allocation7 + $0xe4] sm:$0xf0] }
 0x147   : > { %3879 = vmatpush.bf16.msra.mxu2 %v5969_v47  ;;  %v2004_v47 = vpop.f32.mrf.mxu1  ;;  %v6017_v56 = vor.u32 %v7276_v37, %v6014_v41  ;;  %v7360_v37 = vld [vmem:[#allocation7 + $0x37c] sm:$0xf]  ;;  %v6350_v38 = vld [vmem:[#allocation7 + $0x384] sm:$0xf0] }
 0x148   : > { %3892 = vmatpush.bf16.msra.mxu3 %v6065_v50  ;;  %v6768_v50 = vld [vmem:[#allocation7 + $0x6c0] sm:$0xf]  ;;  %v7384_v41 = vld [vmem:[#allocation7 + $0x43c] sm:$0xf]  ;;  %v7309_v47 = vld [vmem:[#allocation7 + $0x1e4] sm:$0xf] }
 0x149   : > { %3854 = vmatpush.bf16.msra.mxu0 %v6721_v53  ;;  %v5921_v53 = vor.u32 %v7252_v34, %v5918_v36  ;;  %v6769_v62 = vor.u32 %v7466_v51, %v6768_v50  ;;  %v2017_v3 = vpop.f32.mrf.mxu2  ;;  %v6254_v34 = vld [vmem:[#allocation7 + $0x2c4] sm:$0xf0]  ;;  %v6353_v50 = vor.u32 %v7360_v37, %v6350_v38  ;;  %v7333_v51 = vld [vmem:[#allocation7 + $0x2a4] sm:$0xf]  ;;  %v7324_v37 = vld [vmem:[#allocation7 + $0x25c] sm:$0xf] }
 0x14a   : > { %3867 = vmatpush.bf16.msra.mxu1 %v6817_v55  ;;  %v6182_v55 = vld [vmem:[#allocation7 + $0x234] sm:$0xf0]  ;;  %v6206_v38 = vld [vmem:[#allocation7 + $0x264] sm:$0xf0] }
 0x14b   : > { %3880 = vmatpush.bf16.msra.mxu2 %v5957_v57  ;;  %v6278_v57 = vld [vmem:[#allocation7 + $0x2f4] sm:$0xf0]  ;;  %v6185_v63 = vor.u32 %v7318_v54, %v6182_v55  ;;  %v6338_v54 = vld [vmem:[#allocation7 + $0x36c] sm:$0xf0] }
 0x14c   : > { %3893 = vmatpush.bf16.msra.mxu3 %v6053_v40  ;;  %v7273_v40 = vld [vmem:[#allocation7 + $0xc4] sm:$0xf]  ;;  %v6281_v10 = vor.u32 %v7342_v35, %v6278_v57  ;;  %v6434_v35 = vld [vmem:[#allocation7 + $0x42c] sm:$0xf0] }
 0x14d   : > { %3855 = vmatpush.bf16.msra.mxu0 %v6709_v46  ;;  %v524_v46 = vld [vmem:[%s8135_s14 + $0x80] sm:$0xff]  ;;  %v6005_v18 = vor.u32 %v7273_v40, %v6002_v61  ;;  %v796_v40 = vperm.slane %v7755_v60, 2 }
 0x14e   : > { %3868 = vmatpush.bf16.msra.mxu1 %v6805_v4  ;;  %v5909_v4 = vor.u32 %v7249_v52, %v5906_v33  ;;  %v8248_v11 = vpack.c.bf16 %v524_v46, %v524_v46  ;;  %v6242_v52 = vld [vmem:[#allocation7 + $0x2ac] sm:$0xf0]  ;;  %v7357_v33 = vld [vmem:[#allocation7 + $0x364] sm:$0xf] }
 0x14f   : > { %3881 = vmatpush.bf16.msra.mxu2 %v5945_v6  ;;  %v6170_v6 = vld [vmem:[#allocation7 + $0x21c] sm:$0xf0]  ;;  %v6245_v57 = vor.u32 %v7333_v51, %v6242_v52  ;;  %v6341_v61 = vor.u32 %v7357_v33, %v6338_v54  ;;  %v7297_v51 = vld [vmem:[#allocation7 + $0x184] sm:$0xf]  ;;  %v6098_v52 = vld [vmem:[#allocation7 + $0x18c] sm:$0xf0]  ;;  %v6209_v54 = vor.u32 %v7324_v37, %v6206_v38 }
 0x150   : > { %3894 = vmatpush.bf16.msra.mxu3 %v6041_v8  ;;  %v7339_v8 = vld [vmem:[#allocation7 + $0x2d4] sm:$0xf]  ;;  %v6173_v7 = vor.u32 %v7315_v5, %v6170_v6  ;;  %v6290_v60 = vld [vmem:[#allocation7 + $0x30c] sm:$0xf0]  ;;  %v7408_v37 = vld [vmem:[#allocation7 + $0x4fc] sm:$0xf] }
 0x151   : > { %3856 = vmatpush.bf16.msra.mxu0 %v6697_v42  ;;  %v6473_v42 = vor.u32 %v7390_v1, %v6470_v2  ;;  %v6269_v25 = vor.u32 %v7339_v8, %v6266_v9  ;;  %v7354_v1 = vld [vmem:[#allocation7 + $0x34c] sm:$0xf]  ;;  %v6326_v2 = vld [vmem:[#allocation7 + $0x354] sm:$0xf0]  ;;  %v6542_v38 = vld [vmem:[#allocation7 + $0x504] sm:$0xf0] }
 0x152   : > { %3869 = vmatpush.bf16.msra.mxu1 %v6793_v16  ;;  %v2030_v16 = vpop.f32.mrf.mxu3  ;;  %v6329_v9 = vor.u32 %v7354_v1, %v6326_v2  ;;  %v7462_v1 = vld [vmem:[#allocation7 + $0x6ac] sm:$0xf]  ;;  %v6101_v2 = vor.u32 %v7297_v51, %v6098_v52  ;;  %v7480_v51 = vld [vmem:[#allocation7 + $0x73c] sm:$0xf]  ;;  %v6830_v52 = vld [vmem:[#allocation7 + $0x744] sm:$0xf0] }
 0x153   : > { %3882 = vmatpush.bf16.msra.mxu2 %v5933_v23  ;;  %v6458_v23 = vld [vmem:[#allocation7 + $0x45c] sm:$0xf0]  ;;  %v7351_v16 = vld [vmem:[#allocation7 + $0x334] sm:$0xf] }
 0x154   : > { %3895 = vmatpush.bf16.msra.mxu3 %v6029_v31  ;;  %v7336_v31 = vld [vmem:[#allocation7 + $0x2bc] sm:$0xf]  ;;  %v6461_v36 = vor.u32 %v7387_v21, %v6458_v23 }
 0x155   : > { %3857 = vmatpush.bf16.msra.mxu0 %v6685_v39  ;;  %v6161_v39 = vor.u32 %v7312_v26, %v6158_v27  ;;  %v6257_v45 = vor.u32 %v7336_v31, %v6254_v34  ;;  %v6410_v26 = vld [vmem:[#allocation7 + $0x3fc] sm:$0xf0]  ;;  %v6110_v31 = vld [vmem:[#allocation7 + $0x1a4] sm:$0xf0] }
 0x156   : > { %3870 = vmatpush.bf16.msra.mxu1 %v6781_v49  ;;  %v6146_v49 = vld [vmem:[#allocation7 + $0x1ec] sm:$0xf0] }
 0x157   : > { %3883 = vmatpush.bf16.msra.mxu2 %v5921_v53  ;;  %v6449_v53 = vor.u32 %v7384_v41, %v6446_v43  ;;  %v6149_v55 = vor.u32 %v7309_v47, %v6146_v49  ;;  %v7348_v43 = vld [vmem:[#allocation7 + $0x31c] sm:$0xf] }
 0x158   : > { %3896 = vmatpush.bf16.msra.mxu3 %v6017_v56  ;;  %v7381_v56 = vld [vmem:[#allocation7 + $0x424] sm:$0xf]  ;;  %v7372_v47 = vld [vmem:[#allocation7 + $0x3dc] sm:$0xf] }
 0x159   : > { %3858 = vmatpush.bf16.msra.mxu0 %v6673_v59  ;;  %v6134_v59 = vld [vmem:[#allocation7 + $0x1d4] sm:$0xf0]  ;;  %v6437_v46 = vor.u32 %v7381_v56, %v6434_v35  ;;  %v2041_v0 = vpop.f32.mrf.mxu0  ;;  %v6194_v56 = vld [vmem:[#allocation7 + $0x24c] sm:$0xf0]  ;;  %v7345_v35 = vld [vmem:[#allocation7 + $0x304] sm:$0xf] }
 0x15a   : > { %3871 = vmatpush.bf16.msra.mxu1 %v6769_v62  ;;  %v7330_v62 = vld [vmem:[#allocation7 + $0x28c] sm:$0xf]  ;;  %v6137_v3 = vor.u32 %v7306_v58, %v6134_v59  ;;  %v2054_v5 = vpop.f32.mrf.mxu1  ;;  %v2042_v8 = vadd.f32 %v2041_v0, %v796_v40 }
 0x15b   : > { %3884 = vmatpush.bf16.msra.mxu2 %v5909_v4  ;;  %v7378_v4 = vld [vmem:[#allocation7 + $0x40c] sm:$0xf] }
 0x15c   : > { %3897 = vmatpush.bf16.msra.mxu3 %v6005_v18  ;;  %3859 = vmatmul.bf16.vlgmr.msra.gmra.mxu0 %v8248_v11  ;;  %v6122_v18 = vld [vmem:[#allocation7 + $0x1bc] sm:$0xf0]  ;;  %v2055_v21 = vadd.f32 %v2054_v5, %v2042_v8  ;;  %v7414_v40 = vld [vmem:[#allocation7 + $0x52c] sm:$0xf]  ;;  %v6293_v8 = vor.u32 %v7345_v35, %v6290_v60  ;;  %v6626_v35 = vld [vmem:[#allocation7 + $0x5ac] sm:$0xf0] }
 0x15d   : > { %3903 = vmatpush.bf16.msrb.mxu0 %v6185_v63  ;;  %3872 = vmatmul.bf16.vlgmr.msra.gmra.mxu1 %v8250_v19  ;;  %v6230_v63 = vld [vmem:[#allocation7 + $0x294] sm:$0xf0]  ;;  %v6722_v60 = vld [vmem:[#allocation7 + $0x66c] sm:$0xf0] }
 0x15e   : > { %3916 = vmatpush.bf16.msrb.mxu1 %v6281_v10  ;;  %3885 = vmatmul.bf16.vlgmr.msra.gmra.mxu2 %v8211_v20  ;;  %v6422_v10 = vld [vmem:[#allocation7 + $0x414] sm:$0xf0]  ;;  %v6233_v6 = vor.u32 %v7330_v62, %v6230_v63  ;;  %v7438_v63 = vld [vmem:[#allocation7 + $0x5ec] sm:$0xf] }
 0x15f   : > { %3929 = vmatpush.bf16.msrb.mxu2 %v6377_v12  ;;  %3898 = vmatmul.bf16.vlgmr.msra.gmra.mxu3 %v8218_v32  ;;  %v7303_v12 = vld [vmem:[#allocation7 + $0x1b4] sm:$0xf]  ;;  %v6425_v15 = vor.u32 %v7378_v4, %v6422_v10  ;;  %v7369_v4 = vld [vmem:[#allocation7 + $0x3c4] sm:$0xf]  ;;  %v6386_v10 = vld [vmem:[#allocation7 + $0x3cc] sm:$0xf0] }
 0x160   : > { %3942 = vmatpush.bf16.msrb.mxu3 %v6473_v42  ;;  %v7327_v42 = vld [vmem:[#allocation7 + $0x274] sm:$0xf]  ;;  %v6125_v23 = vor.u32 %v7303_v12, %v6122_v18  ;;  %v6854_v12 = vld [vmem:[#allocation7 + $0x774] sm:$0xf0] }
 0x161   : > { %3904 = vmatpush.bf16.msrb.mxu0 %v6173_v7  ;;  %v6314_v7 = vld [vmem:[#allocation7 + $0x33c] sm:$0xf0]  ;;  %v6221_v27 = vor.u32 %v7327_v42, %v6218_v14  ;;  %v2067_v34 = vpop.f32.mrf.mxu2  ;;  %v2043_v33 = vpop.f32.mrf.mxu0  ;;  %v7411_v42 = vld [vmem:[#allocation7 + $0x514] sm:$0xf] }
 0x162   : > { %3917 = vmatpush.bf16.msrb.mxu1 %v6269_v25  ;;  %v7375_v25 = vld [vmem:[#allocation7 + $0x3f4] sm:$0xf]  ;;  %v2056_v58 = vpop.f32.mrf.mxu1  ;;  %v6554_v14 = vld [vmem:[#allocation7 + $0x51c] sm:$0xf0]  ;;  %v7405_v33 = vld [vmem:[#allocation7 + $0x4e4] sm:$0xf] }
 0x163   : > { %3930 = vmatpush.bf16.msrb.mxu2 %v6365_v29  ;;  %v7300_v29 = vld [vmem:[#allocation7 + $0x19c] sm:$0xf]  ;;  %v6413_v41 = vor.u32 %v7375_v25, %v6410_v26  ;;  %v7459_v25 = vld [vmem:[#allocation7 + $0x694] sm:$0xf]  ;;  %v6746_v26 = vld [vmem:[#allocation7 + $0x69c] sm:$0xf0]  ;;  %v6833_v58 = vor.u32 %v7480_v51, %v6830_v52 }
 0x164   : > { %3943 = vmatpush.bf16.msrb.mxu3 %v6461_v36  ;;  %v6317_v36 = vor.u32 %v7351_v16, %v6314_v7  ;;  %v6113_v49 = vor.u32 %v7300_v29, %v6110_v31  ;;  %v6389_v16 = vor.u32 %v7369_v4, %v6386_v10  ;;  %v7435_v7 = vld [vmem:[#allocation7 + $0x5d4] sm:$0xf]  ;;  %v6557_v29 = vor.u32 %v7411_v42, %v6554_v14  ;;  %v6614_v4 = vld [vmem:[#allocation7 + $0x594] sm:$0xf0]  ;;  %v6686_v51 = vld [vmem:[#allocation7 + $0x624] sm:$0xf0] }
 0x165   : > { %3905 = vmatpush.bf16.msrb.mxu0 %v6161_v39  ;;  %v2068_v39 = vadd.f32 %v2067_v34, %v2055_v21  ;;  %v6650_v21 = vld [vmem:[#allocation7 + $0x5dc] sm:$0xf0]  ;;  %v7483_v31 = vld [vmem:[#allocation7 + $0x754] sm:$0xf]  ;;  %v7468_v52 = vld [vmem:[#allocation7 + $0x6dc] sm:$0xf] }
 0x166   : > { %3918 = vmatpush.bf16.msrb.mxu1 %v6257_v45  ;;  %v6302_v45 = vld [vmem:[#allocation7 + $0x324] sm:$0xf0]  ;;  %v6842_v34 = vld [vmem:[#allocation7 + $0x75c] sm:$0xf0] }
 0x167   : > { %3931 = vmatpush.bf16.msrb.mxu2 %v6353_v50  ;;  %v6398_v50 = vld [vmem:[#allocation7 + $0x3e4] sm:$0xf0]  ;;  %v6305_v59 = vor.u32 %v7348_v43, %v6302_v45  ;;  %v6845_v45 = vor.u32 %v7483_v31, %v6842_v34  ;;  %v6794_v34 = vld [vmem:[#allocation7 + $0x6fc] sm:$0xf0] }
 0x168   : > { %3944 = vmatpush.bf16.msrb.mxu3 %v6449_v53  ;;  %v2080_v53 = vpop.f32.mrf.mxu3  ;;  %v6401_v62 = vor.u32 %v7372_v47, %v6398_v50  ;;  %v6638_v43 = vld [vmem:[#allocation7 + $0x5c4] sm:$0xf0]  ;;  %v7456_v47 = vld [vmem:[#allocation7 + $0x67c] sm:$0xf]  ;;  %v6545_v50 = vor.u32 %v7408_v37, %v6542_v38 }
 0x169   : > { %3906 = vmatpush.bf16.msrb.mxu0 %v6149_v55  ;;  %v7321_v55 = vld [vmem:[#allocation7 + $0x244] sm:$0xf]  ;;  %v2069_v18 = vpop.f32.mrf.mxu2  ;;  %v7396_v37 = vld [vmem:[#allocation7 + $0x49c] sm:$0xf]  ;;  %v6494_v38 = vld [vmem:[#allocation7 + $0x4a4] sm:$0xf0] }
 0x16a   : > { %3919 = vmatpush.bf16.msrb.mxu1 %v6245_v57  ;;  %v8259_v57 = vadd.f32 %v2080_v53, %v2068_v39  ;;  %v6197_v0 = vor.u32 %v7321_v55, %v6194_v56  ;;  %v6749_v39 = vor.u32 %v7459_v25, %v6746_v26  ;;  %v7429_v56 = vld [vmem:[#allocation7 + $0x5a4] sm:$0xf]  ;;  %v6602_v25 = vld [vmem:[#allocation7 + $0x57c] sm:$0xf0] }
 0x16b   : > { %3932 = vmatpush.bf16.msrb.mxu2 %v6341_v61  ;;  %v6566_v61 = vld [vmem:[#allocation7 + $0x534] sm:$0xf0] }
 0x16c   : > { %3945 = vmatpush.bf16.msrb.mxu3 %v6437_v46  ;;  %v6662_v46 = vld [vmem:[#allocation7 + $0x5f4] sm:$0xf0]  ;;  %v6569_v5 = vor.u32 %v7414_v40, %v6566_v61  ;;  %v7477_v61 = vld [vmem:[#allocation7 + $0x724] sm:$0xf] }
 0x16d   : > { %3907 = vmatpush.bf16.msrb.mxu0 %v6137_v3  ;;  %v6758_v3 = vld [vmem:[#allocation7 + $0x6b4] sm:$0xf0] }
 0x16e   : > { %3920 = vmatpush.bf16.msrb.mxu1 %v6233_v6  ;;  %v7486_v6 = vld [vmem:[#allocation7 + $0x76c] sm:$0xf] }
 0x16f   : > { %3933 = vmatpush.bf16.msrb.mxu2 %v6329_v9  ;;  %v6665_v9 = vor.u32 %v7438_v63, %v6662_v46  ;;  %v6629_v63 = vor.u32 %v7429_v56, %v6626_v35  ;;  %v7402_v46 = vld [vmem:[#allocation7 + $0x4cc] sm:$0xf]  ;;  %v7393_v56 = vld [vmem:[#allocation7 + $0x484] sm:$0xf]  ;;  %v6482_v35 = vld [vmem:[#allocation7 + $0x48c] sm:$0xf0] }
 0x170   : > { %3946 = vmatpush.bf16.msrb.mxu3 %v6425_v15  ;;  %v6761_v15 = vor.u32 %v7462_v1, %v6758_v3  ;;  %v6518_v1 = vld [vmem:[#allocation7 + $0x4d4] sm:$0xf0]  ;;  %v7426_v3 = vld [vmem:[#allocation7 + $0x58c] sm:$0xf] }
 0x171   : > { %3908 = vmatpush.bf16.msrb.mxu0 %v6125_v23  ;;  %v6857_v23 = vor.u32 %v7486_v6, %v6854_v12  ;;  %v6710_v6 = vld [vmem:[#allocation7 + $0x654] sm:$0xf0]  ;;  %v6521_v18 = vor.u32 %v7402_v46, %v6518_v1  ;;  %v6617_v14 = vor.u32 %v7426_v3, %v6614_v4  ;;  %v6674_v46 = vld [vmem:[#allocation7 + $0x60c] sm:$0xf0] }
 0x172   : > { %3921 = vmatpush.bf16.msrb.mxu1 %v6221_v27  ;;  %v2082_v27 = vpop.f32.mrf.mxu3  ;;  %v5996_v1 = vld [vmem:[#allocation7 + $0xb0] sm:$0xf] }
 0x173   : > { %3934 = vmatpush.bf16.msrb.mxu2 %v6317_v36  ;;  %v6653_v36 = vor.u32 %v7435_v7, %v6650_v21  ;;  %v7447_v27 = vld [vmem:[#allocation7 + $0x634] sm:$0xf]  ;;  %v6092_v4 = vld [vmem:[#allocation7 + $0x170] sm:$0xf] }
 0x174   : > { %3947 = vmatpush.bf16.msrb.mxu3 %v6413_v41  ;;  %v7432_v41 = vld [vmem:[#allocation7 + $0x5bc] sm:$0xf] }
 0x175   : > { %3909 = vmatpush.bf16.msrb.mxu0 %v6113_v49  ;;  %v6734_v49 = vld [vmem:[#allocation7 + $0x684] sm:$0xf0]  ;;  %v6641_v53 = vor.u32 %v7432_v41, %v6638_v43  ;;  %v7420_v43 = vld [vmem:[#allocation7 + $0x55c] sm:$0xf] }
 0x176   : > { %3922 = vmatpush.bf16.msrb.mxu1 %v6209_v54  ;;  %v6530_v54 = vld [vmem:[#allocation7 + $0x4ec] sm:$0xf0]  ;;  %v6737_v55 = vor.u32 %v7456_v47, %v6734_v49 }
 0x177   : > { %3935 = vmatpush.bf16.msrb.mxu2 %v6305_v59  ;;  %v7453_v59 = vld [vmem:[#allocation7 + $0x664] sm:$0xf]  ;;  %v6533_v40 = vor.u32 %v7405_v33, %v6530_v54  ;;  %v6497_v54 = vor.u32 %v7396_v37, %v6494_v38  ;;  %v6272_v38 = vld [vmem:[#allocation7 + $0x2d8] sm:$0xf] }
 0x178   : > { %3948 = vmatpush.bf16.msrb.mxu3 %v6401_v62  ;;  %v6818_v62 = vld [vmem:[#allocation7 + $0x72c] sm:$0xf0] }
 0x179   : > { %3910 = vmatpush.bf16.msrb.mxu0 %v6101_v2  ;;  %v6725_v2 = vor.u32 %v7453_v59, %v6722_v60  ;;  %v2093_v10 = vpop.f32.mrf.mxu0  ;;  %v7417_v60 = vld [vmem:[#allocation7 + $0x544] sm:$0xf] }
 0x17a   : > { %3923 = vmatpush.bf16.msrb.mxu1 %v6197_v0  ;;  %v6821_v0 = vor.u32 %v7477_v61, %v6818_v62  ;;  %v2094_v12 = vadd.f32 %v2093_v10, %v8259_v57  ;;  %v2106_v42 = vpop.f32.mrf.mxu1  ;;  %v7471_v57 = vld [vmem:[#allocation7 + $0x6f4] sm:$0xf]  ;;  %v7441_v61 = vld [vmem:[#allocation7 + $0x604] sm:$0xf]  ;;  %v7296_v10 = vld [vmem:[#allocation7 + $0x178] sm:$0xf0] }
 0x17b   : > { %3936 = vmatpush.bf16.msrb.mxu2 %v6293_v8  ;;  %v7474_v8 = vld [vmem:[#allocation7 + $0x70c] sm:$0xf]  ;;  %v6797_v49 = vor.u32 %v7471_v57, %v6794_v34  ;;  %v6176_v57 = vld [vmem:[#allocation7 + $0x218] sm:$0xf]  ;;  %v7317_v34 = vld [vmem:[#allocation7 + $0x220] sm:$0xf0] }
 0x17c   : > { %3949 = vmatpush.bf16.msrb.mxu3 %v6389_v16  ;;  %3911 = vmatmul.bf16.vlgmr.msrb.gmra.mxu0 %v8214_v24  ;;  %v6506_v16 = vld [vmem:[#allocation7 + $0x4bc] sm:$0xf0]  ;;  %v2107_v7 = vadd.f32 %v2106_v42, %v2094_v12  ;;  %v6188_v12 = vld [vmem:[#allocation7 + $0x230] sm:$0xf] }
 0x17d   : > { %3955 = vmatpush.bf16.msra.mxu0 %v6569_v5  ;;  %3924 = vmatmul.bf16.vlgmr.msrb.gmra.mxu1 %v8216_v28  ;;  %v7450_v5 = vld [vmem:[#allocation7 + $0x64c] sm:$0xf]  ;;  %v6284_v42 = vld [vmem:[#allocation7 + $0x2f0] sm:$0xf] }
 0x17e   : > { %3968 = vmatpush.bf16.msra.mxu1 %v6665_v9  ;;  %3937 = vmatmul.bf16.vlgmr.msrb.gmra.mxu2 %v8230_v13  ;;  %v6806_v9 = vld [vmem:[#allocation7 + $0x714] sm:$0xf0]  ;;  %v6713_v21 = vor.u32 %v7450_v5, %v6710_v6  ;;  %v6485_v5 = vor.u32 %v7393_v56, %v6482_v35  ;;  %v6770_v6 = vld [vmem:[#allocation7 + $0x6cc] sm:$0xf0]  ;;  %v5960_v35 = vld [vmem:[#allocation7 + $0x68] sm:$0xf] }
 0x17f   : > { %3981 = vmatpush.bf16.msra.mxu2 %v6761_v15  ;;  %3950 = vmatmul.bf16.vlgmr.msrb.gmra.mxu3 %v8237_v30  ;;  %v7399_v15 = vld [vmem:[#allocation7 + $0x4b4] sm:$0xf]  ;;  %v6809_v26 = vor.u32 %v7474_v8, %v6806_v9 }
 0x180   : > { %3994 = vmatpush.bf16.msra.mxu3 %v6857_v23  ;;  %v7423_v23 = vld [vmem:[#allocation7 + $0x574] sm:$0xf]  ;;  %v6509_v31 = vor.u32 %v7399_v15, %v6506_v16  ;;  %v6677_v15 = vor.u32 %v7441_v61, %v6674_v46  ;;  %v6093_v16 = vor.u32 %v7296_v10, %v6092_v4  ;;  %v6152_v46 = vld [vmem:[#allocation7 + $0x1e8] sm:$0xf] }
 0x181   : > { %3956 = vmatpush.bf16.msra.mxu0 %v6557_v29  ;;  %v6698_v29 = vld [vmem:[#allocation7 + $0x63c] sm:$0xf0]  ;;  %v7287_v61 = vld [vmem:[#allocation7 + $0x130] sm:$0xf0] }
 0x182   : > { %3969 = vmatpush.bf16.msra.mxu1 %v6653_v36  ;;  %v6605_v36 = vor.u32 %v7423_v23, %v6602_v25  ;;  %v6701_v41 = vor.u32 %v7447_v27, %v6698_v29  ;;  %v2132_v33 = vpop.f32.mrf.mxu3  ;;  %v2108_v62 = vpop.f32.mrf.mxu1  ;;  %v6080_v27 = vld [vmem:[#allocation7 + $0x158] sm:$0xf]  ;;  %v7293_v29 = vld [vmem:[#allocation7 + $0x160] sm:$0xf0]  ;;  %v7335_v4 = vld [vmem:[#allocation7 + $0x2b0] sm:$0xf0] }
 0x183   : > { %3982 = vmatpush.bf16.msra.mxu2 %v6749_v39  ;;  %v2119_v39 = vpop.f32.mrf.mxu2  ;;  %v8275_v62 = vld [vmem:[%s8858_s4] sm:$0x7] }
 0x184   : > { %3995 = vmatpush.bf16.msra.mxu3 %v6845_v45  ;;  %v6590_v45 = vld [vmem:[#allocation7 + $0x564] sm:$0xf0]  ;;  %v2120_v47 = vadd.f32 %v2119_v39, %v2107_v7  ;;  %v5984_v7 = vld [vmem:[#allocation7 + $0x98] sm:$0xf]  ;;  %v7341_v39 = vld [vmem:[#allocation7 + $0x2e0] sm:$0xf0] }
 0x185   : > { %3957 = vmatpush.bf16.msra.mxu0 %v6545_v50  ;;  %v7444_v50 = vld [vmem:[#allocation7 + $0x61c] sm:$0xf]  ;;  %v6593_v59 = vor.u32 %v7420_v43, %v6590_v45  ;;  %v5972_v43 = vld [vmem:[#allocation7 + $0x80] sm:$0xf]  ;;  %v7266_v45 = vld [vmem:[#allocation7 + $0x88] sm:$0xf0] }
 0x186   : > { %3970 = vmatpush.bf16.msra.mxu1 %v6641_v53  ;;  %v2095_v53 = vpop.f32.mrf.mxu0 }
 0x187   : > { %3983 = vmatpush.bf16.msra.mxu2 %v6737_v55  ;;  %v6782_v55 = vld [vmem:[#allocation7 + $0x6e4] sm:$0xf0]  ;;  %v7314_v53 = vld [vmem:[#allocation7 + $0x208] sm:$0xf0] }
 0x188   : > { %3996 = vmatpush.bf16.msra.mxu3 %v6833_v58  ;;  %v8266_v58 = vadd.f32 %v2132_v33, %v2120_v47  ;;  %v6785_v3 = vor.u32 %v7468_v52, %v6782_v55  ;;  %v6177_v47 = vor.u32 %v7317_v34, %v6176_v57  ;;  %v6164_v52 = vld [vmem:[#allocation7 + $0x200] sm:$0xf]  ;;  %v5973_v33 = vor.u32 %v7266_v45, %v5972_v43  ;;  %v7338_v55 = vld [vmem:[#allocation7 + $0x2c8] sm:$0xf0]  ;;  %v7281_v57 = vld [vmem:[#allocation7 + $0x100] sm:$0xf0] }
 0x189   : > { %3958 = vmatpush.bf16.msra.mxu0 %v6533_v40  ;;  %v6578_v40 = vld [vmem:[#allocation7 + $0x54c] sm:$0xf0]  ;;  %v7329_v43 = vld [vmem:[#allocation7 + $0x280] sm:$0xf0] }
 0x18a   : > { %3971 = vmatpush.bf16.msra.mxu1 %v6629_v63  ;;  %v6689_v63 = vor.u32 %v7444_v50, %v6686_v51  ;;  %v6581_v8 = vor.u32 %v7417_v60, %v6578_v40  ;;  %v7290_v50 = vld [vmem:[#allocation7 + $0x148] sm:$0xf0]  ;;  %v6273_v51 = vor.u32 %v7341_v39, %v6272_v38  ;;  %v6165_v60 = vor.u32 %v7314_v53, %v6164_v52  ;;  %v6056_v40 = vld [vmem:[#allocation7 + $0x128] sm:$0xf]  ;;  %v6020_v52 = vld [vmem:[#allocation7 + $0xe0] sm:$0xf] }
 0x18b   : > { %3984 = vmatpush.bf16.msra.mxu2 %v6725_v2  ;;  %v7272_v2 = vld [vmem:[#allocation7 + $0xb8] sm:$0xf0]  ;;  %v2121_v23 = vpop.f32.mrf.mxu2  ;;  %v6057_v10 = vor.u32 %v7287_v61, %v6056_v40  ;;  %v7278_v53 = vld [vmem:[#allocation7 + $0xe8] sm:$0xf0]  ;;  %v6212_v40 = vld [vmem:[#allocation7 + $0x260] sm:$0xf] }
 0x18c   : > { %3997 = vmatpush.bf16.msra.mxu3 %v6821_v0  ;;  %v7465_v0 = vld [vmem:[#allocation7 + $0x6c4] sm:$0xf]  ;;  %v5997_v9 = vor.u32 %v7272_v2, %v5996_v1  ;;  %v7311_v1 = vld [vmem:[#allocation7 + $0x1f0] sm:$0xf0]  ;;  %v7326_v61 = vld [vmem:[#allocation7 + $0x268] sm:$0xf0] }
 0x18d   : > { %3959 = vmatpush.bf16.msra.mxu0 %v6521_v18  ;;  %v7320_v18 = vld [vmem:[#allocation7 + $0x238] sm:$0xf0]  ;;  %v6773_v25 = vor.u32 %v7465_v0, %v6770_v6  ;;  %v5948_v0 = vld [vmem:[#allocation7 + $0x50] sm:$0xf]  ;;  %v2461_v6 = vperm.slane %v8275_v62, 0 }
 0x18e   : > { %3972 = vmatpush.bf16.msra.mxu1 %v6617_v14  ;;  %v7344_v14 = vld [vmem:[#allocation7 + $0x2f8] sm:$0xf0] }
 0x18f   : > { %3985 = vmatpush.bf16.msra.mxu2 %v6713_v21  ;;  %v7269_v21 = vld [vmem:[#allocation7 + $0xa0] sm:$0xf0] }
 0x190   : > { %3998 = vmatpush.bf16.msra.mxu3 %v6809_v26  ;;  %v6189_v26 = vor.u32 %v7320_v18, %v6188_v12  ;;  %v5985_v37 = vor.u32 %v7269_v21, %v5984_v7  ;;  %v6153_v12 = vor.u32 %v7311_v1, %v6152_v46  ;;  %v6044_v18 = vld [vmem:[#allocation7 + $0x110] sm:$0xf]  ;;  %v7332_v7 = vld [vmem:[#allocation7 + $0x298] sm:$0xf0] }
 0x191   : > { %3960 = vmatpush.bf16.msra.mxu0 %v6509_v31  ;;  %v6285_v31 = vor.u32 %v7344_v14, %v6284_v42  ;;  %v6140_v42 = vld [vmem:[#allocation7 + $0x1d0] sm:$0xf]  ;;  %v7308_v14 = vld [vmem:[#allocation7 + $0x1d8] sm:$0xf0] }
 0x192   : > { %3973 = vmatpush.bf16.msra.mxu1 %v6605_v36  ;;  %v2134_v36 = vpop.f32.mrf.mxu3 }
 0x193   : > { %3986 = vmatpush.bf16.msra.mxu2 %v6701_v41  ;;  %v6081_v41 = vor.u32 %v7293_v29, %v6080_v27  ;;  %v6141_v29 = vor.u32 %v7308_v14, %v6140_v42  ;;  %v6128_v36 = vld [vmem:[#allocation7 + $0x1b8] sm:$0xf]  ;;  %v7299_v42 = vld [vmem:[#allocation7 + $0x190] sm:$0xf0]  ;;  %v6572_v14 = vld [vmem:[#allocation7 + $0x530] sm:$0xf] }
 0x194   : > { %3999 = vmatpush.bf16.msra.mxu3 %v6797_v49  ;;  %v6068_v49 = vld [vmem:[#allocation7 + $0x140] sm:$0xf] }
 0x195   : > { %3961 = vmatpush.bf16.msra.mxu0 %v6497_v54  ;;  %v6260_v54 = vld [vmem:[#allocation7 + $0x2c0] sm:$0xf]  ;;  %v6069_v56 = vor.u32 %v7290_v50, %v6068_v49  ;;  %v7254_v50 = vld [vmem:[#allocation7 + $0x28] sm:$0xf0] }
 0x196   : > { %3974 = vmatpush.bf16.msra.mxu1 %v6593_v59  ;;  %v7263_v59 = vld [vmem:[#allocation7 + $0x70] sm:$0xf0]  ;;  %v5924_v49 = vld [vmem:[#allocation7 + $0x20] sm:$0xf] }
 0x197   : > { %3987 = vmatpush.bf16.msra.mxu2 %v6689_v63  ;;  %v6261_v63 = vor.u32 %v7338_v55, %v6260_v54  ;;  %v5961_v2 = vor.u32 %v7263_v59, %v5960_v35  ;;  %v6116_v54 = vld [vmem:[#allocation7 + $0x1a0] sm:$0xf]  ;;  %v7302_v55 = vld [vmem:[#allocation7 + $0x1a8] sm:$0xf0]  ;;  %v5925_v59 = vor.u32 %v7254_v50, %v5924_v49  ;;  %v7413_v49 = vld [vmem:[#allocation7 + $0x520] sm:$0xf0] }
 0x198   : > { %4000 = vmatpush.bf16.msra.mxu3 %v6785_v3  ;;  %v6248_v3 = vld [vmem:[#allocation7 + $0x2a8] sm:$0xf] }
 0x199   : > { %3962 = vmatpush.bf16.msra.mxu0 %v6485_v5  ;;  %v7260_v5 = vld [vmem:[#allocation7 + $0x58] sm:$0xf0]  ;;  %v3756_v21 = vpop.f32.mrf.mxu0 }
 0x19a   : > { %3975 = vmatpush.bf16.msra.mxu1 %v6581_v8  ;;  %v7284_v8 = vld [vmem:[#allocation7 + $0x118] sm:$0xf0]  ;;  %v3757_v27 = vadd.f32 %v3756_v21, %v2461_v6  ;;  %v3769_v38 = vpop.f32.mrf.mxu1  ;;  %v6476_v6 = vld [vmem:[#allocation7 + $0x470] sm:$0xf]  ;;  %v6200_v21 = vld [vmem:[#allocation7 + $0x248] sm:$0xf] }
 0x19b   : > { %3988 = vmatpush.bf16.msra.mxu2 %v6677_v15  ;;  %v5949_v15 = vor.u32 %v7260_v5, %v5948_v0  ;;  %v6045_v23 = vor.u32 %v7284_v8, %v6044_v18  ;;  %v6117_v0 = vor.u32 %v7302_v55, %v6116_v54  ;;  %v7368_v5 = vld [vmem:[#allocation7 + $0x3b8] sm:$0xf0]  ;;  %v6213_v8 = vor.u32 %v7326_v61, %v6212_v40  ;;  %v6356_v54 = vld [vmem:[#allocation7 + $0x380] sm:$0xf]  ;;  %v7362_v55 = vld [vmem:[#allocation7 + $0x388] sm:$0xf0] }
 0x19c   : > { %4001 = vmatpush.bf16.msra.mxu3 %v6773_v25  ;;  %3963 = vmatmul.bf16.vlgmr.msra.gmra.mxu0 %v8233_v17  ;;  %v5936_v25 = vld [vmem:[#allocation7 + $0x38] sm:$0xf]  ;;  %v3770_v45 = vadd.f32 %v3769_v38, %v3757_v27  ;;  %v6668_v27 = vld [vmem:[#allocation7 + $0x5f0] sm:$0xf]  ;;  %v6548_v40 = vld [vmem:[#allocation7 + $0x500] sm:$0xf] }
 0x19d   : > { %4007 = vmatpush.bf16.msrb.mxu0 %v5997_v9  ;;  %3976 = vmatmul.bf16.vlgmr.msra.gmra.mxu1 %v8235_v22  ;;  %v6249_v9 = vor.u32 %v7335_v4, %v6248_v3  ;;  %v6008_v3 = vld [vmem:[#allocation7 + $0xc8] sm:$0xf]  ;;  %v7275_v4 = vld [vmem:[#allocation7 + $0xd0] sm:$0xf0]  ;;  %v7410_v61 = vld [vmem:[#allocation7 + $0x508] sm:$0xf0] }
 0x19e   : > { %4020 = vmatpush.bf16.msrb.mxu1 %v6093_v16  ;;  %3989 = vmatmul.bf16.vlgmr.msra.gmra.mxu2 %v8248_v11  ;;  %v6236_v16 = vld [vmem:[#allocation7 + $0x290] sm:$0xf] }
 0x19f   : > { %4033 = vmatpush.bf16.msrb.mxu2 %v6189_v26  ;;  %4002 = vmatmul.bf16.vlgmr.msra.gmra.mxu3 %v8250_v19  ;;  %v7257_v26 = vld [vmem:[#allocation7 + $0x40] sm:$0xf0]  ;;  %v6237_v34 = vor.u32 %v7332_v7, %v6236_v16  ;;  %v7416_v7 = vld [vmem:[#allocation7 + $0x538] sm:$0xf0] }
 0x1a0   : > { %4046 = vmatpush.bf16.msrb.mxu3 %v6285_v31  ;;  %v6032_v31 = vld [vmem:[#allocation7 + $0xf8] sm:$0xf]  ;;  %v5937_v39 = vor.u32 %v7257_v26, %v5936_v25  ;;  %v6009_v25 = vor.u32 %v7275_v4, %v6008_v3  ;;  %v6344_v3 = vld [vmem:[#allocation7 + $0x368] sm:$0xf]  ;;  %v7359_v4 = vld [vmem:[#allocation7 + $0x370] sm:$0xf0] }
 0x1a1   : > { %4008 = vmatpush.bf16.msrb.mxu0 %v5985_v37  ;;  %v7305_v37 = vld [vmem:[#allocation7 + $0x1c0] sm:$0xf0]  ;;  %v3782_v35 = vpop.f32.mrf.mxu2  ;;  %v3758_v1 = vpop.f32.mrf.mxu0 }
 0x1a2   : > { %4021 = vmatpush.bf16.msrb.mxu1 %v6081_v41  ;;  %v6224_v41 = vld [vmem:[#allocation7 + $0x278] sm:$0xf]  ;;  %v3795_v46 = vpop.f32.mrf.mxu3  ;;  %v7434_v1 = vld [vmem:[#allocation7 + $0x5c8] sm:$0xf0] }
 0x1a3   : > { %4034 = vmatpush.bf16.msrb.mxu2 %v6177_v47  ;;  %v6033_v47 = vor.u32 %v7281_v57, %v6032_v31 }
 0x1a4   : > { %4047 = vmatpush.bf16.msrb.mxu3 %v6273_v51  ;;  %v6129_v51 = vor.u32 %v7305_v37, %v6128_v36  ;;  %v7365_v36 = vld [vmem:[#allocation7 + $0x3a0] sm:$0xf0]  ;;  %v6573_v37 = vor.u32 %v7416_v7, %v6572_v14  ;;  %v6332_v14 = vld [vmem:[#allocation7 + $0x350] sm:$0xf]  ;;  %v7380_v7 = vld [vmem:[#allocation7 + $0x418] sm:$0xf0] }
 0x1a5   : > { %4009 = vmatpush.bf16.msrb.mxu0 %v5973_v33  ;;  %v6225_v33 = vor.u32 %v7329_v43, %v6224_v41  ;;  %v7389_v41 = vld [vmem:[#allocation7 + $0x460] sm:$0xf0] }
 0x1a6   : > { %4022 = vmatpush.bf16.msrb.mxu1 %v6069_v56  ;;  %v5912_v56 = vld [vmem:[#allocation7 + $0x8] sm:$0xf] }
 0x1a7   : > { %4035 = vmatpush.bf16.msrb.mxu2 %v6165_v60  ;;  %v7251_v60 = vld [vmem:[#allocation7 + $0x10] sm:$0xf0] }
 0x1a8   : > { %4048 = vmatpush.bf16.msrb.mxu3 %v6261_v63  ;;  %v3783_v63 = vadd.f32 %v3782_v35, %v3770_v45  ;;  %v5913_v16 = vor.u32 %v7251_v60, %v5912_v56  ;;  %v6452_v35 = vld [vmem:[#allocation7 + $0x440] sm:$0xf] }
 0x1a9   : > { %4010 = vmatpush.bf16.msrb.mxu0 %v5961_v2  ;;  %v6021_v2 = vor.u32 %v7278_v53, %v6020_v52  ;;  %v3784_v43 = vpop.f32.mrf.mxu2  ;;  %v6656_v52 = vld [vmem:[#allocation7 + $0x5d8] sm:$0xf]  ;;  %v7437_v53 = vld [vmem:[#allocation7 + $0x5e0] sm:$0xf0] }
 0x1aa   : > { %4023 = vmatpush.bf16.msrb.mxu1 %v6057_v10  ;;  %v6380_v10 = vld [vmem:[#allocation7 + $0x3b0] sm:$0xf]  ;;  %v8278_v18 = vadd.f32 %v3795_v46, %v3783_v63  ;;  %v3797_v50 = vpop.f32.mrf.mxu3  ;;  %v6657_v60 = vor.u32 %v7437_v53, %v6656_v52  ;;  %v6357_v63 = vor.u32 %v7362_v55, %v6356_v54  ;;  %v6644_v46 = vld [vmem:[#allocation7 + $0x5c0] sm:$0xf]  ;;  %v7425_v52 = vld [vmem:[#allocation7 + $0x580] sm:$0xf0] }
 0x1ab   : > { %4036 = vmatpush.bf16.msrb.mxu2 %v6153_v12  ;;  %v7392_v12 = vld [vmem:[#allocation7 + $0x478] sm:$0xf0]  ;;  %v6381_v26 = vor.u32 %v7368_v5, %v6380_v10  ;;  %v6549_v10 = vor.u32 %v7410_v61, %v6548_v40  ;;  %v7383_v5 = vld [vmem:[#allocation7 + $0x430] sm:$0xf0]  ;;  %v6404_v55 = vld [vmem:[#allocation7 + $0x3e0] sm:$0xf] }
 0x1ac   : > { %4049 = vmatpush.bf16.msrb.mxu3 %v6249_v9  ;;  %v6104_v9 = vld [vmem:[#allocation7 + $0x188] sm:$0xf]  ;;  %v6477_v31 = vor.u32 %v7392_v12, %v6476_v6  ;;  %v7407_v12 = vld [vmem:[#allocation7 + $0x4f0] sm:$0xf0]  ;;  %v7398_v40 = vld [vmem:[#allocation7 + $0x4a8] sm:$0xf0] }
 0x1ad   : > { %4011 = vmatpush.bf16.msrb.mxu0 %v5949_v15  ;;  %v3771_v15 = vpop.f32.mrf.mxu1  ;;  %v6105_v57 = vor.u32 %v7299_v42, %v6104_v9  ;;  %v6536_v6 = vld [vmem:[#allocation7 + $0x4e8] sm:$0xf] }
 0x1ae   : > { %4024 = vmatpush.bf16.msrb.mxu1 %v6045_v23  ;;  %v7323_v23 = vld [vmem:[#allocation7 + $0x250] sm:$0xf0]  ;;  %v6632_v9 = vld [vmem:[#allocation7 + $0x5a8] sm:$0xf]  ;;  %v7356_v15 = vld [vmem:[#allocation7 + $0x358] sm:$0xf0] }
 0x1af   : > { %4037 = vmatpush.bf16.msrb.mxu2 %v6141_v29  ;;  %v7440_v29 = vld [vmem:[#allocation7 + $0x5f8] sm:$0xf0]  ;;  %v6201_v38 = vor.u32 %v7323_v23, %v6200_v21  ;;  %v6524_v23 = vld [vmem:[#allocation7 + $0x4d0] sm:$0xf] }
 0x1b0   : > { %4050 = vmatpush.bf16.msrb.mxu3 %v6237_v34  ;;  %v6368_v34 = vld [vmem:[#allocation7 + $0x398] sm:$0xf]  ;;  %v6669_v45 = vor.u32 %v7440_v29, %v6668_v27  ;;  %v6620_v27 = vld [vmem:[#allocation7 + $0x590] sm:$0xf]  ;;  %v7428_v29 = vld [vmem:[#allocation7 + $0x598] sm:$0xf0] }
 0x1b1   : > { %4012 = vmatpush.bf16.msrb.mxu0 %v5937_v39  ;;  %v6464_v39 = vld [vmem:[#allocation7 + $0x458] sm:$0xf]  ;;  %v6621_v43 = vor.u32 %v7428_v29, %v6620_v27 }
 0x1b2   : > { %4025 = vmatpush.bf16.msrb.mxu1 %v6033_v47  ;;  %v6560_v47 = vld [vmem:[#allocation7 + $0x518] sm:$0xf] }
 0x1b3   : > { %4038 = vmatpush.bf16.msrb.mxu2 %v6129_v51  ;;  %v6369_v51 = vor.u32 %v7365_v36, %v6368_v34  ;;  %v6561_v56 = vor.u32 %v7413_v49, %v6560_v47  ;;  %v6320_v34 = vld [vmem:[#allocation7 + $0x338] sm:$0xf]  ;;  %v7353_v36 = vld [vmem:[#allocation7 + $0x340] sm:$0xf0] }
 0x1b4   : > { %4051 = vmatpush.bf16.msrb.mxu3 %v6225_v33  ;;  %v6465_v33 = vor.u32 %v7389_v41, %v6464_v39  ;;  %v7377_v39 = vld [vmem:[#allocation7 + $0x400] sm:$0xf0]  ;;  %v6321_v50 = vor.u32 %v7353_v36, %v6320_v34  ;;  %v6752_v29 = vld [vmem:[#allocation7 + $0x698] sm:$0xf] }
 0x1b5   : > { %4013 = vmatpush.bf16.msrb.mxu0 %v5925_v59  ;;  %v7386_v59 = vld [vmem:[#allocation7 + $0x448] sm:$0xf0]  ;;  %v7401_v47 = vld [vmem:[#allocation7 + $0x4c0] sm:$0xf0]  ;;  %v6848_v34 = vld [vmem:[#allocation7 + $0x758] sm:$0xf] }
 0x1b6   : > { %4026 = vmatpush.bf16.msrb.mxu1 %v6021_v2  ;;  %v6453_v2 = vor.u32 %v7386_v59, %v6452_v35  ;;  %v7485_v36 = vld [vmem:[#allocation7 + $0x760] sm:$0xf0] }
 0x1b7   : > { %4039 = vmatpush.bf16.msrb.mxu2 %v6117_v0  ;;  %v6440_v0 = vld [vmem:[#allocation7 + $0x428] sm:$0xf] }
 0x1b8   : > { %4052 = vmatpush.bf16.msrb.mxu3 %v6213_v8  ;;  %v6345_v8 = vor.u32 %v7359_v4, %v6344_v3  ;;  %v6441_v42 = vor.u32 %v7383_v5, %v6440_v0  ;;  %v7422_v3 = vld [vmem:[#allocation7 + $0x568] sm:$0xf0]  ;;  %v7347_v0 = vld [vmem:[#allocation7 + $0x310] sm:$0xf0]  ;;  %v6392_v5 = vld [vmem:[#allocation7 + $0x3c8] sm:$0xf] }
 0x1b9   : > { %4014 = vmatpush.bf16.msrb.mxu0 %v5913_v16  ;;  %v6428_v16 = vld [vmem:[#allocation7 + $0x410] sm:$0xf] }
 0x1ba   : > { %4027 = vmatpush.bf16.msrb.mxu1 %v6009_v25  ;;  %v6333_v25 = vor.u32 %v7356_v15, %v6332_v14  ;;  %v3821_v41 = vpop.f32.mrf.mxu1  ;;  %v7488_v14 = vld [vmem:[#allocation7 + $0x778] sm:$0xf0]  ;;  %v6488_v15 = vld [vmem:[#allocation7 + $0x488] sm:$0xf] }
 0x1bb   : > { %4040 = vmatpush.bf16.msrb.mxu2 %v6105_v57 }
 0x1bc   : > { %4053 = vmatpush.bf16.msrb.mxu3 %v6201_v38  ;;  %4015 = vmatmul.bf16.vlgmr.msrb.gmra.mxu0 %v8211_v20  ;;  %v6645_v20 = vor.u32 %v7434_v1, %v6644_v46  ;;  %v6416_v38 = vld [vmem:[#allocation7 + $0x3f8] sm:$0xf]  ;;  %v6296_v1 = vld [vmem:[#allocation7 + $0x308] sm:$0xf] }
 0x1bd   : > { %4059 = vmatpush.bf16.msra.mxu0 %v6381_v26  ;;  %4028 = vmatmul.bf16.vlgmr.msrb.gmra.mxu1 %v8218_v32  ;;  %v7404_v32 = vld [vmem:[#allocation7 + $0x4d8] sm:$0xf0]  ;;  %v3808_v26 = vpop.f32.mrf.mxu0  ;;  %v6417_v53 = vor.u32 %v7377_v39, %v6416_v38 }
 0x1be   : > { %4072 = vmatpush.bf16.msra.mxu1 %v6477_v31  ;;  %4041 = vmatmul.bf16.vlgmr.msrb.gmra.mxu2 %v8214_v24  ;;  %v7431_v24 = vld [vmem:[#allocation7 + $0x5b0] sm:$0xf0]  ;;  %v6429_v31 = vor.u32 %v7380_v7, %v6428_v16  ;;  %v3809_v57 = vadd.f32 %v3808_v26, %v8278_v18  ;;  %v7350_v18 = vld [vmem:[#allocation7 + $0x328] sm:$0xf0]  ;;  %v6297_v7 = vor.u32 %v7347_v0, %v6296_v1  ;;  %v7473_v1 = vld [vmem:[#allocation7 + $0x700] sm:$0xf0] }
 0x1bf   : > { %4085 = vmatpush.bf16.msra.mxu2 %v6573_v37  ;;  %4054 = vmatmul.bf16.vlgmr.msrb.gmra.mxu3 %v8216_v28  ;;  %v6537_v28 = vor.u32 %v7407_v12, %v6536_v6  ;;  %v6633_v21 = vor.u32 %v7431_v24, %v6632_v9  ;;  %v6525_v37 = vor.u32 %v7404_v32, %v6524_v23  ;;  %v7464_v9 = vld [vmem:[#allocation7 + $0x6b8] sm:$0xf0]  ;;  %v6860_v24 = vld [vmem:[#allocation7 + $0x770] sm:$0xf]  ;;  %v7419_v23 = vld [vmem:[#allocation7 + $0x550] sm:$0xf0] }
 0x1c0   : > { %4098 = vmatpush.bf16.msra.mxu3 %v6669_v45  ;;  %v6512_v45 = vld [vmem:[#allocation7 + $0x4b8] sm:$0xf]  ;;  %v3822_v49 = vadd.f32 %v3821_v41, %v3809_v57  ;;  %v6861_v26 = vor.u32 %v7488_v14, %v6860_v24  ;;  %v6849_v41 = vor.u32 %v7485_v36, %v6848_v34  ;;  %v7446_v0 = vld [vmem:[#allocation7 + $0x628] sm:$0xf0]  ;;  %v6680_v24 = vld [vmem:[#allocation7 + $0x608] sm:$0xf] }
 0x1c1   : > { %4060 = vmatpush.bf16.msra.mxu0 %v6369_v51  ;;  %v6608_v51 = vld [vmem:[#allocation7 + $0x578] sm:$0xf]  ;;  %v6513_v54 = vor.u32 %v7401_v47, %v6512_v45  ;;  %v3834_v35 = vpop.f32.mrf.mxu2  ;;  %v7458_v45 = vld [vmem:[#allocation7 + $0x688] sm:$0xf0]  ;;  %v6836_v47 = vld [vmem:[#allocation7 + $0x740] sm:$0xf] }
 0x1c2   : > { %4073 = vmatpush.bf16.msra.mxu1 %v6465_v33  ;;  %v6308_v33 = vld [vmem:[#allocation7 + $0x320] sm:$0xf]  ;;  %v6609_v59 = vor.u32 %v7425_v52, %v6608_v51  ;;  %v3835_v61 = vadd.f32 %v3834_v35, %v3822_v49  ;;  %v3823_v16 = vpop.f32.mrf.mxu1  ;;  %v7482_v49 = vld [vmem:[#allocation7 + $0x748] sm:$0xf0]  ;;  %v6728_v52 = vld [vmem:[#allocation7 + $0x668] sm:$0xf] }
 0x1c3   : > { %4086 = vmatpush.bf16.msra.mxu2 %v6561_v56  ;;  %v7374_v56 = vld [vmem:[#allocation7 + $0x3e8] sm:$0xf0]  ;;  %v6309_v46 = vor.u32 %v7350_v18, %v6308_v33  ;;  %v6837_v51 = vor.u32 %v7482_v49, %v6836_v47  ;;  %v6824_v33 = vld [vmem:[#allocation7 + $0x728] sm:$0xf]  ;;  %v7479_v18 = vld [vmem:[#allocation7 + $0x730] sm:$0xf0] }
 0x1c4   : > { %4099 = vmatpush.bf16.msra.mxu3 %v6657_v60  ;;  %v6500_v60 = vld [vmem:[#allocation7 + $0x4a0] sm:$0xf]  ;;  %v6812_v35 = vld [vmem:[#allocation7 + $0x710] sm:$0xf]  ;;  %v7467_v16 = vld [vmem:[#allocation7 + $0x6d0] sm:$0xf0] }
 0x1c5   : > { %4061 = vmatpush.bf16.msra.mxu0 %v6357_v63  ;;  %v3847_v63 = vpop.f32.mrf.mxu3  ;;  %v3810_v4 = vpop.f32.mrf.mxu0  ;;  %v6501_v12 = vor.u32 %v7398_v40, %v6500_v60 }
 0x1c6   : > { %4074 = vmatpush.bf16.msra.mxu1 %v6453_v2  ;;  %v6596_v2 = vld [vmem:[#allocation7 + $0x560] sm:$0xf]  ;;  %v8285_v6 = vadd.f32 %v3847_v63, %v3835_v61  ;;  %v6704_v61 = vld [vmem:[#allocation7 + $0x638] sm:$0xf]  ;;  %v7449_v63 = vld [vmem:[#allocation7 + $0x640] sm:$0xf0] }
 0x1c7   : > { %4087 = vmatpush.bf16.msra.mxu2 %v6549_v10  ;;  %v6405_v10 = vor.u32 %v7374_v56, %v6404_v55  ;;  %v6716_v55 = vld [vmem:[#allocation7 + $0x650] sm:$0xf]  ;;  %v7452_v56 = vld [vmem:[#allocation7 + $0x658] sm:$0xf0] }
 0x1c8   : > { %4100 = vmatpush.bf16.msra.mxu3 %v6645_v20  ;;  %v7371_v20 = vld [vmem:[#allocation7 + $0x3d0] sm:$0xf0] }
 0x1c9   : > { %4062 = vmatpush.bf16.msra.mxu0 %v6345_v8  ;;  %v6764_v8 = vld [vmem:[#allocation7 + $0x6b0] sm:$0xf]  ;;  %v6393_v32 = vor.u32 %v7371_v20, %v6392_v5  ;;  %v6788_v5 = vld [vmem:[#allocation7 + $0x6e0] sm:$0xf]  ;;  %v7470_v20 = vld [vmem:[#allocation7 + $0x6e8] sm:$0xf0] }
 0x1ca   : > { %4075 = vmatpush.bf16.msra.mxu1 %v6441_v42  ;;  %v6597_v42 = vor.u32 %v7422_v3, %v6596_v2  ;;  %v6705_v3 = vor.u32 %v7449_v63, %v6704_v61 }
 0x1cb   : > { %4088 = vmatpush.bf16.msra.mxu2 %v6537_v28  ;;  %v7395_v28 = vld [vmem:[#allocation7 + $0x490] sm:$0xf0] }
 0x1cc   : > { %4101 = vmatpush.bf16.msra.mxu3 %v6633_v21  ;;  %v6584_v21 = vld [vmem:[#allocation7 + $0x548] sm:$0xf]  ;;  %v6489_v27 = vor.u32 %v7395_v28, %v6488_v15 }
 0x1cd   : > { %4063 = vmatpush.bf16.msra.mxu0 %v6333_v25  ;;  %v6765_v25 = vor.u32 %v7464_v9, %v6764_v8  ;;  %v6585_v57 = vor.u32 %v7419_v23, %v6584_v21  ;;  %v3849_v38 = vpop.f32.mrf.mxu3  ;;  %v6789_v9 = vor.u32 %v7470_v20, %v6788_v5  ;;  %v6776_v28 = vld [vmem:[#allocation7 + $0x6c8] sm:$0xf] }
 0x1ce   : > { %4076 = vmatpush.bf16.msra.mxu1 %v6429_v31  ;;  %v7461_v31 = vld [vmem:[#allocation7 + $0x6a0] sm:$0xf0]  ;;  %v6777_v21 = vor.u32 %v7467_v16, %v6776_v28 }
 0x1cf   : > { %4089 = vmatpush.bf16.msra.mxu2 %v6525_v37  ;;  %v3836_v37 = vpop.f32.mrf.mxu2  ;;  %v6753_v39 = vor.u32 %v7461_v31, %v6752_v29 }
 0x1d0   : > { %4102 = vmatpush.bf16.msra.mxu3 %v6621_v43  ;;  %v6740_v43 = vld [vmem:[#allocation7 + $0x680] sm:$0xf] }
 0x1d1   : > { %4064 = vmatpush.bf16.msra.mxu0 %v6321_v50  ;;  %v6741_v50 = vor.u32 %v7458_v45, %v6740_v43 }
 0x1d2   : > { %4077 = vmatpush.bf16.msra.mxu1 %v6417_v53  ;;  %v7455_v53 = vld [vmem:[#allocation7 + $0x670] sm:$0xf0] }
 0x1d3   : > { %4090 = vmatpush.bf16.msra.mxu2 %v6513_v54  ;;  %v6729_v54 = vor.u32 %v7455_v53, %v6728_v52 }
 0x1d4   : > { %4103 = vmatpush.bf16.msra.mxu3 %v6609_v59 }
 0x1d5   : > { %4065 = vmatpush.bf16.msra.mxu0 %v6309_v46  ;;  %v6800_v46 = vld [vmem:[#allocation7 + $0x6f8] sm:$0xf] }
 0x1d6   : > { %4078 = vmatpush.bf16.msra.mxu1 %v6405_v10  ;;  %v6801_v4 = vor.u32 %v7473_v1, %v6800_v46  ;;  %v6692_v10 = vld [vmem:[#allocation7 + $0x620] sm:$0xf] }
 0x1d7   : > { %4091 = vmatpush.bf16.msra.mxu2 %v6501_v12  ;;  %v6693_v12 = vor.u32 %v7446_v0, %v6692_v10 }
 0x1d8   : > { %4104 = vmatpush.bf16.msra.mxu3 %v6597_v42  ;;  %v7443_v42 = vld [vmem:[#allocation7 + $0x610] sm:$0xf0] }
 0x1d9   : > { %4066 = vmatpush.bf16.msra.mxu0 %v6297_v7  ;;  %v3860_v59 = vpop.f32.mrf.mxu0  ;;  %v6681_v7 = vor.u32 %v7443_v42, %v6680_v24 }
 0x1da   : > { %4079 = vmatpush.bf16.msra.mxu1 %v6393_v32  ;;  %v3861_v60 = vadd.f32 %v3860_v59, %v8285_v6 }
 0x1db   : > { %4092 = vmatpush.bf16.msra.mxu2 %v6489_v27 }
 0x1dc   : > { %4105 = vmatpush.bf16.msra.mxu3 %v6585_v57  ;;  %4067 = vmatmul.bf16.vlgmr.msra.gmra.mxu0 %v8230_v13  ;;  %v6825_v13 = vor.u32 %v7479_v18, %v6824_v33 }
 0x1dd   : > { %4111 = vmatpush.bf16.msrb.mxu0 %v6765_v25  ;;  %4080 = vmatmul.bf16.vlgmr.msra.gmra.mxu1 %v8237_v30  ;;  %v7476_v30 = vld [vmem:[#allocation7 + $0x718] sm:$0xf0] }
 0x1de   : > { %4124 = vmatpush.bf16.msrb.mxu1 %v6861_v26  ;;  %4093 = vmatmul.bf16.vlgmr.msra.gmra.mxu2 %v8233_v17  ;;  %v6717_v17 = vor.u32 %v7452_v56, %v6716_v55  ;;  %v6813_v40 = vor.u32 %v7476_v30, %v6812_v35  ;;  %v2462_v26 = vperm.slane %v8275_v62, 1 }
 0x1df   : > { %4106 = vmatmul.bf16.vlgmr.msra.gmra.mxu3 %v8235_v22  ;;  %v3873_v22 = vpop.f32.mrf.mxu1 }
 0x1e0   : > { %v3874_v2 = vadd.f32 %v3873_v22, %v3861_v60 }
 0x1e1   : > { %4112 = vmatpush.bf16.msrb.mxu0 %v6753_v39  ;;  %v3862_v8 = vpop.f32.mrf.mxu0  ;;  %v3886_v6 = vpop.f32.mrf.mxu2 }
 0x1e2   : > { %4125 = vmatpush.bf16.msrb.mxu1 %v6849_v41  ;;  %v3899_v15 = vpop.f32.mrf.mxu3  ;;  %v3887_v29 = vadd.f32 %v3886_v6, %v2462_v26  ;;  %v8298_v55 = vmax.f32 %v3874_v2, 0.0  ;;  %v2463_v2 = vperm.slane %v8275_v62, 2 }
 0x1e4   : > { %v3900_v36 = vadd.f32 %v3899_v15, %v3887_v29 }
 0x1e5   : > { %4113 = vmatpush.bf16.msrb.mxu0 %v6741_v50 }
 0x1e6   : > { %4126 = vmatpush.bf16.msrb.mxu1 %v6837_v51 }
 0x1e7   : > { %v3875_v14 = vpop.f32.mrf.mxu1 }
 0x1e9   : > { %4114 = vmatpush.bf16.msrb.mxu0 %v6729_v54  ;;  %v3888_v23 = vpop.f32.mrf.mxu2 }
 0x1ea   : > { %4127 = vmatpush.bf16.msrb.mxu1 %v6825_v13  ;;  %v3901_v32 = vpop.f32.mrf.mxu3  ;;  %v8296_v13 = vmax.f32 %v8206_v44, 0.0 }
 0x1eb   : > { %v8316_v32 = vmax.f32 %v8244_v48, 0.0 }
 0x1ed   : > { %4115 = vmatpush.bf16.msrb.mxu0 %v6717_v17 }
 0x1ee   : > { %4128 = vmatpush.bf16.msrb.mxu1 %v6813_v40 }
 0x1f1   : > { %4116 = vmatpush.bf16.msrb.mxu0 %v6705_v3 }
 0x1f2   : > { %4129 = vmatpush.bf16.msrb.mxu1 %v6801_v4 }
 0x1f5   : > { %4117 = vmatpush.bf16.msrb.mxu0 %v6693_v12 }
 0x1f6   : > { %4130 = vmatpush.bf16.msrb.mxu1 %v6789_v9 }
 0x1f9   : > { %4118 = vmatpush.bf16.msrb.mxu0 %v6681_v7  ;;  %v3912_v25 = vpop.f32.mrf.mxu0 }
 0x1fa   : > { %4131 = vmatpush.bf16.msrb.mxu1 %v6777_v21  ;;  %v3925_v27 = vpop.f32.mrf.mxu1  ;;  %v3913_v38 = vadd.f32 %v3912_v25, %v3900_v36  ;;  %v7519_v36 = vld [vmem:[#allocation10 + $0x30] sm:$0xff] }
 0x1fc   : > { %4119 = vmatmul.bf16.vlgmr.msrb.gmra.mxu0 %v8248_v11  ;;  %v3926_v43 = vadd.f32 %v3925_v27, %v3913_v38 }
 0x1fd   : > { %4132 = vmatmul.bf16.vlgmr.msrb.gmra.mxu1 %v8250_v19 }
 0x201   : > { %v3938_v31 = vpop.f32.mrf.mxu2  ;;  %v3914_v34 = vpop.f32.mrf.mxu0 }
 0x202   : > { %v3951_v57 = vpop.f32.mrf.mxu3  ;;  %v3927_v37 = vpop.f32.mrf.mxu1  ;;  %v3939_v45 = vadd.f32 %v3938_v31, %v3926_v43  ;;  %v7517_v43 = vld [vmem:[#allocation10 + $0x20] sm:$0xff] }
 0x203   : > { %v7528_v37 = vld [vmem:[#allocation10 + $0x78] sm:$0xff] }
 0x204   : > { %v3952_v47 = vadd.f32 %v3951_v57, %v3939_v45  ;;  %v8328_v57 = vmax.f32 %v8266_v58, 0.0  ;;  %v7520_v58 = vld [vmem:[#allocation10 + $0x38] sm:$0xff]  ;;  %4726 = vmatpush.bf16.msrb.mxu3 %v7528_v37  ;;  %v7526_v45 = vld [vmem:[#allocation10 + $0x68] sm:$0xff] }
 0x205   : > { %4713 = vmatpush.bf16.msrb.mxu2 %v7520_v58 }
 0x206   : > { %v7697_v48 = vpack.i.bf16 %v8296_v13, %v8328_v57  ;;  %v7702_v34 = vpack.i.bf16 %v8328_v57, %v8316_v32 }
 0x209   : > { %v3940_v39 = vpop.f32.mrf.mxu2  ;;  %4714 = vmatpush.bf16.msrb.mxu2 %v7519_v36 }
 0x20a   : > { %v3953_v41 = vpop.f32.mrf.mxu3  ;;  %v7518_v39 = vld [vmem:[#allocation10 + $0x28] sm:$0xff] }
 0x20b   : > { %v7527_v41 = vld [vmem:[#allocation10 + $0x70] sm:$0xff] }
 0x20c   : > { %4727 = vmatpush.bf16.msrb.mxu3 %v7527_v41 }
 0x20d   : > { %4715 = vmatpush.bf16.msrb.mxu2 %v7518_v39 }
 0x210   : > { %4728 = vmatpush.bf16.msrb.mxu3 %v7526_v45 }
 0x211   : > { %4716 = vmatpush.bf16.msrb.mxu2 %v7517_v43 }
 0x219   : > { %v3964_v49 = vpop.f32.mrf.mxu0 }
 0x21a   : > { %v3965_v11 = vadd.f32 %v3964_v49, %v3952_v47  ;;  %v3977_v50 = vpop.f32.mrf.mxu1 }
 0x21c   : > { %v3978_v19 = vadd.f32 %v3977_v50, %v3965_v11  ;;  %v7516_v50 = vld [vmem:[#allocation10 + $0x18] sm:$0xff] }
 0x21d   : > { %4717 = vmatpush.bf16.msrb.mxu2 %v7516_v50 }
 0x221   : > { %v3990_v51 = vpop.f32.mrf.mxu2  ;;  %v3966_v33 = vpop.f32.mrf.mxu0 }
 0x222   : > { %v3991_v52 = vadd.f32 %v3990_v51, %v3978_v19  ;;  %v4003_v53 = vpop.f32.mrf.mxu3  ;;  %v3979_v54 = vpop.f32.mrf.mxu1  ;;  %v7525_v19 = vld [vmem:[#allocation10 + $0x60] sm:$0xff]  ;;  %v7536_v51 = vld [vmem:[#allocation10 + $0xb8] sm:$0xff] }
 0x223   : > { %4729 = vmatpush.bf16.msrb.mxu3 %v7525_v19  ;;  %4739 = vmatpush.bf16.msra.mxu0 %v7536_v51 }
 0x224   : > { %v4004_v18 = vadd.f32 %v4003_v53, %v3991_v52  ;;  %v7515_v52 = vld [vmem:[#allocation10 + $0x10] sm:$0xff]  ;;  %v7524_v53 = vld [vmem:[#allocation10 + $0x58] sm:$0xff] }
 0x225   : > { %4718 = vmatpush.bf16.msrb.mxu2 %v7515_v52 }
 0x226   : > { %v8300_v56 = vmax.f32 %v4004_v18, 0.0  ;;  %v7535_v18 = vld [vmem:[#allocation10 + $0xb0] sm:$0xff] }
 0x227   : > { %4730 = vmatpush.bf16.msrb.mxu3 %v7524_v53  ;;  %4740 = vmatpush.bf16.msra.mxu0 %v7535_v18 }
 0x228   : > { %v7642_v35 = vpack.i.bf16 %v8300_v56, %v8298_v55  ;;  %v7637_v30 = vpack.i.bf16 %v8296_v13, %v8300_v56 }
 0x229   : > { %v3992_v59 = vpop.f32.mrf.mxu2 }
 0x22a   : > { %7643 = vrot.lane.b32.xlu2 %v7642_v35, %s7958_s20  ;;  %7633 = vrot.lane.b32.xlu0 %v7642_v35, %s7959_s15  ;;  %v4005_v17 = vpop.f32.mrf.mxu3  ;;  %v7514_v59 = vld [vmem:[#allocation10 + $0x8] sm:$0xff] }
 0x22b   : > { %7638 = vrot.lane.b32.xlu1 %v7637_v30, %s7960_s19  ;;  %v7523_v17 = vld [vmem:[#allocation10 + $0x50] sm:$0xff]  ;;  %4719 = vmatpush.bf16.msrb.mxu2 %v7514_v59  ;;  %v7530_v59 = vld [vmem:[#allocation10 + $0x88] sm:$0xff] }
 0x22c   : > { %4731 = vmatpush.bf16.msrb.mxu3 %v7523_v17  ;;  %v7494_v17 = vld [vmem:[#allocation8 + $0x28] sm:$0xff] }
 0x232   : > { %7668 = vrot.lane.b32.xlu2 %v7637_v30, %s7961_s26  ;;  %7648 = vrot.lane.b32.xlu0 %v7637_v30, %s7962_s5 }
 0x233   : > { %7658 = vrot.lane.b32.xlu1 %v7637_v30, %s7963_s11  ;;  %v4140_v30 = vlaneseq }
 0x239   : > { %v4016_v44 = vpop.f32.mrf.mxu0 }
 0x23a   : > { %7653 = vrot.lane.b32.xlu0 %v7642_v35, %s7964_s27  ;;  %v4029_v60 = vpop.f32.mrf.mxu1  ;;  %v4017_v3 = vadd.f32 %v4016_v44, %v2463_v2  ;;  %v7534_v44 = vld [vmem:[#allocation10 + $0xa8] sm:$0xff] }
 0x23b   : > { %7663 = vrot.lane.b32.xlu1 %v7642_v35, %s7965_s18  ;;  %4741 = vmatpush.bf16.msra.mxu0 %v7534_v44  ;;  %v7501_v44 = vld [vmem:[#allocation8 + $0x60] sm:$0xff] }
 0x23c   : > { %v4030_v0 = vadd.f32 %v4029_v60, %v4017_v3  ;;  %v8364_v60 = vand.u32 127, %v4140_v30  ;;  %v7521_v3 = vld [vmem:[#allocation10 + $0x40] sm:$0xff] }
 0x23e   : > { %vm8870_vm0 = vcmp.lt.s32.totalorder %v8364_v60, 126  ;;  %vm4159_vm1 = vcmp.lt.s32.totalorder %v8364_v60, 127  ;;  %vm8872_vm2 = vcmp.lt.s32.totalorder %v8364_v60, 125  ;;  %vm8867_vm3 = vcmp.lt.s32.totalorder %v8364_v60, 124 }
 0x23f   : > { %vm8868_vm4 = vcmp.ge.s32.totalorder %v8364_v60, 2  ;;  %vm8869_vm5 = vcmp.lt.s32.totalorder %v8364_v60, 2  ;;  %vm4153_vm9 = vcmp.ge.s32.totalorder %v8364_v60, 3  ;;  %vm4265_vm10 = vcmp.lt.s32.totalorder %v8364_v60, 3 }
 0x240   : > { %vm4147_vm14 = vcmp.ge.s32.totalorder %v8364_v60, 1  ;;  %vm4177_vm15 = vcmp.lt.s32.totalorder %v8364_v60, 1 }
 0x241   : > { %v4042_v22 = vpop.f32.mrf.mxu2  ;;  %v4018_v61 = vpop.f32.mrf.mxu0 }
 0x242   : > { %v4055_v40 = vpop.f32.mrf.mxu3  ;;  %v4031_v63 = vpop.f32.mrf.mxu1  ;;  %v4043_v5 = vadd.f32 %v4042_v22, %v4030_v0  ;;  %v7513_v22 = vld [vmem:[#allocation10] sm:$0xff]  ;;  %v4142_v0 = vadd.s32 128, %v8364_v60 }
 0x243   : > { %v7533_v63 = vld [vmem:[#allocation10 + $0xa0] sm:$0xff]  ;;  %4720 = vmatpush.bf16.msrb.mxu2 %v7513_v22  ;;  %v7510_v22 = vld [vmem:[#allocation8 + $0xa8] sm:$0xff] }
 0x244   : > { %v4056_v9 = vadd.f32 %v4055_v40, %v4043_v5  ;;  %v7522_v40 = vld [vmem:[#allocation10 + $0x48] sm:$0xff]  ;;  %4742 = vmatpush.bf16.msra.mxu0 %v7533_v63  ;;  %v4143_v5 = vadd.s32 256, %v8364_v60 }
 0x245   : > { %4732 = vmatpush.bf16.msrb.mxu3 %v7522_v40 }
 0x249   : > { %v4044_v46 = vpop.f32.mrf.mxu2  ;;  %4733 = vmatpush.bf16.msrb.mxu3 %v7521_v3 }
 0x24a   : > { %v4057_v1 = vpop.f32.mrf.mxu3  ;;  %v7504_v46 = vld [vmem:[#allocation8 + $0x78] sm:$0xff] }
 0x24b   : > { %4909 = vmatpush.bf16.msra.mxu2 %v7504_v46 }
 0x259   : > { %v4068_v4 = vpop.f32.mrf.mxu0 }
 0x25a   : > { %v4081_v10 = vpop.f32.mrf.mxu1  ;;  %v4069_v24 = vadd.f32 %v4068_v4, %v4056_v9 }
 0x25c   : > { %v4082_v15 = vadd.f32 %v4081_v10, %v4069_v24 }
 0x261   : > { %v4094_v20 = vpop.f32.mrf.mxu2  ;;  %v4070_v12 = vpop.f32.mrf.mxu0 }
 0x262   : > { %v4107_v8 = vpop.f32.mrf.mxu3  ;;  %v4083_v6 = vpop.f32.mrf.mxu1  ;;  %v4095_v28 = vadd.f32 %v4094_v20, %v4082_v15  ;;  %v7532_v20 = vld [vmem:[#allocation10 + $0x98] sm:$0xff] }
 0x263   : > { %v7496_v12 = vld [vmem:[#allocation8 + $0x38] sm:$0xff]  ;;  %4743 = vmatpush.bf16.msra.mxu0 %v7532_v20 }
 0x264   : > { %v4108_v16 = vadd.f32 %v4107_v8, %v4095_v28  ;;  %v7503_v8 = vld [vmem:[#allocation8 + $0x70] sm:$0xff]  ;;  %v7512_v6 = vld [vmem:[#allocation8 + $0xb8] sm:$0xff]  ;;  %4896 = vmatpush.bf16.msra.mxu1 %v7496_v12 }
 0x265   : > { %4910 = vmatpush.bf16.msra.mxu2 %v7503_v8  ;;  %4922 = vmatpush.bf16.msra.mxu3 %v7512_v6 }
 0x269   : > { %v4096_v42 = vpop.f32.mrf.mxu2 }
 0x26a   : > { %v4109_v14 = vpop.f32.mrf.mxu3 }
 0x279   : > { %v4120_v7 = vpop.f32.mrf.mxu0 }
 0x27a   : > { %v4121_v21 = vadd.f32 %v4120_v7, %v4108_v16  ;;  %v4133_v23 = vpop.f32.mrf.mxu1  ;;  %v8392_v7 = vand.u32 127, %v4142_v0 }
 0x27c   : > { %v4134_v62 = vadd.f32 %v4133_v23, %v4121_v21  ;;  %v8394_v21 = vand.u32 127, %v4143_v5  ;;  %vm8871_vm6 = vcmp.ge.s32.totalorder %v8392_v7, 2  ;;  %vm8876_vm11 = vcmp.lt.s32.totalorder %v8392_v7, 125 }
 0x27d   : > { %vm4154_vm13 = vcmp.ge.s32.totalorder %v8392_v7, 3 }
 0x27e   : > { %v8318_v25 = vmax.f32 %v4134_v62, 0.0  ;;  %v7531_v62 = vld [vmem:[#allocation10 + $0x90] sm:$0xff]  ;;  %vm8873_vm7 = vcmp.ge.s32.totalorder %v8394_v21, 2  ;;  %vm4161_vm8 = vcmp.lt.s32.totalorder %v8394_v21, 127  ;;  %vm8875_vm12 = vcmp.lt.s32.totalorder %v8394_v21, 125 }
 0x27f   : > { %4744 = vmatpush.bf16.msra.mxu0 %v7531_v62 }
 0x280   : > { %v7682_v26 = vpack.i.bf16 %v8318_v25, %v8298_v55  ;;  %v7677_v27 = vpack.i.bf16 %v8316_v32, %v8318_v25 }
 0x281   : > { %v4122_v29 = vpop.f32.mrf.mxu0 }
 0x282   : > { %v4135_v31 = vpop.f32.mrf.mxu1  ;;  %7683 = vrot.lane.b32.xlu2 %v7682_v26, %s7962_s5  ;;  %7673 = vrot.lane.b32.xlu0 %v7682_v26, %s7960_s19 }
 0x283   : > { %7678 = vrot.lane.b32.xlu1 %v7677_v27, %s7959_s15  ;;  %4745 = vmatpush.bf16.msra.mxu0 %v7530_v59 }
 0x284   : > { %v8350_v38 = vpop.permute.xlu2 %7643 }
 0x285   : > { %v7646_v1 = vunpack.i.h.bf16 %v8350_v38  ;;  %v7645_v2 = vunpack.i.l.bf16 %v8350_v38 }
 0x287   : > { %v4396_v9 = vsel %vm8870_vm0, %v7645_v2, %v7646_v1 }
 0x288   : > { %v8400_v29 = vsel %vm8870_vm0, %v4396_v9, 0.0  ;;  %vm4160_vm0 = vcmp.lt.s32.totalorder %v8392_v7, 127 }
 0x28a   : > { %7698 = vrot.lane.b32.xlu2 %v7697_v48, %s7959_s15  ;;  %7703 = vrot.lane.b32.xlu0 %v7702_v34, %s7962_s5 }
 0x28b   : > { %7688 = vrot.lane.b32.xlu1 %v7677_v27, %s7958_s20 }
 0x28c   : > { %v8352_v47 = vpop.permute.xlu2 %7668 }
 0x28d   : > { %v7671_v31 = vunpack.i.h.bf16 %v8352_v47 }
 0x292   : > { %7713 = vrot.lane.b32.xlu2 %v7682_v26, %s7963_s11  ;;  %7728 = vrot.lane.b32.xlu0 %v7682_v26, %s7961_s26  ;;  %v7495_v26 = vld [vmem:[#allocation8 + $0x30] sm:$0xff] }
 0x293   : > { %7693 = vrot.lane.b32.xlu1 %v7702_v34, %s7960_s19  ;;  %4897 = vmatpush.bf16.msra.mxu1 %v7495_v26 }
 0x297   : > { %4898 = vmatpush.bf16.msra.mxu1 %v7494_v17 }
 0x29a   : > { %7718 = vrot.lane.b32.xlu2 %v7677_v27, %s7964_s27  ;;  %4453 = vrot.lane.b32.xlu0 %v8318_v25, %s7965_s18  ;;  %v7502_v27 = vld [vmem:[#allocation8 + $0x68] sm:$0xff] }
 0x29b   : > { %7708 = vrot.lane.b32.xlu1 %v7697_v48, %s7958_s20  ;;  %4911 = vmatpush.bf16.msra.mxu2 %v7502_v27  ;;  %v7529_v27 = vld [vmem:[#allocation10 + $0x80] sm:$0xff] }
 0x29c   : > { %v8354_v49 = vpop.permute.xlu0 %7633  ;;  %4746 = vmatpush.bf16.msra.mxu0 %v7529_v27 }
 0x29d   : > { %v8356_v11 = vpop.permute.xlu1 %7638  ;;  %v7636_v24 = vunpack.i.h.bf16 %v8354_v49  ;;  %v7635_v42 = vunpack.i.l.bf16 %v8354_v49 }
 0x29e   : > { %v7641_v43 = vunpack.i.h.bf16 %v8356_v11  ;;  %v7640_v45 = vunpack.i.l.bf16 %v8356_v11 }
 0x29f   : > { %v4366_v58 = vsel %vm4159_vm1, %v7635_v42, %v7636_v24  ;;  %4912 = vmatpush.bf16.msra.mxu2 %v7501_v44 }
 0x2a0   : > { %v8432_v50 = vsel %vm4159_vm1, %v4366_v58, 0.0  ;;  %v7500_v58 = vld [vmem:[#allocation8 + $0x58] sm:$0xff] }
 0x2a2   : > { %7723 = vrot.lane.b32.xlu2 %v7702_v34, %s7963_s11  ;;  %7733 = vrot.lane.b32.xlu0 %v7697_v48, %s7964_s27  ;;  %v7511_v48 = vld [vmem:[#allocation8 + $0xb0] sm:$0xff] }
 0x2a3   : > { %7738 = vrot.lane.b32.xlu1 %v7702_v34, %s7961_s26  ;;  %4923 = vmatpush.bf16.msra.mxu3 %v7511_v48  ;;  %v7493_v48 = vld [vmem:[#allocation8 + $0x20] sm:$0xff] }
 0x2a4   : > { %v8360_v54 = vpop.permute.xlu0 %7648  ;;  %4899 = vmatpush.bf16.msra.mxu1 %v7493_v48  ;;  %4913 = vmatpush.bf16.msra.mxu2 %v7500_v58 }
 0x2a5   : > { %v8362_v35 = vpop.permute.xlu1 %7658  ;;  %v7651_v19 = vunpack.i.h.bf16 %v8360_v54  ;;  %v7650_v51 = vunpack.i.l.bf16 %v8360_v54 }
 0x2a6   : > { %v7661_v52 = vunpack.i.h.bf16 %v8362_v35  ;;  %v7660_v53 = vunpack.i.l.bf16 %v8362_v35 }
 0x2a7   : > { %4924 = vmatpush.bf16.msra.mxu3 %v7510_v22 }
 0x2aa   : > { %7743 = vrot.lane.b32.xlu2 %v7702_v34, %s7965_s18  ;;  %4313 = vrot.lane.b32.xlu0 %v8296_v13, %s7965_s18  ;;  %v7670_v34 = vunpack.i.l.bf16 %v8352_v47 }
 0x2ac   : > { %v8371_v4 = vpop.permute.xlu0 %7653 }
 0x2ad   : > { %v8373_v10 = vpop.permute.xlu1 %7663  ;;  %v7656_v14 = vunpack.i.h.bf16 %v8371_v4  ;;  %v7655_v15 = vunpack.i.l.bf16 %v8371_v4 }
 0x2ae   : > { %v7666_v28 = vunpack.i.h.bf16 %v8373_v10  ;;  %v7665_v16 = vunpack.i.l.bf16 %v8373_v10 }
 0x2af   : > { %v4426_v39 = vsel %vm8872_vm2, %v7655_v15, %v7656_v14 }
 0x2b0   : > { %v4456_v41 = vsel %vm8867_vm3, %v7665_v16, %v7666_v28 }
 0x2b1   : > { %v8444_v18 = vsel %vm8867_vm3, %v4456_v41, 0.0  ;;  %vm4155_vm3 = vcmp.ge.s32.totalorder %v8394_v21, 3 }
 0x2dc   : > { %v8358_v33 = vpop.permute.xlu2 %7683 }
 0x2dd   : > { %v7686_v36 = vunpack.i.h.bf16 %v8358_v33  ;;  %v7685_v37 = vunpack.i.l.bf16 %v8358_v33  ;;  %v8440_v33 = vsel %vm8872_vm2, %v4426_v39, 0.0 }
 0x2df   : > { %v4388_v30 = vsel %vm8869_vm5, %v7686_v36, %v7685_v37  ;;  %v4386_v40 = vsel %vm8869_vm5, %v7650_v51, %v7686_v36  ;;  %v4387_v63 = vsel %vm8869_vm5, %v7685_v37, %v7650_v51  ;;  %vm8874_vm5 = vcmp.ge.s32.totalorder %v8394_v21, 1  ;;  %v7509_v37 = vld [vmem:[#allocation8 + $0xa0] sm:$0xff] }
 0x2e0   : > { %v8464_v0 = vsel %vm8868_vm4, %v4388_v30, 0.0  ;;  %vm8877_vm4 = vcmp.ge.s32.totalorder %v8392_v7, 1  ;;  %v8480_v39 = vsel %vm8871_vm6, %v4387_v63, 0.0  ;;  %vm4163_vm6 = vcmp.lt.s32.totalorder %v8392_v7, 126  ;;  %4925 = vmatpush.bf16.msra.mxu3 %v7509_v37  ;;  %v7499_v63 = vld [vmem:[#allocation8 + $0x50] sm:$0xff]  ;;  %v7498_v37 = vld [vmem:[#allocation8 + $0x48] sm:$0xff] }
 0x2e1   : > { %v4404_v41 = vmax.f32 %v8464_v0, %v8400_v29  ;;  %4914 = vmatpush.bf16.msra.mxu2 %v7499_v63 }
 0x2e4   : > { %v8366_v61 = vpop.permute.xlu2 %7698 }
 0x2e5   : > { %v7701_v5 = vunpack.i.h.bf16 %v8366_v61  ;;  %v7700_v6 = vunpack.i.l.bf16 %v8366_v61  ;;  %4915 = vmatpush.bf16.msra.mxu2 %v7498_v37  ;;  %v7505_v37 = vld [vmem:[#allocation8 + $0x80] sm:$0xff] }
 0x2e7   : > { %v4190_v29 = vsel %vm4159_vm1, %v7700_v6, %v7701_v5 }
 0x2ec   : > { %v8396_v23 = vpop.permute.xlu2 %7713 }
 0x2ed   : > { %v7716_v9 = vunpack.i.h.bf16 %v8396_v23  ;;  %v7715_v62 = vunpack.i.l.bf16 %v8396_v23  ;;  %v8484_v23 = vsel %vm8873_vm7, %v4386_v40, 0.0  ;;  %v7492_v40 = vld [vmem:[#allocation8 + $0x18] sm:$0xff]  ;;  %vm4309_vm7 = vcmp.lt.s32.totalorder %v8364_v60, 4 }
 0x2ee   : > { %4900 = vmatpush.bf16.msra.mxu1 %v7492_v40 }
 0x2ef   : > { %v4418_v44 = vsel %vm4265_vm10, %v7716_v9, %v7715_v62  ;;  %v4417_v0 = vsel %vm4265_vm10, %v7715_v62, %v7660_v53  ;;  %v4416_v49 = vsel %vm4265_vm10, %v7660_v53, %v7716_v9 }
 0x2f4   : > { %v8458_v46 = vpop.permute.xlu2 %7718  ;;  %v7674_v3 = vpop.permute.xlu0 %7673 }
 0x2f5   : > { %v7676_v20 = vunpack.i.h.bf16 %v7674_v3  ;;  %v7675_v12 = vunpack.i.l.bf16 %v7674_v3  ;;  %v8468_v8 = vpop.permute.xlu1 %7678  ;;  %v7720_v36 = vunpack.i.l.bf16 %v8458_v46  ;;  %v7508_v3 = vld [vmem:[#allocation8 + $0x98] sm:$0xff]  ;;  %v7721_v40 = vunpack.i.h.bf16 %v8458_v46 }
 0x2f6   : > { %v7680_v26 = vunpack.i.l.bf16 %v8468_v8  ;;  %4926 = vmatpush.bf16.msra.mxu3 %v7508_v3  ;;  %v7681_v58 = vunpack.i.h.bf16 %v8468_v8 }
 0x2f7   : > { %v4358_v51 = vsel %vm4177_vm15, %v7676_v20, %v7675_v12  ;;  %v4356_v30 = vsel %vm4177_vm15, %v7640_v45, %v7676_v20  ;;  %v4357_v59 = vsel %vm4177_vm15, %v7675_v12, %v7640_v45  ;;  %v4425_v20 = vsel %vm8872_vm2, %v7656_v14, %v7720_v36 }
 0x2f8   : > { %v4368_v17 = vsel %vm4147_vm14, %v4358_v51, 0.0  ;;  %v4365_v45 = vsel %vm4159_vm1, %v7636_v24, %v7680_v26  ;;  %v4367_v24 = vsel %vm4159_vm1, %v7680_v26, %v7635_v42  ;;  %v4369_v12 = vsel %vm8877_vm4, %v4357_v59, 0.0  ;;  %v7507_v51 = vld [vmem:[#allocation8 + $0x90] sm:$0xff] }
 0x2f9   : > { %v4374_v22 = vmax.f32 %v4368_v17, %v8432_v50  ;;  %v4427_v50 = vsel %vm8872_vm2, %v7720_v36, %v7655_v15  ;;  %v4370_v62 = vsel %vm8874_vm5, %v4356_v30, 0.0  ;;  %v4372_v27 = vsel %vm4160_vm0, %v4365_v45, 0.0  ;;  %v7491_v36 = vld [vmem:[#allocation8 + $0x10] sm:$0xff] }
 0x2fa   : > { %v4373_v4 = vsel %vm4161_vm8, %v4367_v24, 0.0  ;;  %v8542_v42 = vsel %vm4153_vm9, %v4418_v44, 0.0  ;;  %vm4164_vm2 = vcmp.lt.s32.totalorder %v8394_v21, 126  ;;  %v8550_v48 = vsel %vm8876_vm11, %v4425_v20, 0.0  ;;  %4901 = vmatpush.bf16.msra.mxu1 %v7491_v36  ;;  %4927 = vmatpush.bf16.msra.mxu3 %v7507_v51  ;;  %v4956_v51 = vld [vmem:[%s8862_s8 + $0x78] sm:$0xff] }
 0x2fb   : > { %v8554_v53 = vsel %vm8875_vm12, %v4427_v50, 0.0  ;;  %v4377_v9 = vmax.f32 %v8298_v55, %v4374_v22  ;;  %vm4156_vm5 = vcmp.ge.s32.totalorder %v8364_v60, 4  ;;  %v8561_v30 = vsel %vm4161_vm8, %v4190_v29, 0.0  ;;  %4961 = vmatpush.msrb.mxu0 %v4956_v51 }
 0x2fc   : > { %v8534_v14 = vpop.permute.xlu0 %7703  ;;  %v7724_v15 = vpop.permute.xlu2 %7723  ;;  %v8565_v59 = vsel %vm4154_vm13, %v4417_v0, 0.0  ;;  %v4375_v17 = vmax.f32 %v4369_v12, %v4372_v27  ;;  %v4376_v44 = vmax.f32 %v4370_v62, %v4373_v4  ;;  %v8569_v55 = vsel %vm4155_vm3, %v4416_v49, 0.0  ;;  %v7490_v12 = vld [vmem:[#allocation8 + $0x8] sm:$0xff]  ;;  %v7497_v62 = vld [vmem:[#allocation8 + $0x40] sm:$0xff] }
 0x2fd   : > { %v8545_v26 = vpop.permute.xlu1 %7688  ;;  %v4434_v8 = vmax.f32 %v8542_v42, %v8440_v33  ;;  %v7726_v22 = vunpack.i.h.bf16 %v7724_v15  ;;  %v7725_v45 = vunpack.i.l.bf16 %v7724_v15  ;;  %v4435_v29 = vmax.f32 %v8565_v59, %v8550_v48  ;;  %v7506_v27 = vld [vmem:[#allocation8 + $0x88] sm:$0xff]  ;;  %4916 = vmatpush.bf16.msra.mxu2 %v7497_v62 }
 0x2fe   : > { %v4436_v63 = vmax.f32 %v8569_v55, %v8554_v53  ;;  %v7690_v3 = vunpack.i.l.bf16 %v8545_v26  ;;  %v4407_v0 = vmax.f32 %v4377_v9, %v4404_v41  ;;  %v4188_v20 = vsel %vm4159_vm1, %v7681_v58, %v7700_v6  ;;  %4902 = vmatpush.bf16.msra.mxu1 %v7490_v12  ;;  %4928 = vmatpush.bf16.msra.mxu3 %v7506_v27 }
 0x2ff   : > { %v4189_v50 = vsel %vm4159_vm1, %v7701_v5, %v7681_v58  ;;  %v7706_v24 = vunpack.i.h.bf16 %v8534_v14  ;;  %v4378_v4 = vmax.f32 %v8300_v56, %v4375_v17  ;;  %v4379_v41 = vmax.f32 %v8318_v25, %v4376_v44 }
 0x300   : > { %vm8888_vm12 = vcmp.lt.s32.totalorder %v8364_v60, 126  ;;  %vm4157_vm4 = vcmp.ge.s32.totalorder %v8392_v7, 4  ;;  %vm4170_vm8 = vcmp.lt.s32.totalorder %v8394_v21, 124  ;;  %v4266_v5 = vsel %vm4265_vm10, %v7725_v45, %v7726_v22 }
 0x301   : > { %v4395_v6 = vsel %vm8888_vm12, %v7646_v1, %v7690_v3  ;;  %vm8889_vm11 = vmmov %vm8888_vm12  ;;  %v4268_v56 = vsel %vm4265_vm10, %v7726_v22, %v7661_v52  ;;  %v4267_v49 = vsel %vm4265_vm10, %v7661_v52, %v7725_v45  ;;  %v7705_v15 = vunpack.i.l.bf16 %v8534_v14 }
 0x302   : > { %v4397_v61 = vsel %vm8889_vm11, %v7690_v3, %v7645_v2  ;;  %v4402_v25 = vsel %vm4163_vm6, %v4395_v6, 0.0  ;;  %v7489_v2 = vld [vmem:[#allocation8] sm:$0xff]  ;;  %vm4169_vm11 = vcmp.lt.s32.totalorder %v8392_v7, 124  ;;  %v8632_v14 = vsel %vm4153_vm9, %v4268_v56, 0.0  ;;  %4929 = vmatpush.bf16.msra.mxu3 %v7505_v37 }
 0x303   : > { %v4403_v38 = vsel %vm4164_vm2, %v4397_v61, 0.0  ;;  %v4405_v9 = vmax.f32 %v8480_v39, %v4402_v25  ;;  %v8624_v39 = vsel %vm4159_vm1, %v4189_v50, 0.0  ;;  %v7691_v22 = vunpack.i.h.bf16 %v8545_v26  ;;  %4903 = vmatpush.bf16.msra.mxu1 %v7489_v2 }
 0x304   : > { %v7729_v1 = vpop.permute.xlu0 %7728  ;;  %v4406_v58 = vmax.f32 %v8484_v23, %v4403_v38  ;;  %v8628_v23 = vsel %vm4160_vm0, %v4188_v20, 0.0  ;;  %v8643_v20 = vsel %vm4154_vm13, %v4267_v49, 0.0  ;;  %v8647_v62 = vsel %vm4155_vm3, %v4266_v5, 0.0 }
 0x305   : > { %v7694_v36 = vpop.permute.xlu1 %7693  ;;  %v7731_v35 = vunpack.i.h.bf16 %v7729_v1  ;;  %v7730_v17 = vunpack.i.l.bf16 %v7729_v1  ;;  %v4408_v50 = vmax.f32 %v4378_v4, %v4405_v9  ;;  %vm8890_vm0 = vcmp.lt.s32.totalorder %v8364_v60, 2 }
 0x306   : > { %v7696_v44 = vunpack.i.h.bf16 %v7694_v36  ;;  %v7695_v52 = vunpack.i.l.bf16 %v7694_v36  ;;  %v4409_v12 = vmax.f32 %v4379_v41, %v4406_v58  ;;  %v4222_v4 = vsel %vm8890_vm0, %v7705_v15, %v7706_v24  ;;  %vm8891_vm1 = vmmov %vm8890_vm0 }
 0x307   : > { %v4448_v45 = vsel %vm4309_vm7, %v7731_v35, %v7730_v17  ;;  %v4223_v41 = vsel %vm8891_vm1, %v7651_v19, %v7705_v15  ;;  %v4437_v6 = vmax.f32 %v4407_v0, %v4434_v8  ;;  %vm8892_vm3 = vmmov %vm8890_vm0  ;;  %v4446_v56 = vsel %vm4309_vm7, %v7670_v34, %v7731_v35  ;;  %v8685_v8 = vpop.permute.xlu2 %7743 }
 0x308   : > { %v4180_v3 = vsel %vm4177_vm15, %v7696_v44, %v7641_v43  ;;  %v4458_v26 = vsel %vm4156_vm5, %v4448_v45, 0.0  ;;  %v4179_v27 = vsel %vm4177_vm15, %v7641_v43, %v7695_v52  ;;  %v4224_v11 = vsel %vm8892_vm3, %v7706_v24, %v7651_v19 }
 0x309   : > { %v4464_v61 = vmax.f32 %v4458_v26, %v8444_v18  ;;  %v4178_v43 = vsel %vm4177_vm15, %v7695_v52, %v7696_v44  ;;  %v4197_v5 = vsel %vm4147_vm14, %v4180_v3, 0.0  ;;  %vm8893_vm9 = vcmp.ge.s32.totalorder %v8392_v7, 1 }
 0x30a   : > { %v4198_v18 = vsel %vm8893_vm9, %v4179_v27, 0.0  ;;  %v4438_v54 = vmax.f32 %v4408_v50, %v4435_v29  ;;  %v4439_v19 = vmax.f32 %v4409_v12, %v4436_v63  ;;  %v4447_v0 = vsel %vm4309_vm7, %v7730_v17, %v7670_v34 }
 0x30b   : > { %v4467_v33 = vmax.f32 %v4437_v6, %v4464_v61  ;;  %vm8894_vm10 = vcmp.lt.s32.totalorder %v8364_v60, 124  ;;  %vm8896_vm13 = vcmp.ge.s32.totalorder %v8394_v21, 4  ;;  %v4459_v29 = vsel %vm4157_vm4, %v4447_v0, 0.0 }
 0x30c   : > { %v4454_v42 = vpop.permute.xlu0 %4453  ;;  %vm8895_vm12 = vmmov %vm8894_vm10  ;;  %v4460_v53 = vsel %vm8896_vm13, %v4446_v56, 0.0  ;;  %v7745_v1 = vunpack.i.l.bf16 %v8685_v8  ;;  %vm8897_vm14 = vcmp.ge.s32.totalorder %v8394_v21, 1  ;;  %v4209_v49 = vmax.f32 %v4197_v5, %v8624_v39 }
 0x30d   : > { %v4455_v24 = vsel %vm8894_vm10, %v7666_v28, %v4454_v42  ;;  %v4457_v48 = vsel %vm8895_vm12, %v4454_v42, %v7665_v16  ;;  %v7709_v59 = vpop.permute.xlu1 %7708  ;;  %v4470_v55 = vpack.c.bf16 %v4467_v33, %v4467_v33  ;;  %v7746_v16 = vunpack.i.h.bf16 %v8685_v8 }
 0x30e   : > { %v4462_v34 = vsel %vm4169_vm11, %v4455_v24, 0.0  ;;  %v4463_v63 = vsel %vm4170_vm8, %v4457_v48, 0.0  ;;  %v7711_v10 = vunpack.i.h.bf16 %v7709_v59  ;;  %v7710_v38 = vunpack.i.l.bf16 %v7709_v59 }
 0x30f   : > { %v4465_v28 = vmax.f32 %v4459_v29, %v4462_v34  ;;  %v4466_v25 = vmax.f32 %v4460_v53, %v4463_v63  ;;  %v4199_v2 = vsel %vm8897_vm14, %v4178_v43, 0.0  ;;  %4721 = vmatmul.bf16.vlgmr.msrb.gmra.mxu2 %v4470_v55  ;;  %vm8898_vm15 = vcmp.lt.s32.totalorder %v8364_v60, 126 }
 0x310   : > { %v4232_v58 = vsel %vm8898_vm15, %v7691_v22, %v7710_v38  ;;  %vm8899_vm0 = vmmov %vm8898_vm15  ;;  %vm8900_vm1 = vcmp.ge.s32.totalorder %v8394_v21, 2  ;;  %v4210_v51 = vmax.f32 %v4198_v18, %v8628_v23  ;;  %vm8903_vm10 = vcmp.ge.s32.totalorder %v8364_v60, 2 }
 0x311   : > { %v4468_v15 = vmax.f32 %v4438_v54, %v4465_v28  ;;  %v4469_v9 = vmax.f32 %v4439_v19, %v4466_v25  ;;  %v4233_v36 = vsel %vm8899_vm0, %v7711_v10, %v7691_v22  ;;  %v4243_v37 = vsel %vm8900_vm1, %v4222_v4, 0.0  ;;  %vm8901_vm3 = vmmov %vm8899_vm0 }
 0x312   : > { %v4234_v35 = vsel %vm8901_vm3, %v7710_v38, %v7711_v10  ;;  %v4251_v17 = vsel %vm4163_vm6, %v4232_v58, 0.0  ;;  %vm8902_vm9 = vmmov %vm8899_vm0  ;;  %v4241_v22 = vsel %vm8903_vm10, %v4224_v11, 0.0  ;;  %vm8904_vm12 = vcmp.ge.s32.totalorder %v8392_v7, 2  ;;  %v4955_v58 = vld [vmem:[%s8862_s8 + $0x70] sm:$0xff] }
 0x313   : > { %v4471_v44 = vpack.c.bf16 %v4468_v15, %v4468_v15  ;;  %v4472_v52 = vpack.c.bf16 %v4469_v9, %v4469_v9  ;;  %v4250_v39 = vsel %vm8902_vm9, %v4233_v36, 0.0  ;;  %v4252_v45 = vsel %vm4164_vm2, %v4234_v35, 0.0  ;;  %4962 = vmatpush.msrb.mxu0 %v4955_v58  ;;  %v4952_v36 = vld [vmem:[%s8862_s8 + $0x58] sm:$0xff]  ;;  %v4949_v35 = vld [vmem:[%s8862_s8 + $0x40] sm:$0xff] }
 0x314   : > { %v4242_v23 = vsel %vm8904_vm12, %v4223_v41, 0.0  ;;  %vm8905_vm13 = vcmp.lt.s32.totalorder %v8364_v60, 124  ;;  %v4211_v50 = vmax.f32 %v4199_v2, %v8561_v30  ;;  %v7734_v12 = vpop.permute.xlu0 %7733  ;;  %v4212_v26 = vmax.f32 %v8296_v13, %v4209_v49 }
 0x315   : > { %v4320_v3 = vsel %vm8905_vm13, %v7745_v1, %v7746_v16  ;;  %v4254_v27 = vmax.f32 %v4242_v23, %v4251_v17  ;;  %v7736_v4 = vunpack.i.h.bf16 %v7734_v12  ;;  %v7735_v6 = vunpack.i.l.bf16 %v7734_v12  ;;  %v7739_v61 = vpop.permute.xlu1 %7738  ;;  %4734 = vmatmul.bf16.vlgmr.msrb.gmra.mxu3 %v4471_v44  ;;  %4747 = vmatmul.bf16.vlgmr.msra.gmra.mxu0 %v4472_v52  ;;  %v4948_v17 = vld [vmem:[%s8862_s8 + $0x38] sm:$0xff]  ;;  %v4947_v44 = vld [vmem:[%s8862_s8 + $0x30] sm:$0xff]  ;;  %v4946_v52 = vld [vmem:[%s8862_s8 + $0x28] sm:$0xff] }
 0x316   : > { %v4213_v43 = vmax.f32 %v8316_v32, %v4210_v51  ;;  %v4253_v11 = vmax.f32 %v4241_v22, %v4250_v39  ;;  %v4255_v5 = vmax.f32 %v4243_v37, %v4252_v45  ;;  %v7740_v56 = vunpack.i.l.bf16 %v7739_v61  ;;  %v4951_v37 = vld [vmem:[%s8862_s8 + $0x50] sm:$0xff]  ;;  %v4950_v51 = vld [vmem:[%s8862_s8 + $0x48] sm:$0xff]  ;;  %v4945_v39 = vld [vmem:[%s8862_s8 + $0x20] sm:$0xff] }
 0x317   : > { %vm8906_vm2 = vcmp.lt.s32.totalorder %v8364_v60, 125  ;;  %v7741_v33 = vunpack.i.h.bf16 %v7739_v61  ;;  %vm8910_vm0 = vcmp.lt.s32.totalorder %v8392_v7, 125  ;;  %vm8911_vm1 = vcmp.lt.s32.totalorder %v8394_v21, 125  ;;  %v4954_v60 = vld [vmem:[%s8862_s8 + $0x68] sm:$0xff]  ;;  %v4944_v45 = vld [vmem:[%s8862_s8 + $0x18] sm:$0xff]  ;;  %v4943_v22 = vld [vmem:[%s8862_s8 + $0x10] sm:$0xff] }
 0x318   : > { %v4277_v41 = vsel %vm8906_vm2, %v7736_v4, %v7721_v40  ;;  %vm8907_vm6 = vmmov %vm8906_vm2  ;;  %v4311_v46 = vsel %vm4309_vm7, %v7671_v31, %v7740_v56  ;;  %v4257_v54 = vmax.f32 %v4213_v43, %v4254_v27  ;;  %v4214_v0 = vmax.f32 %v8328_v57, %v4211_v50  ;;  %4963 = vmatpush.msrb.mxu0 %v4954_v60  ;;  %v4942_v23 = vld [vmem:[%s8862_s8 + $0x8] sm:$0xff] }
 0x319   : > { %v4276_v13 = vsel %vm8907_vm6, %v7721_v40, %v7735_v6  ;;  %vm8908_vm14 = vmmov %vm8906_vm2  ;;  %v4330_v8 = vsel %vm4157_vm4, %v4311_v46, 0.0  ;;  %v4339_v24 = vsel %vm4169_vm11, %v4320_v3, 0.0  ;;  %v4256_v53 = vmax.f32 %v4212_v26, %v4253_v11  ;;  %v4941_v3 = vld [vmem:[%s8862_s8] sm:$0xff] }
 0x31a   : > { %v4278_v30 = vsel %vm8908_vm14, %v7735_v6, %v7736_v4  ;;  %vm8909_vm15 = vmmov %vm8906_vm2  ;;  %v4295_v18 = vsel %vm8910_vm0, %v4276_v13, 0.0  ;;  %v4342_v55 = vmax.f32 %v4330_v8, %v4339_v24  ;;  %v4310_v29 = vsel %vm4309_vm7, %v7740_v56, %v7741_v33  ;;  %v7747_v13 = vld [vmem:[%s8861_s7] ss:$0 sm:$0xff] }
 0x31b   : > { %v4294_v32 = vsel %vm8909_vm15, %v4277_v41, 0.0  ;;  %v4296_v42 = vsel %vm8911_vm1, %v4278_v30, 0.0  ;;  %v4298_v19 = vmax.f32 %v8643_v20, %v4295_v18  ;;  %v4258_v34 = vmax.f32 %v4214_v0, %v4255_v5  ;;  %vm8912_vm4 = vmmov %vm8905_vm13  ;;  %v7749_v0 = vld [vmem:[%s8864_s10] ss:$0 sm:$0xff] }
 0x31c   : > { %v4297_v40 = vmax.f32 %v8632_v14, %v4294_v32  ;;  %v4299_v48 = vmax.f32 %v8647_v62, %v4296_v42  ;;  %v4312_v14 = vsel %vm4309_vm7, %v7741_v33, %v7671_v31  ;;  %v4314_v20 = vpop.permute.xlu0 %4313  ;;  %vm8913_vm11 = vmmov %vm8912_vm4  ;;  %vm8914_vm3 = vcmp.ge.s32.totalorder %v8394_v21, 4  ;;  %v4953_v21 = vld [vmem:[%s8862_s8 + $0x60] sm:$0xff] }
 0x31d   : > { %v4301_v59 = vmax.f32 %v4257_v54, %v4298_v19  ;;  %v4321_v7 = vsel %vm8912_vm4, %v4314_v20, %v7745_v1  ;;  %v4322_v62 = vsel %vm8913_vm11, %v7746_v16, %v4314_v20  ;;  %v4329_v28 = vsel %vm4156_vm5, %v4312_v14, 0.0  ;;  %vm8915_vm9 = vmmov %vm8912_vm4  ;;  %4964 = vmatpush.msrb.mxu0 %v4953_v21 }
 0x31e   : > { %v4300_v57 = vmax.f32 %v4256_v53, %v4297_v40  ;;  %v4331_v25 = vsel %vm8914_vm3, %v4310_v29, 0.0  ;;  %v4338_v47 = vsel %vm8915_vm9, %v4321_v7, 0.0  ;;  %v4340_v31 = vsel %vm4170_vm8, %v4322_v62, 0.0  ;;  %v7748_v40 = vld [vmem:[%s8863_s9] ss:$0 sm:$0xff] }
 0x31f   : > { %v4345_v63 = vmax.f32 %v4301_v59, %v4342_v55  ;;  %v4302_v38 = vmax.f32 %v4258_v34, %v4299_v48  ;;  %v4341_v2 = vmax.f32 %v4329_v28, %v4338_v47  ;;  %v4343_v49 = vmax.f32 %v4331_v25, %v4340_v31  ;;  %4965 = vmatpush.msrb.mxu0 %v4952_v36  ;;  %v7750_v59 = vld [vmem:[#allocation2] ss:$0 sm:$0xff] }
 0x320   : > { %vm4987_vm5 = vcmask 130048   ;;  %vm5015_vm10 = vcmask 7168  }
 0x321   : > { %v4348_v10 = vpack.c.bf16 %v4345_v63, %v4345_v63  ;;  %v4344_v1 = vmax.f32 %v4300_v57, %v4341_v2  ;;  %v4346_v15 = vmax.f32 %v4302_v38, %v4343_v49  ;;  %4966 = vmatpush.msrb.mxu0 %v4951_v37 }
 0x323   : > { %4917 = vmatmul.bf16.vlgmr.msra.gmra.mxu2 %v4348_v10  ;;  %v4347_v16 = vpack.c.bf16 %v4344_v1, %v4344_v1  ;;  %v4349_v9 = vpack.c.bf16 %v4346_v15, %v4346_v15  ;;  %4967 = vmatpush.msrb.mxu0 %v4950_v51 }
 0x325   : > { %4904 = vmatmul.bf16.vlgmr.msra.gmra.mxu1 %v4347_v16  ;;  %4930 = vmatmul.bf16.vlgmr.msra.gmra.mxu3 %v4349_v9 }
 0x326   : > { %4968 = vmatpush.msrb.mxu0 %v4949_v35 }
 0x328   : > { %4969 = vmatpush.msrb.mxu0 %v4948_v17 }
 0x32a   : > { %4970 = vmatpush.msrb.mxu0 %v4947_v44 }
 0x32c   : > { %4971 = vmatpush.msrb.mxu0 %v4946_v52 }
 0x32e   : > { %4972 = vmatpush.msrb.mxu0 %v4945_v39 }
 0x330   : > { %4973 = vmatpush.msrb.mxu0 %v4944_v45 }
 0x332   : > { %4974 = vmatpush.msrb.mxu0 %v4943_v22 }
 0x334   : > { %4975 = vmatpush.msrb.mxu0 %v4942_v23 }
 0x336   : > { %4976 = vmatpush.msrb.mxu0 %v4941_v3 }
 0x392   : > { %v4748_v50 = vpop.f32.mrf.mxu0  ;;  %v4722_v12 = vpop.f32.mrf.mxu2 }
 0x398   : > { %v4735_v26 = vpop.f32.mrf.mxu3 }
 0x399   : > { %v4736_v6 = vadd.f32 %v4735_v26, %v4722_v12 }
 0x39a   : > { %v4750_v27 = vpop.f32.mrf.mxu0  ;;  %v4724_v4 = vpop.f32.mrf.mxu2 }
 0x39b   : > { %v4749_v43 = vadd.f32 %v4748_v50, %v4736_v6 }
 0x3a0   : > { %v4737_v61 = vpop.f32.mrf.mxu3 }
 0x3a2   : > { %v4905_v11 = vpop.f32.mrf.mxu1 }
 0x3a3   : > { %v4906_v5 = vadd.f32 %v4905_v11, %v4749_v43 }
 0x3a6   : > { %v4918_v56 = vpop.f32.mrf.mxu2 }
 0x3a7   : > { %v4919_v41 = vadd.f32 %v4918_v56, %v4906_v5 }
 0x3a8   : > { %v4931_v30 = vpop.f32.mrf.mxu3 }
 0x3a9   : > { %v4932_v33 = vadd.f32 %v4931_v30, %v4919_v41 }
 0x3aa   : > { %v4907_v32 = vpop.f32.mrf.mxu1 }
 0x3ab   : > { %v4939_v18 = vadd.f32 %v7747_v13, %v4932_v33 }
 0x3ad   : > { %v4940_v46 = vmax.f32 %v4939_v18, 0.0 }
 0x3ae   : > { %v4920_v42 = vpop.f32.mrf.mxu2 }
 0x3af   : > { %4977 = vmatmul.f32.vlgmr.msrb.gmra.mxu0 %v4940_v46 }
 0x3b0   : > { %v4933_v54 = vpop.f32.mrf.mxu3 }
 0x42c   : > { %v4978_v19 = vpop.f32.mrf.mxu0 }
 0x42d   : > { %v4979_v8 = vadd.f32 %v7748_v40, %v4978_v19 }
 0x42f   : > { %v4981_v24 = vmax.f32 %v4979_v8, 0.0 }
 0x431   : > { %v4986_v48 = vmul.f32 %v7749_v0, %v4981_v24 }
 0x433   : > { %v4988_v53 = vsel %vm4987_vm5, %v4986_v48, 0.0 }
 0x434   : > { %4989 = vadd.xlane.f32.xlu1 %v4988_v53 }
 0x4a7   : > { %v4990_v55 = vpop.xlane.xlu1 %4989 }
 0x4a8   : > { %v4995_v29 = vadd.f32 %v7750_v59, %v4990_v55 }
 0x4aa   : > { %v7054_v14 = vmul.f32 -1.442695, %v4995_v29 }
 0x4ac   : > { %7751 = vpow2.f32 %v7054_v14 }
 0x4b2   : > { %v7752_v20 = vpop.eup %7751 }
 0x4b3   : > { %v4999_v34 = vadd.f32 1.0, %v7752_v20 }
 0x4b5   : > { %7753 = vrcp.f32 %v4999_v34  ;;  %v5011_v62 = vand.u32 2147483648, %v4999_v34  ;;  %v5009_v25 = vand.u32 2147483647, %v4999_v34  ;;  %vm5005_vm8 = vweird.f32 %v4999_v34 }
 0x4b7   : > { %v5012_v31 = vor.u32 1.1754944e-38, %v5011_v62  ;;  %vm5010_vm13 = vcmp.eq.f32.partialorder %v5009_v25, 8.507059e+37 }
 0x4bb   : > { %v7754_v63 = vpop.eup %7753 }
 0x4bc   : > { %v5001_v57 = vmul.f32 %v7754_v63, %v4999_v34  ;;  %vm5006_vm7 = vweird.f32 %v7754_v63 }
 0x4bd   : > { %vm5007_vm12 = vmor %vm5005_vm8, %vm5006_vm7 }
 0x4be   : > { %v5002_v7 = vsub.f32 1.0, %v5001_v57 }
 0x4c0   : > { %v5003_v28 = vmul.f32 %v7754_v63, %v5002_v7 }
 0x4c2   : > { %v5004_v47 = vadd.f32 %v7754_v63, %v5003_v28 }
 0x4c4   : > { %v5008_v10 = vsel %vm5007_vm12, %v7754_v63, %v5004_v47 }
 0x4c5   : > { %v5013_v38 = vsel %vm5010_vm13, %v5012_v31, %v5008_v10 }
 0x4c6   : > { %5016 = vst.msk [vmem:[%s499_s23] sm:$0xff] %vm5015_vm10, %v5013_v38 }
 0x4c7 PF: > { %p26_p3 = scmp.ge.s32.totalorder %s8093_s13, 4   ;;  %s8916_s23 = smov %s7940_s24 }
 0x4c8   : > { %s8917_s24 = smov %s7944_s25  ;;  %s8918_s25 = smov %s8105_s1 }
 0x4c9   : > { %s8919_s26 = smov %s8093_s13  ;;  %28 = sbr.rel (!%p26_p3) target bundleno = 9 (0x9), region = 124 }
 0x4ce   :  { %5036 = vsyncpa [#allocation4], 1 }
 0x4cf   :  { %5038 = vsyncpa [#allocation4 + $0x1], 1 }
 0x4d0   :  { %5039 = vsyncpa [#allocation6], 1 }
 0x4d1   :  { %5040 = vsyncpa [#allocation9], 1 }

</bundles_post_ra>
